<compile_context>
chip_gen: v7x
topology: tpu7x:2x2x1
jax: 0.10.0
libtpu: 0.0.40
codegen_flags: <defaults>
</compile_context>

<pallas_src>
import functools

import jax
import jax.numpy as jnp
from jax import lax
from jax.experimental import pallas as pl
from jax.experimental.pallas import tpu as pltpu


# ----------------------------------------------------------------------------
# Fused kernel: all GAT layers + attention means + label propagation.
# ----------------------------------------------------------------------------
def fused_label_prop_gat_kernel(x_ref, adj_ref, *rest, heads, f_outs,
                                neg_slope, label_prop_steps, num_classes,
                                c_pad):
    n_layers = len(heads)                      # hidden layers + output layer
    param_refs = rest[:3 * n_layers]           # (W, Al, Ar) per layer
    out_ref = rest[3 * n_layers]               # [N, c_pad] f32 output
    h_scr = rest[3 * n_layers + 1]             # VMEM scratch for hidden h

    # int8 adjacency -> boolean edge mask (i8 -> f32 convert is cheap VPU work)
    edge_mask = adj_ref[...].astype(jnp.float32) > 0.0        # [N, N]
    n = edge_mask.shape[0]
    inv_layers = 1.0 / n_layers

    h = x_ref[...]                                             # [N, F_in] f32
    attn_mean = jnp.zeros((n, n), jnp.float32)                 # layer-mean attn
    logits = None

    for l in range(n_layers):                                  # static unroll
        w_ref = param_refs[3 * l]                              # [F_in_l, H*F] bf16
        al_ref = param_refs[3 * l + 1]                         # [H, H*F] f32
        ar_ref = param_refs[3 * l + 2]                         # [H, H*F] f32
        H = heads[l]
        F = f_outs[l]
        is_last = (l == n_layers - 1)

        # Feature transform on the MXU: bf16 inputs, f32 accumulation.
        feat = jnp.dot(h.astype(jnp.bfloat16), w_ref[...],
                       preferred_element_type=jnp.float32)     # [N, H*F]

        # Per-node attention scores for ALL heads with one matmul each
        # (Al/Ar hold each head's attention vector scattered into its own
        #  feature block, so no per-head M=1 matmuls are needed).
        el_all = lax.dot_general(al_ref[...], feat,
                                 (((1,), (1,)), ((), ())),
                                 preferred_element_type=jnp.float32)  # [H, N]
        er_all = lax.dot_general(feat, ar_ref[...],
                                 (((1,), (1,)), ((), ())),
                                 preferred_element_type=jnp.float32)  # [N, H]

        head_sum = None
        alpha_sum = jnp.zeros((n, n), jnp.float32)
        for hd in range(H):                                    # static unroll
            er = er_all[:, hd:hd + 1]                          # [N, 1] dst score
            el = el_all[hd:hd + 1, :]                          # [1, N] src score
            e = er + el                                        # [N_dst, N_src]
            e = jnp.where(e > 0.0, e, neg_slope * e)           # LeakyReLU
            e = jnp.where(edge_mask, e, -1e30)                 # mask non-edges

            # Softmax over incoming edges (source axis).  Masked entries
            # underflow to exactly 0 in exp, so no second mask is needed.
            e = e - jnp.max(e, axis=1, keepdims=True)
            p = jnp.exp(e)
            alpha = p * pl.reciprocal(jnp.sum(p, axis=1, keepdims=True),
                                      approx=True)
            alpha_sum = alpha_sum + alpha

            # Aggregate neighbor features (bf16 MXU, f32 accumulate).
            fh = feat[:, hd * F:(hd + 1) * F]                  # [N, F]
            o = jnp.dot(alpha.astype(jnp.bfloat16), fh.astype(jnp.bfloat16),
                        preferred_element_type=jnp.float32)    # [N, F]
            if is_last:
                head_sum = o if head_sum is None else head_sum + o
            else:
                # ELU (overflow-safe), concat-over-heads via scratch slices.
                h_scr[:, hd * F:(hd + 1) * F] = jnp.where(
                    o > 0.0, o, jnp.exp(jnp.minimum(o, 0.0)) - 1.0)

        # head-mean of this layer's attention, accumulated into the layer mean.
        attn_mean = attn_mean + alpha_sum * (inv_layers / H)

        if is_last:
            logits = head_sum * (1.0 / H)                      # [N, c_pad]
        else:
            h = h_scr[:, :H * F]                               # [N, H*F]

    # ---- label propagation (class dim padded to c_pad lanes) ----------------
    col_mask = lax.broadcasted_iota(jnp.int32, (n, c_pad), 1) < num_classes

    def masked_softmax(z):
        z = jnp.where(col_mask, z, -1e30)
        z = z - jnp.max(z, axis=1, keepdims=True)
        p = jnp.exp(z)                                         # padded cols -> 0
        return p * pl.reciprocal(jnp.sum(p, axis=1, keepdims=True),
                                 approx=False)

    pseudo = masked_softmax(logits)
    for _ in range(label_prop_steps):                          # static unroll
        prop = jnp.dot(attn_mean, pseudo, preferred_element_type=jnp.float32)
        pseudo = masked_softmax(prop)

    # lane-dense [N, 128] store; padded columns written as log(1) = 0.
    out_ref[...] = jnp.log(jnp.where(col_mask, pseudo, 1.0))


# ----------------------------------------------------------------------------
# Wrapper: parameter packing + pallas_call.
# ----------------------------------------------------------------------------
def _pack_layer_params(W, a_l, a_r, heads_l, f_out, f_out_padded):
    """Scatter each head's W block / attention vectors into (optionally lane-
    padded) head-major blocks, so the kernel can compute el/er for all heads
    with single matmuls."""
    f_in = W.shape[0]
    Wp = jnp.zeros((f_in, heads_l * f_out_padded), jnp.float32)
    Al = jnp.zeros((heads_l, heads_l * f_out_padded), jnp.float32)
    Ar = jnp.zeros((heads_l, heads_l * f_out_padded), jnp.float32)
    for h in range(heads_l):
        Wp = Wp.at[:, h * f_out_padded:h * f_out_padded + f_out].set(
            W[:, h * f_out:(h + 1) * f_out])
        Al = Al.at[h, h * f_out_padded:h * f_out_padded + f_out].set(a_l[h])
        Ar = Ar.at[h, h * f_out_padded:h * f_out_padded + f_out].set(a_r[h])
    return Wp.astype(jnp.bfloat16), Al, Ar


def label_prop_gat_forward(x, adj_i8, params, *, heads, dims_out, num_layers,
                           num_classes, label_prop_steps, neg_slope,
                           c_pad=128):
    N = x.shape[0]
    n_layers = num_layers + 1
    assert len(params) == n_layers and len(heads) == n_layers

    # Per-layer output width as seen by the kernel (last layer lane-padded).
    f_outs = tuple(dims_out[l] if l < num_layers else c_pad
                   for l in range(n_layers))

    kernel_inputs = [x, adj_i8]
    for l in range(n_layers):
        W, a_l, a_r = params[l]
        f_out = dims_out[l] if l < num_layers else num_classes
        Wp, Al, Ar = _pack_layer_params(W, a_l, a_r, heads[l], f_out, f_outs[l])
        kernel_inputs += [Wp, Al, Ar]

    max_hidden = max(heads[l] * dims_out[l] for l in range(num_layers))

    kernel = functools.partial(
        fused_label_prop_gat_kernel,
        heads=tuple(heads), f_outs=f_outs, neg_slope=neg_slope,
        label_prop_steps=label_prop_steps, num_classes=num_classes,
        c_pad=c_pad)

    out_padded = pl.pallas_call(
        kernel,
        out_shape=jax.ShapeDtypeStruct((N, c_pad), jnp.float32),
        in_specs=[pl.BlockSpec(memory_space=pltpu.MemorySpace.VMEM)]
        * len(kernel_inputs),
        out_specs=pl.BlockSpec(memory_space=pltpu.MemorySpace.VMEM),
        scratch_shapes=[pltpu.VMEM((N, max_hidden), jnp.float32)],
        compiler_params=pltpu.CompilerParams(
            vmem_limit_bytes=32 * 1024 * 1024),
    )(*kernel_inputs)

    return out_padded[:, :num_classes]


if __name__ == "__main__":
    key = jax.random.PRNGKey(0)

    # small, forward-consistent configuration
    N = 64                 # number of graph nodes
    in_dim = 16
    num_hidden = 8
    num_classes = 4
    num_layers = 2
    heads = [2, 2, 2]      # len == num_layers + 1
    label_prop_steps = 3
    neg_slope = 0.2

    # deterministic adjacency with self loops, stored as int8 mask
    key, k_adj = jax.random.split(key)
    adj_bool = jax.random.uniform(k_adj, (N, N)) < 0.15
    adj_bool = adj_bool | jnp.eye(N, dtype=bool)
    adj = adj_bool.astype(jnp.int8)

    # deterministic node features
    key, k_x = jax.random.split(key)
    x = jax.random.normal(k_x, (N, in_dim), dtype=jnp.float32)

    # deterministic GAT parameters
    dims_in = [in_dim, num_hidden * heads[0], num_hidden * heads[1]]
    dims_out = [num_hidden, num_hidden, num_classes]
    params = []
    for l in range(num_layers + 1):
        key, kw, kl, kr = jax.random.split(key, 4)
        fi, fo, H = dims_in[l], dims_out[l], heads[l]
        W = jax.random.normal(kw, (fi, H * fo), dtype=jnp.float32) / jnp.sqrt(
            jnp.float32(fi))
        a_l = jax.random.normal(kl, (H, fo), dtype=jnp.float32) * 0.1
        a_r = jax.random.normal(kr, (H, fo), dtype=jnp.float32) * 0.1
        params.append((W, a_l, a_r))

    out = label_prop_gat_forward(
        x, adj, params, heads=heads, dims_out=dims_out, num_layers=num_layers,
        num_classes=num_classes, label_prop_steps=label_prop_steps,
        neg_slope=neg_slope)
    jax.block_until_ready(out)
    assert out.shape == (N, num_classes)
    assert bool(jnp.all(jnp.isfinite(out)))
    print("KERNEL_OK")
</pallas_src>

<mosaic_0001>
module attributes {stable_mosaic.version = 11 : i64} {
  func.func @fused_label_prop_gat_kernel(%arg0: memref<64x16xf32, #tpu.memory_space<vmem>>, %arg1: memref<64x64xi8, #tpu.memory_space<vmem>>, %arg2: memref<16x16xbf16, #tpu.memory_space<vmem>>, %arg3: memref<2x16xf32, #tpu.memory_space<vmem>>, %arg4: memref<2x16xf32, #tpu.memory_space<vmem>>, %arg5: memref<16x16xbf16, #tpu.memory_space<vmem>>, %arg6: memref<2x16xf32, #tpu.memory_space<vmem>>, %arg7: memref<2x16xf32, #tpu.memory_space<vmem>>, %arg8: memref<16x256xbf16, #tpu.memory_space<vmem>>, %arg9: memref<2x256xf32, #tpu.memory_space<vmem>>, %arg10: memref<2x256xf32, #tpu.memory_space<vmem>>, %arg11: memref<64x128xf32, #tpu.memory_space<vmem>>, %arg12: memref<64x16xf32, #tpu.memory_space<vmem>>) attributes {dimension_semantics = [], scalar_prefetch = 0 : i64, scratch_operands = 1 : i64, tpu.core_type = #tpu.core_type<tc>} {
    %c0 = arith.constant 0 : index
    %c0_0 = arith.constant 0 : index
    %0 = vector.load %arg1[%c0, %c0_0] : memref<64x64xi8, #tpu.memory_space<vmem>>, vector<64x64xi8>
    %1 = arith.sitofp %0 : vector<64x64xi8> to vector<64x64xf32>
    %cst = arith.constant 0.000000e+00 : f32
    %2 = vector.broadcast %cst : f32 to vector<64x64xf32>
    %3 = arith.cmpf ogt, %1, %2 : vector<64x64xf32>
    %c0_1 = arith.constant 0 : index
    %c0_2 = arith.constant 0 : index
    %4 = vector.load %arg0[%c0_1, %c0_2] : memref<64x16xf32, #tpu.memory_space<vmem>>, vector<64x16xf32>
    %cst_3 = arith.constant 0.000000e+00 : f32
    %5 = vector.broadcast %cst_3 : f32 to vector<64x64xf32>
    %6 = arith.truncf %4 : vector<64x16xf32> to vector<64x16xbf16>
    %c0_4 = arith.constant 0 : index
    %c0_5 = arith.constant 0 : index
    %7 = vector.load %arg2[%c0_4, %c0_5] : memref<16x16xbf16, #tpu.memory_space<vmem>>, vector<16x16xbf16>
    %cst_6 = arith.constant dense<0.000000e+00> : vector<64x16xf32>
    %8 = tpu.matmul %6, %7, %cst_6 {dimension_numbers = #tpu.dot_dimension_numbers<[1], [0], [0], [1], [0, 0, 1, 1], [], []>} : vector<64x16xbf16>, vector<16x16xbf16>, vector<64x16xf32> -> vector<64x16xf32>
    %c0_7 = arith.constant 0 : index
    %c0_8 = arith.constant 0 : index
    %9 = vector.load %arg3[%c0_7, %c0_8] : memref<2x16xf32, #tpu.memory_space<vmem>>, vector<2x16xf32>
    %cst_9 = arith.constant dense<0.000000e+00> : vector<2x64xf32>
    %10 = tpu.matmul %9, %8, %cst_9 {dimension_numbers = #tpu.dot_dimension_numbers<[1], [1], [0], [0], [0, 0, 1, 0], [], []>} : vector<2x16xf32>, vector<64x16xf32>, vector<2x64xf32> -> vector<2x64xf32>
    %c0_10 = arith.constant 0 : index
    %c0_11 = arith.constant 0 : index
    %11 = vector.load %arg4[%c0_10, %c0_11] : memref<2x16xf32, #tpu.memory_space<vmem>>, vector<2x16xf32>
    %cst_12 = arith.constant dense<0.000000e+00> : vector<64x2xf32>
    %12 = tpu.matmul %8, %11, %cst_12 {dimension_numbers = #tpu.dot_dimension_numbers<[1], [1], [0], [0], [0, 0, 1, 0], [], []>} : vector<64x16xf32>, vector<2x16xf32>, vector<64x2xf32> -> vector<64x2xf32>
    %cst_13 = arith.constant 0.000000e+00 : f32
    %13 = vector.broadcast %cst_13 : f32 to vector<64x64xf32>
    %14 = vector.extract_strided_slice %12 {offsets = [0, 0], sizes = [64, 1], strides = [1, 1]} : vector<64x2xf32> to vector<64x1xf32>
    %15 = vector.extract_strided_slice %10 {offsets = [0, 0], sizes = [1, 64], strides = [1, 1]} : vector<2x64xf32> to vector<1x64xf32>
    %16 = vector.broadcast %14 : vector<64x1xf32> to vector<64x64xf32>
    %17 = vector.broadcast %15 : vector<1x64xf32> to vector<64x64xf32>
    %18 = arith.addf %16, %17 : vector<64x64xf32>
    %cst_14 = arith.constant 0.000000e+00 : f32
    %19 = vector.broadcast %cst_14 : f32 to vector<64x64xf32>
    %20 = arith.cmpf ogt, %18, %19 : vector<64x64xf32>
    %cst_15 = arith.constant 2.000000e-01 : f32
    %21 = vector.broadcast %cst_15 : f32 to vector<64x64xf32>
    %22 = arith.mulf %21, %18 : vector<64x64xf32>
    %23 = arith.select %20, %18, %22 : vector<64x64xi1>, vector<64x64xf32>
    %cst_16 = arith.constant -1.000000e+30 : f32
    %24 = vector.broadcast %cst_16 : f32 to vector<64x64xf32>
    %25 = arith.select %3, %23, %24 : vector<64x64xi1>, vector<64x64xf32>
    %cst_17 = arith.constant dense<0xFF800000> : vector<64xf32>
    %26 = vector.multi_reduction <maximumf>, %25, %cst_17 [1] : vector<64x64xf32> to vector<64xf32>
    %27 = vector.shape_cast %26 : vector<64xf32> to vector<64x1xf32>
    %28 = vector.broadcast %27 : vector<64x1xf32> to vector<64x64xf32>
    %29 = arith.subf %25, %28 : vector<64x64xf32>
    %30 = math.exp %29 : vector<64x64xf32>
    %cst_18 = arith.constant dense<0.000000e+00> : vector<64xf32>
    %31 = vector.multi_reduction <add>, %30, %cst_18 [1] : vector<64x64xf32> to vector<64xf32>
    %32 = vector.shape_cast %31 : vector<64xf32> to vector<64x1xf32>
    %33 = tpu.reciprocal %32 {approx = true} : vector<64x1xf32> -> vector<64x1xf32>
    %34 = vector.broadcast %33 : vector<64x1xf32> to vector<64x64xf32>
    %35 = arith.mulf %30, %34 : vector<64x64xf32>
    %36 = arith.addf %13, %35 : vector<64x64xf32>
    %37 = vector.extract_strided_slice %8 {offsets = [0, 0], sizes = [64, 8], strides = [1, 1]} : vector<64x16xf32> to vector<64x8xf32>
    %38 = arith.truncf %35 : vector<64x64xf32> to vector<64x64xbf16>
    %39 = arith.truncf %37 : vector<64x8xf32> to vector<64x8xbf16>
    %cst_19 = arith.constant dense<0.000000e+00> : vector<64x8xf32>
    %40 = tpu.matmul %38, %39, %cst_19 {dimension_numbers = #tpu.dot_dimension_numbers<[1], [0], [0], [1], [0, 0, 1, 1], [], []>} : vector<64x64xbf16>, vector<64x8xbf16>, vector<64x8xf32> -> vector<64x8xf32>
    %cst_20 = arith.constant 0.000000e+00 : f32
    %41 = vector.broadcast %cst_20 : f32 to vector<64x8xf32>
    %42 = arith.cmpf ogt, %40, %41 : vector<64x8xf32>
    %cst_21 = arith.constant 0.000000e+00 : f32
    %43 = vector.broadcast %cst_21 : f32 to vector<64x8xf32>
    %44 = arith.minimumf %40, %43 : vector<64x8xf32>
    %45 = math.exp %44 : vector<64x8xf32>
    %cst_22 = arith.constant 1.000000e+00 : f32
    %46 = vector.broadcast %cst_22 : f32 to vector<64x8xf32>
    %47 = arith.subf %45, %46 : vector<64x8xf32>
    %48 = arith.select %42, %40, %47 : vector<64x8xi1>, vector<64x8xf32>
    %c0_23 = arith.constant 0 : index
    %c0_24 = arith.constant 0 : index
    %49 = vector.load %arg12[%c0_23, %c0_24] : memref<64x16xf32, #tpu.memory_space<vmem>>, vector<64x8xf32>
    tpu.vector_store %arg12[%c0_23, %c0_24], %48 {strides = array<i32>} : memref<64x16xf32, #tpu.memory_space<vmem>>, vector<64x8xf32>,
    %50 = vector.extract_strided_slice %12 {offsets = [0, 1], sizes = [64, 1], strides = [1, 1]} : vector<64x2xf32> to vector<64x1xf32>
    %51 = vector.extract_strided_slice %10 {offsets = [1, 0], sizes = [1, 64], strides = [1, 1]} : vector<2x64xf32> to vector<1x64xf32>
    %52 = vector.broadcast %50 : vector<64x1xf32> to vector<64x64xf32>
    %53 = vector.broadcast %51 : vector<1x64xf32> to vector<64x64xf32>
    %54 = arith.addf %52, %53 : vector<64x64xf32>
    %cst_25 = arith.constant 0.000000e+00 : f32
    %55 = vector.broadcast %cst_25 : f32 to vector<64x64xf32>
    %56 = arith.cmpf ogt, %54, %55 : vector<64x64xf32>
    %cst_26 = arith.constant 2.000000e-01 : f32
    %57 = vector.broadcast %cst_26 : f32 to vector<64x64xf32>
    %58 = arith.mulf %57, %54 : vector<64x64xf32>
    %59 = arith.select %56, %54, %58 : vector<64x64xi1>, vector<64x64xf32>
    %cst_27 = arith.constant -1.000000e+30 : f32
    %60 = vector.broadcast %cst_27 : f32 to vector<64x64xf32>
    %61 = arith.select %3, %59, %60 : vector<64x64xi1>, vector<64x64xf32>
    %cst_28 = arith.constant dense<0xFF800000> : vector<64xf32>
    %62 = vector.multi_reduction <maximumf>, %61, %cst_28 [1] : vector<64x64xf32> to vector<64xf32>
    %63 = vector.shape_cast %62 : vector<64xf32> to vector<64x1xf32>
    %64 = vector.broadcast %63 : vector<64x1xf32> to vector<64x64xf32>
    %65 = arith.subf %61, %64 : vector<64x64xf32>
    %66 = math.exp %65 : vector<64x64xf32>
    %cst_29 = arith.constant dense<0.000000e+00> : vector<64xf32>
    %67 = vector.multi_reduction <add>, %66, %cst_29 [1] : vector<64x64xf32> to vector<64xf32>
    %68 = vector.shape_cast %67 : vector<64xf32> to vector<64x1xf32>
    %69 = tpu.reciprocal %68 {approx = true} : vector<64x1xf32> -> vector<64x1xf32>
    %70 = vector.broadcast %69 : vector<64x1xf32> to vector<64x64xf32>
    %71 = arith.mulf %66, %70 : vector<64x64xf32>
    %72 = arith.addf %36, %71 : vector<64x64xf32>
    %73 = vector.extract_strided_slice %8 {offsets = [0, 8], sizes = [64, 8], strides = [1, 1]} : vector<64x16xf32> to vector<64x8xf32>
    %74 = arith.truncf %71 : vector<64x64xf32> to vector<64x64xbf16>
    %75 = arith.truncf %73 : vector<64x8xf32> to vector<64x8xbf16>
    %cst_30 = arith.constant dense<0.000000e+00> : vector<64x8xf32>
    %76 = tpu.matmul %74, %75, %cst_30 {dimension_numbers = #tpu.dot_dimension_numbers<[1], [0], [0], [1], [0, 0, 1, 1], [], []>} : vector<64x64xbf16>, vector<64x8xbf16>, vector<64x8xf32> -> vector<64x8xf32>
    %cst_31 = arith.constant 0.000000e+00 : f32
    %77 = vector.broadcast %cst_31 : f32 to vector<64x8xf32>
    %78 = arith.cmpf ogt, %76, %77 : vector<64x8xf32>
    %cst_32 = arith.constant 0.000000e+00 : f32
    %79 = vector.broadcast %cst_32 : f32 to vector<64x8xf32>
    %80 = arith.minimumf %76, %79 : vector<64x8xf32>
    %81 = math.exp %80 : vector<64x8xf32>
    %cst_33 = arith.constant 1.000000e+00 : f32
    %82 = vector.broadcast %cst_33 : f32 to vector<64x8xf32>
    %83 = arith.subf %81, %82 : vector<64x8xf32>
    %84 = arith.select %78, %76, %83 : vector<64x8xi1>, vector<64x8xf32>
    %c0_34 = arith.constant 0 : index
    %c8 = arith.constant 8 : index
    %85 = vector.load %arg12[%c0_34, %c8] : memref<64x16xf32, #tpu.memory_space<vmem>>, vector<64x8xf32>
    tpu.vector_store %arg12[%c0_34, %c8], %84 {strides = array<i32>} : memref<64x16xf32, #tpu.memory_space<vmem>>, vector<64x8xf32>,
    %cst_35 = arith.constant 0.166666672 : f32
    %86 = vector.broadcast %cst_35 : f32 to vector<64x64xf32>
    %87 = arith.mulf %72, %86 : vector<64x64xf32>
    %88 = arith.addf %5, %87 : vector<64x64xf32>
    %c0_36 = arith.constant 0 : index
    %c0_37 = arith.constant 0 : index
    %89 = vector.load %arg12[%c0_36, %c0_37] : memref<64x16xf32, #tpu.memory_space<vmem>>, vector<64x16xf32>
    %90 = arith.truncf %89 : vector<64x16xf32> to vector<64x16xbf16>
    %c0_38 = arith.constant 0 : index
    %c0_39 = arith.constant 0 : index
    %91 = vector.load %arg5[%c0_38, %c0_39] : memref<16x16xbf16, #tpu.memory_space<vmem>>, vector<16x16xbf16>
    %cst_40 = arith.constant dense<0.000000e+00> : vector<64x16xf32>
    %92 = tpu.matmul %90, %91, %cst_40 {dimension_numbers = #tpu.dot_dimension_numbers<[1], [0], [0], [1], [0, 0, 1, 1], [], []>} : vector<64x16xbf16>, vector<16x16xbf16>, vector<64x16xf32> -> vector<64x16xf32>
    %c0_41 = arith.constant 0 : index
    %c0_42 = arith.constant 0 : index
    %93 = vector.load %arg6[%c0_41, %c0_42] : memref<2x16xf32, #tpu.memory_space<vmem>>, vector<2x16xf32>
    %cst_43 = arith.constant dense<0.000000e+00> : vector<2x64xf32>
    %94 = tpu.matmul %93, %92, %cst_43 {dimension_numbers = #tpu.dot_dimension_numbers<[1], [1], [0], [0], [0, 0, 1, 0], [], []>} : vector<2x16xf32>, vector<64x16xf32>, vector<2x64xf32> -> vector<2x64xf32>
    %c0_44 = arith.constant 0 : index
    %c0_45 = arith.constant 0 : index
    %95 = vector.load %arg7[%c0_44, %c0_45] : memref<2x16xf32, #tpu.memory_space<vmem>>, vector<2x16xf32>
    %cst_46 = arith.constant dense<0.000000e+00> : vector<64x2xf32>
    %96 = tpu.matmul %92, %95, %cst_46 {dimension_numbers = #tpu.dot_dimension_numbers<[1], [1], [0], [0], [0, 0, 1, 0], [], []>} : vector<64x16xf32>, vector<2x16xf32>, vector<64x2xf32> -> vector<64x2xf32>
    %cst_47 = arith.constant 0.000000e+00 : f32
    %97 = vector.broadcast %cst_47 : f32 to vector<64x64xf32>
    %98 = vector.extract_strided_slice %96 {offsets = [0, 0], sizes = [64, 1], strides = [1, 1]} : vector<64x2xf32> to vector<64x1xf32>
    %99 = vector.extract_strided_slice %94 {offsets = [0, 0], sizes = [1, 64], strides = [1, 1]} : vector<2x64xf32> to vector<1x64xf32>
    %100 = vector.broadcast %98 : vector<64x1xf32> to vector<64x64xf32>
    %101 = vector.broadcast %99 : vector<1x64xf32> to vector<64x64xf32>
    %102 = arith.addf %100, %101 : vector<64x64xf32>
    %cst_48 = arith.constant 0.000000e+00 : f32
    %103 = vector.broadcast %cst_48 : f32 to vector<64x64xf32>
    %104 = arith.cmpf ogt, %102, %103 : vector<64x64xf32>
    %cst_49 = arith.constant 2.000000e-01 : f32
    %105 = vector.broadcast %cst_49 : f32 to vector<64x64xf32>
    %106 = arith.mulf %105, %102 : vector<64x64xf32>
    %107 = arith.select %104, %102, %106 : vector<64x64xi1>, vector<64x64xf32>
    %cst_50 = arith.constant -1.000000e+30 : f32
    %108 = vector.broadcast %cst_50 : f32 to vector<64x64xf32>
    %109 = arith.select %3, %107, %108 : vector<64x64xi1>, vector<64x64xf32>
    %cst_51 = arith.constant dense<0xFF800000> : vector<64xf32>
    %110 = vector.multi_reduction <maximumf>, %109, %cst_51 [1] : vector<64x64xf32> to vector<64xf32>
    %111 = vector.shape_cast %110 : vector<64xf32> to vector<64x1xf32>
    %112 = vector.broadcast %111 : vector<64x1xf32> to vector<64x64xf32>
    %113 = arith.subf %109, %112 : vector<64x64xf32>
    %114 = math.exp %113 : vector<64x64xf32>
    %cst_52 = arith.constant dense<0.000000e+00> : vector<64xf32>
    %115 = vector.multi_reduction <add>, %114, %cst_52 [1] : vector<64x64xf32> to vector<64xf32>
    %116 = vector.shape_cast %115 : vector<64xf32> to vector<64x1xf32>
    %117 = tpu.reciprocal %116 {approx = true} : vector<64x1xf32> -> vector<64x1xf32>
    %118 = vector.broadcast %117 : vector<64x1xf32> to vector<64x64xf32>
    %119 = arith.mulf %114, %118 : vector<64x64xf32>
    %120 = arith.addf %97, %119 : vector<64x64xf32>
    %121 = vector.extract_strided_slice %92 {offsets = [0, 0], sizes = [64, 8], strides = [1, 1]} : vector<64x16xf32> to vector<64x8xf32>
    %122 = arith.truncf %119 : vector<64x64xf32> to vector<64x64xbf16>
    %123 = arith.truncf %121 : vector<64x8xf32> to vector<64x8xbf16>
    %cst_53 = arith.constant dense<0.000000e+00> : vector<64x8xf32>
    %124 = tpu.matmul %122, %123, %cst_53 {dimension_numbers = #tpu.dot_dimension_numbers<[1], [0], [0], [1], [0, 0, 1, 1], [], []>} : vector<64x64xbf16>, vector<64x8xbf16>, vector<64x8xf32> -> vector<64x8xf32>
    %cst_54 = arith.constant 0.000000e+00 : f32
    %125 = vector.broadcast %cst_54 : f32 to vector<64x8xf32>
    %126 = arith.cmpf ogt, %124, %125 : vector<64x8xf32>
    %cst_55 = arith.constant 0.000000e+00 : f32
    %127 = vector.broadcast %cst_55 : f32 to vector<64x8xf32>
    %128 = arith.minimumf %124, %127 : vector<64x8xf32>
    %129 = math.exp %128 : vector<64x8xf32>
    %cst_56 = arith.constant 1.000000e+00 : f32
    %130 = vector.broadcast %cst_56 : f32 to vector<64x8xf32>
    %131 = arith.subf %129, %130 : vector<64x8xf32>
    %132 = arith.select %126, %124, %131 : vector<64x8xi1>, vector<64x8xf32>
    %c0_57 = arith.constant 0 : index
    %c0_58 = arith.constant 0 : index
    %133 = vector.load %arg12[%c0_57, %c0_58] : memref<64x16xf32, #tpu.memory_space<vmem>>, vector<64x8xf32>
    tpu.vector_store %arg12[%c0_57, %c0_58], %132 {strides = array<i32>} : memref<64x16xf32, #tpu.memory_space<vmem>>, vector<64x8xf32>,
    %134 = vector.extract_strided_slice %96 {offsets = [0, 1], sizes = [64, 1], strides = [1, 1]} : vector<64x2xf32> to vector<64x1xf32>
    %135 = vector.extract_strided_slice %94 {offsets = [1, 0], sizes = [1, 64], strides = [1, 1]} : vector<2x64xf32> to vector<1x64xf32>
    %136 = vector.broadcast %134 : vector<64x1xf32> to vector<64x64xf32>
    %137 = vector.broadcast %135 : vector<1x64xf32> to vector<64x64xf32>
    %138 = arith.addf %136, %137 : vector<64x64xf32>
    %cst_59 = arith.constant 0.000000e+00 : f32
    %139 = vector.broadcast %cst_59 : f32 to vector<64x64xf32>
    %140 = arith.cmpf ogt, %138, %139 : vector<64x64xf32>
    %cst_60 = arith.constant 2.000000e-01 : f32
    %141 = vector.broadcast %cst_60 : f32 to vector<64x64xf32>
    %142 = arith.mulf %141, %138 : vector<64x64xf32>
    %143 = arith.select %140, %138, %142 : vector<64x64xi1>, vector<64x64xf32>
    %cst_61 = arith.constant -1.000000e+30 : f32
    %144 = vector.broadcast %cst_61 : f32 to vector<64x64xf32>
    %145 = arith.select %3, %143, %144 : vector<64x64xi1>, vector<64x64xf32>
    %cst_62 = arith.constant dense<0xFF800000> : vector<64xf32>
    %146 = vector.multi_reduction <maximumf>, %145, %cst_62 [1] : vector<64x64xf32> to vector<64xf32>
    %147 = vector.shape_cast %146 : vector<64xf32> to vector<64x1xf32>
    %148 = vector.broadcast %147 : vector<64x1xf32> to vector<64x64xf32>
    %149 = arith.subf %145, %148 : vector<64x64xf32>
    %150 = math.exp %149 : vector<64x64xf32>
    %cst_63 = arith.constant dense<0.000000e+00> : vector<64xf32>
    %151 = vector.multi_reduction <add>, %150, %cst_63 [1] : vector<64x64xf32> to vector<64xf32>
    %152 = vector.shape_cast %151 : vector<64xf32> to vector<64x1xf32>
    %153 = tpu.reciprocal %152 {approx = true} : vector<64x1xf32> -> vector<64x1xf32>
    %154 = vector.broadcast %153 : vector<64x1xf32> to vector<64x64xf32>
    %155 = arith.mulf %150, %154 : vector<64x64xf32>
    %156 = arith.addf %120, %155 : vector<64x64xf32>
    %157 = vector.extract_strided_slice %92 {offsets = [0, 8], sizes = [64, 8], strides = [1, 1]} : vector<64x16xf32> to vector<64x8xf32>
    %158 = arith.truncf %155 : vector<64x64xf32> to vector<64x64xbf16>
    %159 = arith.truncf %157 : vector<64x8xf32> to vector<64x8xbf16>
    %cst_64 = arith.constant dense<0.000000e+00> : vector<64x8xf32>
    %160 = tpu.matmul %158, %159, %cst_64 {dimension_numbers = #tpu.dot_dimension_numbers<[1], [0], [0], [1], [0, 0, 1, 1], [], []>} : vector<64x64xbf16>, vector<64x8xbf16>, vector<64x8xf32> -> vector<64x8xf32>
    %cst_65 = arith.constant 0.000000e+00 : f32
    %161 = vector.broadcast %cst_65 : f32 to vector<64x8xf32>
    %162 = arith.cmpf ogt, %160, %161 : vector<64x8xf32>
    %cst_66 = arith.constant 0.000000e+00 : f32
    %163 = vector.broadcast %cst_66 : f32 to vector<64x8xf32>
    %164 = arith.minimumf %160, %163 : vector<64x8xf32>
    %165 = math.exp %164 : vector<64x8xf32>
    %cst_67 = arith.constant 1.000000e+00 : f32
    %166 = vector.broadcast %cst_67 : f32 to vector<64x8xf32>
    %167 = arith.subf %165, %166 : vector<64x8xf32>
    %168 = arith.select %162, %160, %167 : vector<64x8xi1>, vector<64x8xf32>
    %c0_68 = arith.constant 0 : index
    %c8_69 = arith.constant 8 : index
    %169 = vector.load %arg12[%c0_68, %c8_69] : memref<64x16xf32, #tpu.memory_space<vmem>>, vector<64x8xf32>
    tpu.vector_store %arg12[%c0_68, %c8_69], %168 {strides = array<i32>} : memref<64x16xf32, #tpu.memory_space<vmem>>, vector<64x8xf32>,
    %cst_70 = arith.constant 0.166666672 : f32
    %170 = vector.broadcast %cst_70 : f32 to vector<64x64xf32>
    %171 = arith.mulf %156, %170 : vector<64x64xf32>
    %172 = arith.addf %88, %171 : vector<64x64xf32>
    %c0_71 = arith.constant 0 : index
    %c0_72 = arith.constant 0 : index
    %173 = vector.load %arg12[%c0_71, %c0_72] : memref<64x16xf32, #tpu.memory_space<vmem>>, vector<64x16xf32>
    %174 = arith.truncf %173 : vector<64x16xf32> to vector<64x16xbf16>
    %c0_73 = arith.constant 0 : index
    %c0_74 = arith.constant 0 : index
    %175 = vector.load %arg8[%c0_73, %c0_74] : memref<16x256xbf16, #tpu.memory_space<vmem>>, vector<16x256xbf16>
    %cst_75 = arith.constant dense<0.000000e+00> : vector<64x256xf32>
    %176 = tpu.matmul %174, %175, %cst_75 {dimension_numbers = #tpu.dot_dimension_numbers<[1], [0], [0], [1], [0, 0, 1, 1], [], []>} : vector<64x16xbf16>, vector<16x256xbf16>, vector<64x256xf32> -> vector<64x256xf32>
    %c0_76 = arith.constant 0 : index
    %c0_77 = arith.constant 0 : index
    %177 = vector.load %arg9[%c0_76, %c0_77] : memref<2x256xf32, #tpu.memory_space<vmem>>, vector<2x256xf32>
    %cst_78 = arith.constant dense<0.000000e+00> : vector<2x64xf32>
    %178 = tpu.matmul %177, %176, %cst_78 {dimension_numbers = #tpu.dot_dimension_numbers<[1], [1], [0], [0], [0, 0, 1, 0], [], []>} : vector<2x256xf32>, vector<64x256xf32>, vector<2x64xf32> -> vector<2x64xf32>
    %c0_79 = arith.constant 0 : index
    %c0_80 = arith.constant 0 : index
    %179 = vector.load %arg10[%c0_79, %c0_80] : memref<2x256xf32, #tpu.memory_space<vmem>>, vector<2x256xf32>
    %cst_81 = arith.constant dense<0.000000e+00> : vector<64x2xf32>
    %180 = tpu.matmul %176, %179, %cst_81 {dimension_numbers = #tpu.dot_dimension_numbers<[1], [1], [0], [0], [0, 0, 1, 0], [], []>} : vector<64x256xf32>, vector<2x256xf32>, vector<64x2xf32> -> vector<64x2xf32>
    %cst_82 = arith.constant 0.000000e+00 : f32
    %181 = vector.broadcast %cst_82 : f32 to vector<64x64xf32>
    %182 = vector.extract_strided_slice %180 {offsets = [0, 0], sizes = [64, 1], strides = [1, 1]} : vector<64x2xf32> to vector<64x1xf32>
    %183 = vector.extract_strided_slice %178 {offsets = [0, 0], sizes = [1, 64], strides = [1, 1]} : vector<2x64xf32> to vector<1x64xf32>
    %184 = vector.broadcast %182 : vector<64x1xf32> to vector<64x64xf32>
    %185 = vector.broadcast %183 : vector<1x64xf32> to vector<64x64xf32>
    %186 = arith.addf %184, %185 : vector<64x64xf32>
    %cst_83 = arith.constant 0.000000e+00 : f32
    %187 = vector.broadcast %cst_83 : f32 to vector<64x64xf32>
    %188 = arith.cmpf ogt, %186, %187 : vector<64x64xf32>
    %cst_84 = arith.constant 2.000000e-01 : f32
    %189 = vector.broadcast %cst_84 : f32 to vector<64x64xf32>
    %190 = arith.mulf %189, %186 : vector<64x64xf32>
    %191 = arith.select %188, %186, %190 : vector<64x64xi1>, vector<64x64xf32>
    %cst_85 = arith.constant -1.000000e+30 : f32
    %192 = vector.broadcast %cst_85 : f32 to vector<64x64xf32>
    %193 = arith.select %3, %191, %192 : vector<64x64xi1>, vector<64x64xf32>
    %cst_86 = arith.constant dense<0xFF800000> : vector<64xf32>
    %194 = vector.multi_reduction <maximumf>, %193, %cst_86 [1] : vector<64x64xf32> to vector<64xf32>
    %195 = vector.shape_cast %194 : vector<64xf32> to vector<64x1xf32>
    %196 = vector.broadcast %195 : vector<64x1xf32> to vector<64x64xf32>
    %197 = arith.subf %193, %196 : vector<64x64xf32>
    %198 = math.exp %197 : vector<64x64xf32>
    %cst_87 = arith.constant dense<0.000000e+00> : vector<64xf32>
    %199 = vector.multi_reduction <add>, %198, %cst_87 [1] : vector<64x64xf32> to vector<64xf32>
    %200 = vector.shape_cast %199 : vector<64xf32> to vector<64x1xf32>
    %201 = tpu.reciprocal %200 {approx = true} : vector<64x1xf32> -> vector<64x1xf32>
    %202 = vector.broadcast %201 : vector<64x1xf32> to vector<64x64xf32>
    %203 = arith.mulf %198, %202 : vector<64x64xf32>
    %204 = arith.addf %181, %203 : vector<64x64xf32>
    %205 = vector.extract_strided_slice %176 {offsets = [0, 0], sizes = [64, 128], strides = [1, 1]} : vector<64x256xf32> to vector<64x128xf32>
    %206 = arith.truncf %203 : vector<64x64xf32> to vector<64x64xbf16>
    %207 = arith.truncf %205 : vector<64x128xf32> to vector<64x128xbf16>
    %cst_88 = arith.constant dense<0.000000e+00> : vector<64x128xf32>
    %208 = tpu.matmul %206, %207, %cst_88 {dimension_numbers = #tpu.dot_dimension_numbers<[1], [0], [0], [1], [0, 0, 1, 1], [], []>} : vector<64x64xbf16>, vector<64x128xbf16>, vector<64x128xf32> -> vector<64x128xf32>
    %209 = vector.extract_strided_slice %180 {offsets = [0, 1], sizes = [64, 1], strides = [1, 1]} : vector<64x2xf32> to vector<64x1xf32>
    %210 = vector.extract_strided_slice %178 {offsets = [1, 0], sizes = [1, 64], strides = [1, 1]} : vector<2x64xf32> to vector<1x64xf32>
    %211 = vector.broadcast %209 : vector<64x1xf32> to vector<64x64xf32>
    %212 = vector.broadcast %210 : vector<1x64xf32> to vector<64x64xf32>
    %213 = arith.addf %211, %212 : vector<64x64xf32>
    %cst_89 = arith.constant 0.000000e+00 : f32
    %214 = vector.broadcast %cst_89 : f32 to vector<64x64xf32>
    %215 = arith.cmpf ogt, %213, %214 : vector<64x64xf32>
    %cst_90 = arith.constant 2.000000e-01 : f32
    %216 = vector.broadcast %cst_90 : f32 to vector<64x64xf32>
    %217 = arith.mulf %216, %213 : vector<64x64xf32>
    %218 = arith.select %215, %213, %217 : vector<64x64xi1>, vector<64x64xf32>
    %cst_91 = arith.constant -1.000000e+30 : f32
    %219 = vector.broadcast %cst_91 : f32 to vector<64x64xf32>
    %220 = arith.select %3, %218, %219 : vector<64x64xi1>, vector<64x64xf32>
    %cst_92 = arith.constant dense<0xFF800000> : vector<64xf32>
    %221 = vector.multi_reduction <maximumf>, %220, %cst_92 [1] : vector<64x64xf32> to vector<64xf32>
    %222 = vector.shape_cast %221 : vector<64xf32> to vector<64x1xf32>
    %223 = vector.broadcast %222 : vector<64x1xf32> to vector<64x64xf32>
    %224 = arith.subf %220, %223 : vector<64x64xf32>
    %225 = math.exp %224 : vector<64x64xf32>
    %cst_93 = arith.constant dense<0.000000e+00> : vector<64xf32>
    %226 = vector.multi_reduction <add>, %225, %cst_93 [1] : vector<64x64xf32> to vector<64xf32>
    %227 = vector.shape_cast %226 : vector<64xf32> to vector<64x1xf32>
    %228 = tpu.reciprocal %227 {approx = true} : vector<64x1xf32> -> vector<64x1xf32>
    %229 = vector.broadcast %228 : vector<64x1xf32> to vector<64x64xf32>
    %230 = arith.mulf %225, %229 : vector<64x64xf32>
    %231 = arith.addf %204, %230 : vector<64x64xf32>
    %232 = vector.extract_strided_slice %176 {offsets = [0, 128], sizes = [64, 128], strides = [1, 1]} : vector<64x256xf32> to vector<64x128xf32>
    %233 = arith.truncf %230 : vector<64x64xf32> to vector<64x64xbf16>
    %234 = arith.truncf %232 : vector<64x128xf32> to vector<64x128xbf16>
    %cst_94 = arith.constant dense<0.000000e+00> : vector<64x128xf32>
    %235 = tpu.matmul %233, %234, %cst_94 {dimension_numbers = #tpu.dot_dimension_numbers<[1], [0], [0], [1], [0, 0, 1, 1], [], []>} : vector<64x64xbf16>, vector<64x128xbf16>, vector<64x128xf32> -> vector<64x128xf32>
    %236 = arith.addf %208, %235 : vector<64x128xf32>
    %cst_95 = arith.constant 0.166666672 : f32
    %237 = vector.broadcast %cst_95 : f32 to vector<64x64xf32>
    %238 = arith.mulf %231, %237 : vector<64x64xf32>
    %239 = arith.addf %172, %238 : vector<64x64xf32>
    %cst_96 = arith.constant 5.000000e-01 : f32
    %240 = vector.broadcast %cst_96 : f32 to vector<64x128xf32>
    %241 = arith.mulf %236, %240 : vector<64x128xf32>
    %242 = tpu.iota {dimensions = array<i32: 1>} : vector<64x128xi32>
    %c4_i32 = arith.constant 4 : i32
    %243 = vector.broadcast %c4_i32 : i32 to vector<64x128xi32>
    %244 = arith.cmpi slt, %242, %243 : vector<64x128xi32>
    %cst_97 = arith.constant -1.000000e+30 : f32
    %245 = vector.broadcast %cst_97 : f32 to vector<64x128xf32>
    %246 = arith.select %244, %241, %245 : vector<64x128xi1>, vector<64x128xf32>
    %cst_98 = arith.constant dense<0xFF800000> : vector<64xf32>
    %247 = vector.multi_reduction <maximumf>, %246, %cst_98 [1] : vector<64x128xf32> to vector<64xf32>
    %248 = vector.shape_cast %247 : vector<64xf32> to vector<64x1xf32>
    %249 = vector.broadcast %248 : vector<64x1xf32> to vector<64x128xf32>
    %250 = arith.subf %246, %249 : vector<64x128xf32>
    %251 = math.exp %250 : vector<64x128xf32>
    %cst_99 = arith.constant dense<0.000000e+00> : vector<64xf32>
    %252 = vector.multi_reduction <add>, %251, %cst_99 [1] : vector<64x128xf32> to vector<64xf32>
    %253 = vector.shape_cast %252 : vector<64xf32> to vector<64x1xf32>
    %254 = tpu.reciprocal %253 : vector<64x1xf32> -> vector<64x1xf32>
    %255 = vector.broadcast %254 : vector<64x1xf32> to vector<64x128xf32>
    %256 = arith.mulf %251, %255 : vector<64x128xf32>
    %cst_100 = arith.constant dense<0.000000e+00> : vector<64x128xf32>
    %257 = tpu.matmul %239, %256, %cst_100 {dimension_numbers = #tpu.dot_dimension_numbers<[1], [0], [0], [1], [0, 0, 1, 1], [], []>} : vector<64x64xf32>, vector<64x128xf32>, vector<64x128xf32> -> vector<64x128xf32>
    %cst_101 = arith.constant -1.000000e+30 : f32
    %258 = vector.broadcast %cst_101 : f32 to vector<64x128xf32>
    %259 = arith.select %244, %257, %258 : vector<64x128xi1>, vector<64x128xf32>
    %cst_102 = arith.constant dense<0xFF800000> : vector<64xf32>
    %260 = vector.multi_reduction <maximumf>, %259, %cst_102 [1] : vector<64x128xf32> to vector<64xf32>
    %261 = vector.shape_cast %260 : vector<64xf32> to vector<64x1xf32>
    %262 = vector.broadcast %261 : vector<64x1xf32> to vector<64x128xf32>
    %263 = arith.subf %259, %262 : vector<64x128xf32>
    %264 = math.exp %263 : vector<64x128xf32>
    %cst_103 = arith.constant dense<0.000000e+00> : vector<64xf32>
    %265 = vector.multi_reduction <add>, %264, %cst_103 [1] : vector<64x128xf32> to vector<64xf32>
    %266 = vector.shape_cast %265 : vector<64xf32> to vector<64x1xf32>
    %267 = tpu.reciprocal %266 : vector<64x1xf32> -> vector<64x1xf32>
    %268 = vector.broadcast %267 : vector<64x1xf32> to vector<64x128xf32>
    %269 = arith.mulf %264, %268 : vector<64x128xf32>
    %cst_104 = arith.constant dense<0.000000e+00> : vector<64x128xf32>
    %270 = tpu.matmul %239, %269, %cst_104 {dimension_numbers = #tpu.dot_dimension_numbers<[1], [0], [0], [1], [0, 0, 1, 1], [], []>} : vector<64x64xf32>, vector<64x128xf32>, vector<64x128xf32> -> vector<64x128xf32>
    %cst_105 = arith.constant -1.000000e+30 : f32
    %271 = vector.broadcast %cst_105 : f32 to vector<64x128xf32>
    %272 = arith.select %244, %270, %271 : vector<64x128xi1>, vector<64x128xf32>
    %cst_106 = arith.constant dense<0xFF800000> : vector<64xf32>
    %273 = vector.multi_reduction <maximumf>, %272, %cst_106 [1] : vector<64x128xf32> to vector<64xf32>
    %274 = vector.shape_cast %273 : vector<64xf32> to vector<64x1xf32>
    %275 = vector.broadcast %274 : vector<64x1xf32> to vector<64x128xf32>
    %276 = arith.subf %272, %275 : vector<64x128xf32>
    %277 = math.exp %276 : vector<64x128xf32>
    %cst_107 = arith.constant dense<0.000000e+00> : vector<64xf32>
    %278 = vector.multi_reduction <add>, %277, %cst_107 [1] : vector<64x128xf32> to vector<64xf32>
    %279 = vector.shape_cast %278 : vector<64xf32> to vector<64x1xf32>
    %280 = tpu.reciprocal %279 : vector<64x1xf32> -> vector<64x1xf32>
    %281 = vector.broadcast %280 : vector<64x1xf32> to vector<64x128xf32>
    %282 = arith.mulf %277, %281 : vector<64x128xf32>
    %cst_108 = arith.constant dense<0.000000e+00> : vector<64x128xf32>
    %283 = tpu.matmul %239, %282, %cst_108 {dimension_numbers = #tpu.dot_dimension_numbers<[1], [0], [0], [1], [0, 0, 1, 1], [], []>} : vector<64x64xf32>, vector<64x128xf32>, vector<64x128xf32> -> vector<64x128xf32>
    %cst_109 = arith.constant -1.000000e+30 : f32
    %284 = vector.broadcast %cst_109 : f32 to vector<64x128xf32>
    %285 = arith.select %244, %283, %284 : vector<64x128xi1>, vector<64x128xf32>
    %cst_110 = arith.constant dense<0xFF800000> : vector<64xf32>
    %286 = vector.multi_reduction <maximumf>, %285, %cst_110 [1] : vector<64x128xf32> to vector<64xf32>
    %287 = vector.shape_cast %286 : vector<64xf32> to vector<64x1xf32>
    %288 = vector.broadcast %287 : vector<64x1xf32> to vector<64x128xf32>
    %289 = arith.subf %285, %288 : vector<64x128xf32>
    %290 = math.exp %289 : vector<64x128xf32>
    %cst_111 = arith.constant dense<0.000000e+00> : vector<64xf32>
    %291 = vector.multi_reduction <add>, %290, %cst_111 [1] : vector<64x128xf32> to vector<64xf32>
    %292 = vector.shape_cast %291 : vector<64xf32> to vector<64x1xf32>
    %293 = tpu.reciprocal %292 : vector<64x1xf32> -> vector<64x1xf32>
    %294 = vector.broadcast %293 : vector<64x1xf32> to vector<64x128xf32>
    %295 = arith.mulf %290, %294 : vector<64x128xf32>
    %cst_112 = arith.constant 1.000000e+00 : f32
    %296 = vector.broadcast %cst_112 : f32 to vector<64x128xf32>
    %297 = arith.select %244, %295, %296 : vector<64x128xi1>, vector<64x128xf32>
    %298 = math.log %297 : vector<64x128xf32>
    %c0_113 = arith.constant 0 : index
    %c0_114 = arith.constant 0 : index
    %299 = vector.load %arg11[%c0_113, %c0_114] : memref<64x128xf32, #tpu.memory_space<vmem>>, vector<64x128xf32>
    tpu.vector_store %arg11[%c0_113, %c0_114], %298 {strides = array<i32>} : memref<64x128xf32, #tpu.memory_space<vmem>>, vector<64x128xf32>,
    return
  }
}

</mosaic_0001>

<bundles_post_ra>
// kernel: tpu_custom_call.1
= control target key start
LH: loop header
LB: loop body
LE: loop exit
PB: predicated region body
PF: predicated region fallthrough
CT: control target
= control target key end

     0   :  { %vm86_vm0 = vcmask 130048   ;;  %s6060_s0 = inlined_call_operand.vmem [shape: f32[64,16], index: 0, kind: input, shape index: {}]   ;;  %s6061_s1 = inlined_call_operand.vmem [shape: s8[64,64], index: 1, kind: input, shape index: {}]   ;;  %s6062_s2 = inlined_call_operand.vmem [shape: bf16[16,16], index: 2, kind: input, shape index: {}]   ;;  %s6063_s3 = inlined_call_operand.vmem [shape: f32[2,16], index: 3, kind: input, shape index: {}]   ;;  %s6064_s4 = inlined_call_operand.vmem [shape: f32[2,16], index: 4, kind: input, shape index: {}]   ;;  %s6065_s5 = inlined_call_operand.vmem [shape: bf16[16,16], index: 5, kind: input, shape index: {}]   ;;  %s6066_s6 = inlined_call_operand.vmem [shape: f32[2,16], index: 6, kind: input, shape index: {}]   ;;  %s6067_s7 = inlined_call_operand.vmem [shape: f32[2,16], index: 7, kind: input, shape index: {}]   ;;  %s6068_s8 = inlined_call_operand.vmem [shape: bf16[16,256], index: 8, kind: input, shape index: {}]   ;;  %s6069_s9 = inlined_call_operand.vmem [shape: f32[2,256], index: 9, kind: input, shape index: {}]   ;;  %s6070_s10 = inlined_call_operand.vmem [shape: f32[2,256], index: 10, kind: input, shape index: {}]   ;;  %s6071_s11 = inlined_call_operand.hbm [shape: f32[64,128], index: 11, kind: output, shape index: {}]  }
   0x1   :  { %v4317_v0 = vld [vmem:[%s6062_s2] sm:$0xff]   ;;  %v67_v2 = vld [vmem:[%s6060_s0 + $0x8] sm:$0xff]  ;;  %v68_v3 = vld [vmem:[%s6060_s0 + $0x10] sm:$0xff] }
   0x2   :  { %v66_v1 = vld [vmem:[%s6060_s0] sm:$0xff]  ;;  %3906 = vmatprep.subr.bf16.mxu0 %v4317_v0  ;;  %v69_v5 = vld [vmem:[%s6060_s0 + $0x18] sm:$0xff]  ;;  %v71_v7 = vld [vmem:[%s6060_s0 + $0x28] sm:$0xff] }
   0x3   :  { %v74_v4 = vpack.c.bf16 %v67_v2, %v66_v1  ;;  %v70_v6 = vld [vmem:[%s6060_s0 + $0x20] sm:$0xff]  ;;  %3907 = vmatpush3.bf16.msra.mxu0 %v4317_v0  ;;  %v75_v8 = vpack.c.bf16 %v69_v5, %v68_v3 }
   0x4   :  { %v76_v9 = vpack.c.bf16 %v71_v7, %v70_v6 }
   0x5   :  { %3908 = vmatprep.mubr.msk.bf16.mxu0 %vm86_vm0, %v74_v4 }
   0x6   :  { %16 = vsyncpa [#allocation4], 0  ;;  %3909 = vmatmul.mubr.msk.bf16.vlgmr.msra.gmra.mrb[0].mxu0 %vm86_vm0, %v75_v8  ;;  %v72_v10 = vld [vmem:[%s6060_s0 + $0x30] sm:$0xff]  ;;  %v73_v11 = vld [vmem:[%s6060_s0 + $0x38] sm:$0xff]  ;;  %v4746_v14 = vmov 0.0|0.0   ;;  %vm4747_vm1 = vmmov 0   ;;  %v411_v42 = vlaneseq }
   0x7   :  { %3912 = vmatprep.mubr.msk.bf16.mxu0 %vm86_vm0, %v76_v9  ;;  %v77_v12 = vpack.c.bf16 %v73_v11, %v72_v10  ;;  %v262_v13 = vld [vmem:[%s6064_s4] sm:$0x3]  ;;  %4172 = vmatprep.subr.bf16.mxu1 %v4746_v14  ;;  %v4748_v15 = vmov 0.0   ;;  %v4749_v16 = vmov 1   ;;  %v4750_v17 = vmov 0   ;;  %vm4861_vm2 = vmpackc.low %vm86_vm0, %vm86_vm0  ;;  %s4752_s22 = smov 8  }
   0x8   :  { %3935 = vmatprep.subr.msk.mxu0 %vm86_vm0, %v262_v13  ;;  %3932 = vmatprep.mubr.msk.f32.mxu1 %vm4747_vm1, %v4748_v15  ;;  %v164_v31 = vld [vmem:[%s6063_s3] sm:$0x3]  ;;  %v412_v43 = vshrl.u32 %v411_v42, 7  ;;  %vm455_vm5 = vcmask 523264  }
   0x9   :  { %4285 = vset.pattern.permute.xlu0 %v4749_v16  ;;  %4286 = vset.pattern.permute.xlu1 %v4750_v17  ;;  %v40_v44 = vld [vmem:[%s6061_s1] sm:$0xff] }
   0xa   :  { %v4924_v45 = vsub.s32 1, %v412_v43  ;;  %v43_v46 = vunpack.c.1.s8 %v40_v44  ;;  %v42_v49 = vunpack.c.0.s8 %v40_v44  ;;  %v45_v52 = vunpack.c.3.s8 %v40_v44 }
   0xb   :  { %v44_v58 = vunpack.c.2.s8 %v40_v44  ;;  %v4951_v7 = vsub.s32 0, %v412_v43 }
   0xc   :  { %3936 = vmatpush3.xpose.msk.msra.mxu0 %vm86_vm0, %v262_v13  ;;  %v4929_v48 = vcvt.s32.f32 %v43_v46  ;;  %v4935_v55 = vcvt.s32.f32 %v42_v49  ;;  %v4937_v57 = vcvt.s32.f32 %v45_v52  ;;  %v4967_v13 = vld [vmem:[%s6061_s1 + $0x8] sm:$0xff]  ;;  %s4751_s1 = smov 120  }
   0xd   :  { %v4949_v3 = vcvt.s32.f32 %v44_v58  ;;  %v48_v49 = vunpack.c.2.s8 %v4967_v13 }
   0xe   :  { %3913 = vmatmul.mubr.msk.bf16.gmra.mrb[4].mxu0 %vm86_vm0, %v77_v12  ;;  %vm59_vm3 = vcmp.gt.f32.partialorder %v4929_v48, 0.0  ;;  %vm58_vm6 = vcmp.gt.f32.partialorder %v4935_v55, 0.0  ;;  %vm61_vm8 = vcmp.gt.f32.partialorder %v4937_v57, 0.0 }
   0xf   :  { %vm60_vm10 = vcmp.gt.f32.partialorder %v4949_v3, 0.0 }
  0xd9   :  { %v3910_v18 = vpop.f32.mrb[0].mxu0 }
  0xda   :  { %v133_v19 = vpop.f32.mrb[1].mxu0 }
  0xdb   :  { %v3911_v20 = vpop.f32.mrb[2].mxu0  ;;  %3937 = vmatprep.mubr.msk.f32.mxu0 %vm86_vm0, %v133_v19 }
  0xdc   :  { %v4857_v21 = vpack.c.bf16 %v3911_v20, %v3910_v18  ;;  %v136_v22 = vpop.f32.mrb[3].mxu0 }
  0xdd   :  { %v4865_v24 = vpack.c.bf16 %v136_v22, %v133_v19  ;;  %3938 = vmatmul.mubr.msk.f32.vlgmr.msra.gmra.mrb[8].mxu0 %vm86_vm0, %v136_v22 }
  0xde   :  { %3940 = vmatprep.mubr.msk.f32.mxu0 %vm86_vm0, %v3910_v18 }
  0xdf   :  { %4175 = vmatpush3.bf16.xpose.msk.msra.mxu1 %vm4861_vm2, %v4865_v24  ;;  %3949 = vmatprep.subr.bf16.mxu0 %v4865_v24 }
  0xe0   :  { %3950 = vmatpush3.bf16.msra.mxu0 %v4865_v24  ;;  %4176 = vmatprep.subr.bf16.mxu1 %v4746_v14 }
  0xe1   :  { %3941 = vmatmul.mubr.msk.f32.gmra.mrb[10].mxu0 %vm86_vm0, %v3911_v20  ;;  %3951 = vmatprep.subr.bf16.mxu0 %v4857_v21  ;;  %v3914_v25 = vpop.f32.mrb[4].mxu0 }
  0xe2   :  { %v149_v26 = vpop.f32.mrb[5].mxu0 }
  0xe3   :  { %v3915_v27 = vpop.f32.mrb[6].mxu0  ;;  %3943 = vmatprep.mubr.msk.f32.mxu0 %vm86_vm0, %v149_v26 }
  0xe4   :  { %3952 = vmatpush3.bf16.msra.mxu0 %v4857_v21  ;;  %v4879_v28 = vpack.c.bf16 %v3915_v27, %v3914_v25  ;;  %v152_v29 = vpop.f32.mrb[7].mxu0 }
  0xe5   :  { %v4881_v30 = vpack.c.bf16 %v152_v29, %v149_v26  ;;  %3944 = vmatmul.mubr.msk.f32.gmra.mrb[12].mxu0 %vm86_vm0, %v152_v29 }
  0xe6   :  { %3946 = vmatprep.mubr.msk.f32.mxu0 %vm86_vm0, %v3914_v25 }
  0xe7   :  { %4179 = vmatpush3.bf16.xpose.msk.msra.mxu1 %vm4861_vm2, %v4857_v21  ;;  %3953 = vmatprep.subr.bf16.mxu0 %v4881_v30 }
  0xe8   :  { %4180 = vmatprep.subr.bf16.mxu1 %v4746_v14  ;;  %3954 = vmatpush3.bf16.msra.mxu0 %v4881_v30 }
  0xe9   :  { %3947 = vmatmul.mubr.msk.f32.gmra.mrb[14].mxu0 %vm86_vm0, %v3915_v27  ;;  %3955 = vmatprep.subr.bf16.mxu0 %v4879_v28  ;;  %v47_v27 = vunpack.c.1.s8 %v4967_v13 }
  0xec   :  { %3956 = vmatpush3.bf16.msra.mxu0 %v4879_v28 }
  0xef   :  { %4183 = vmatpush3.bf16.xpose.msk.msra.mxu1 %vm4861_vm2, %v4881_v30 }
  0xf0   :  { %4184 = vmatprep.subr.bf16.mxu1 %v4746_v14 }
  0xf7   :  { %4187 = vmatpush3.bf16.xpose.msk.msra.mxu1 %vm4861_vm2, %v4879_v28 }
  0xfe   :  { %3933 = vmatmul.mubr.msk.f32.vlgmr.msra.gmra.mrb[0].mxu1 %vm86_vm0, %v164_v31 }
 0x1b0   :  { %v3939_v32 = vpop.f32.mrb[8].mxu0 }
 0x1b1   :  { %378 = vperm.xlu1 %4286, %v3939_v32   ;;  %699 = vperm.xlu0 %4285, %v3939_v32   ;;  %v332_v33 = vpop.f32.mrb[9].mxu0 }
 0x1b4   :  { %v3942_v34 = vpop.f32.mrb[10].mxu0 }
 0x1b5   :  { %4288 = vset.pattern.permute.xlu1 %v4749_v16  ;;  %695 = vperm.xlu0 %4285, %v332_v33   ;;  %v342_v35 = vpop.f32.mrb[11].mxu0 }
 0x1b6   :  { %707 = vperm.xlu1 %4288, %v3942_v34  }
 0x1b8   :  { %v3945_v36 = vpop.f32.mrb[12].mxu0 }
 0x1b9   :  { %4287 = vset.pattern.permute.xlu0 %v4750_v17  ;;  %v352_v37 = vpop.f32.mrb[13].mxu0 }
 0x1ba   :  { %373 = vperm.xlu0 %4287, %v332_v33   ;;  %703 = vperm.xlu1 %4288, %v342_v35  }
 0x1bc   :  { %v4907_v38 = vpop.f32.mrb[14].mxu0 }
 0x1bd   :  { %v362_v39 = vpop.f32.mrb[15].mxu0 }
 0x1be   :  { %388 = vperm.xlu0 %4287, %v3942_v34   ;;  %4289 = vset.pattern.permute.xlu1 %v4750_v17  ;;  %v4985_v34 = vcvt.s32.f32 %v47_v27 }
 0x1bf   :  { %383 = vperm.xlu1 %4289, %v342_v35  }
 0x1c0   :  { %vm63_vm13 = vcmp.gt.f32.partialorder %v4985_v34, 0.0 }
 0x1c2   :  { %4292 = vset.pattern.permute.xlu0 %v4749_v16 }
 0x1c3   :  { %4290 = vset.pattern.permute.xlu1 %v4749_v16  ;;  %711 = vperm.xlu0 %4292, %v352_v37  }
 0x1c4   :  { %715 = vperm.xlu1 %4290, %v3945_v36  }
 0x1c7   :  { %4293 = vset.pattern.permute.xlu0 %v4750_v17 }
 0x1c8   :  { %4291 = vset.pattern.permute.xlu1 %v4750_v17  ;;  %393 = vperm.xlu0 %4293, %v352_v37  }
 0x1c9   :  { %398 = vperm.xlu1 %4291, %v3945_v36  }
 0x1cc   :  { %4295 = vset.pattern.permute.xlu0 %v4749_v16 }
 0x1cd   :  { %4294 = vset.pattern.permute.xlu1 %v4749_v16  ;;  %719 = vperm.xlu0 %4295, %v362_v39  }
 0x1ce   :  { %723 = vperm.xlu1 %4294, %v4907_v38  }
 0x1d1   :  { %4296 = vset.pattern.permute.xlu0 %v4750_v17  ;;  %v258_v40 = vpop.f32.mrb[0].mxu1 }
 0x1d2   :  { %403 = vperm.xlu0 %4296, %v362_v39   ;;  %v3934_v41 = vpop.f32.mrb[1].mxu1  ;;  %4297 = vset.pattern.permute.xlu1 %v4750_v17  ;;  %v4927_v47 = vrot.slane %v258_v40, %v4924_v45  ;;  %v4975_v22 = vrot.slane %v258_v40, %v4951_v7 }
 0x1d6   :  { %4298 = vset.pattern.permute.xlu0 %v4749_v16 }
 0x230   :  { %v4931_v50 = vpop.permute.xlu1 %378  ;;  %v700_v51 = vpop.permute.xlu0 %699 }
 0x231   :  { %v731_v53 = vadd.f32 %v4927_v47, %v700_v51 }
 0x233   :  { %v747_v54 = vmul.f32 0.2, %v731_v53  ;;  %vm739_vm4 = vcmp.gt.f32.partialorder %v731_v53, 0.0 }
 0x234   :  { %v696_v56 = vpop.permute.xlu0 %695 }
 0x235   :  { %v730_v59 = vadd.f32 %v4927_v47, %v696_v56  ;;  %v708_v60 = vpop.permute.xlu1 %707  ;;  %v755_v61 = vsel %vm739_vm4, %v731_v53, %v747_v54 }
 0x236   :  { %v733_v62 = vadd.f32 %v4927_v47, %v708_v60  ;;  %v4943_v63 = vsel %vm59_vm3, %v755_v61, -1e+30 }
 0x237   :  { %v746_v0 = vmul.f32 0.2, %v730_v59  ;;  %v773_v1 = vsel %vm455_vm5, %v4943_v63, -inf  ;;  %vm738_vm7 = vcmp.gt.f32.partialorder %v730_v59, 0.0 }
 0x238   :  { %v749_v2 = vmul.f32 0.2, %v733_v62  ;;  %774 = vmax.xlane.f32.xlu0 %v773_v1  ;;  %vm741_vm9 = vcmp.gt.f32.partialorder %v733_v62, 0.0 }
 0x239   :  { %v374_v4 = vpop.permute.xlu0 %373  ;;  %v704_v5 = vpop.permute.xlu1 %703  ;;  %v754_v6 = vsel %vm738_vm7, %v730_v59, %v746_v0  ;;  %v5002_v59 = vcvt.s32.f32 %v48_v49 }
 0x23a   :  { %v732_v8 = vadd.f32 %v4927_v47, %v704_v5  ;;  %v4956_v9 = vsel %vm58_vm6, %v754_v6, -1e+30  ;;  %v757_v10 = vsel %vm741_vm9, %v733_v62, %v749_v2  ;;  %v415_v31 = vadd.f32 %v4975_v22, %v374_v4 }
 0x23b   :  { %v770_v11 = vsel %vm455_vm5, %v4956_v9, -inf  ;;  %v4962_v12 = vsel %vm61_vm8, %v757_v10, -1e+30  ;;  %v46_v62 = vunpack.c.0.s8 %v4967_v13  ;;  %vm64_vm7 = vcmp.gt.f32.partialorder %v5002_v59, 0.0 }
 0x23c   :  { %v748_v18 = vmul.f32 0.2, %v732_v8  ;;  %771 = vmax.xlane.f32.xlu1 %v770_v11  ;;  %v779_v19 = vsel %vm455_vm5, %v4962_v12, -inf  ;;  %vm740_vm11 = vcmp.gt.f32.partialorder %v732_v8, 0.0  ;;  %v431_v36 = vmul.f32 0.2, %v415_v31 }
 0x23d   :  { %v4972_v20 = vpop.permute.xlu0 %388  ;;  %780 = vmax.xlane.f32.xlu0 %v779_v19  ;;  %vm423_vm12 = vcmp.gt.f32.partialorder %v415_v31, 0.0  ;;  %v5016_v6 = vcvt.s32.f32 %v46_v62 }
 0x23e   :  { %v384_v25 = vpop.permute.xlu1 %383  ;;  %v756_v26 = vsel %vm740_vm11, %v732_v8, %v748_v18  ;;  %v439_v46 = vsel %vm423_vm12, %v415_v31, %v431_v36 }
 0x23f   :  { %v4980_v29 = vsel %vm60_vm10, %v756_v26, -1e+30  ;;  %v417_v37 = vadd.f32 %v4975_v22, %v384_v25  ;;  %v4999_v53 = vsel %vm58_vm6, %v439_v46, -1e+30  ;;  %vm62_vm11 = vcmp.gt.f32.partialorder %v5016_v6, 0.0 }
 0x240   :  { %v776_v32 = vsel %vm455_vm5, %v4980_v29, -inf  ;;  %v456_v61 = vsel %vm455_vm5, %v4999_v53, -inf }
 0x241   :  { %777 = vmax.xlane.f32.xlu1 %v776_v32  ;;  %v433_v43 = vmul.f32 0.2, %v417_v37  ;;  %vm425_vm15 = vcmp.gt.f32.partialorder %v417_v37, 0.0  ;;  %v49_v32 = vunpack.c.3.s8 %v4967_v13  ;;  %v418_v13 = vadd.f32 %v4975_v22, %v4972_v20 }
 0x242   :  { %v712_v33 = vpop.permute.xlu0 %711 }
 0x243   :  { %v716_v35 = vpop.permute.xlu1 %715  ;;  %v441_v58 = vsel %vm425_vm15, %v417_v37, %v433_v43  ;;  %v734_v25 = vadd.f32 %v4927_v47, %v712_v33 }
 0x244   :  { %v735_v39 = vadd.f32 %v4927_v47, %v716_v35  ;;  %v5010_v1 = vsel %vm60_vm10, %v441_v58, -1e+30  ;;  %v416_v35 = vadd.f32 %v4975_v22, %v4931_v50 }
 0x245   :  { %v462_v5 = vsel %vm455_vm5, %v5010_v1, -inf  ;;  %v750_v27 = vmul.f32 0.2, %v734_v25  ;;  %vm742_vm12 = vcmp.gt.f32.partialorder %v734_v25, 0.0 }
 0x246   :  { %v751_v40 = vmul.f32 0.2, %v735_v39  ;;  %vm743_vm14 = vcmp.gt.f32.partialorder %v735_v39, 0.0 }
 0x247   :  { %v394_v41 = vpop.permute.xlu0 %393  ;;  %v758_v37 = vsel %vm742_vm12, %v734_v25, %v750_v27 }
 0x248   :  { %v759_v44 = vsel %vm743_vm14, %v735_v39, %v751_v40  ;;  %v419_v54 = vadd.f32 %v4975_v22, %v394_v41  ;;  %v399_v19 = vpop.permute.xlu1 %398  ;;  %v5036_v39 = vcvt.s32.f32 %v49_v32  ;;  %v5042_v33 = vsel %vm62_vm11, %v758_v37, -1e+30 }
 0x249   :  { %v4993_v51 = vsel %vm63_vm13, %v759_v44, -1e+30  ;;  %v782_v40 = vsel %vm455_vm5, %v5042_v33, -inf  ;;  %v420_v43 = vadd.f32 %v4975_v22, %v399_v19 }
 0x24a   :  { %v785_v52 = vsel %vm455_vm5, %v4993_v51, -inf  ;;  %v435_v2 = vmul.f32 0.2, %v419_v54  ;;  %vm427_vm9 = vcmp.gt.f32.partialorder %v419_v54, 0.0  ;;  %vm6072_vm15 = vcmp.gt.f32.partialorder %v5036_v39, 0.0 }
 0x24b   :  { %786 = vmax.xlane.f32.xlu0 %v785_v52  ;;  %v436_v49 = vmul.f32 0.2, %v420_v43  ;;  %vm428_vm12 = vcmp.gt.f32.partialorder %v420_v43, 0.0 }
 0x24c   :  { %v720_v56 = vpop.permute.xlu0 %719  ;;  %v443_v10 = vsel %vm427_vm9, %v419_v54, %v435_v2  ;;  %vm426_vm9 = vcmp.gt.f32.partialorder %v418_v13, 0.0 }
 0x24d   :  { %v736_v60 = vadd.f32 %v4927_v47, %v720_v56  ;;  %v724_v26 = vpop.permute.xlu1 %723 }
 0x24e   :  { %v737_v31 = vadd.f32 %v4927_v47, %v724_v26  ;;  %v432_v47 = vmul.f32 0.2, %v416_v35 }
 0x24f   :  { %v752_v0 = vmul.f32 0.2, %v736_v60  ;;  %457 = vmax.xlane.f32.xlu0 %v456_v61  ;;  %vm744_vm4 = vcmp.gt.f32.partialorder %v736_v60, 0.0 }
 0x250   :  { %v753_v36 = vmul.f32 0.2, %v737_v31  ;;  %vm745_vm14 = vcmp.gt.f32.partialorder %v737_v31, 0.0 }
 0x251   :  { %v760_v4 = vsel %vm744_vm4, %v736_v60, %v752_v0  ;;  %vm424_vm4 = vcmp.gt.f32.partialorder %v416_v35, 0.0  ;;  %v404_v56 = vpop.permute.xlu0 %403  ;;  %v444_v60 = vsel %vm428_vm12, %v420_v43, %v436_v49 }
 0x252   :  { %408 = vperm.xlu1 %4297, %v4907_v38   ;;  %v5020_v8 = vsel %vm64_vm7, %v760_v4, -1e+30  ;;  %v5027_v38 = vsel %vm62_vm11, %v443_v10, -1e+30  ;;  %v761_v50 = vsel %vm745_vm14, %v737_v31, %v753_v36  ;;  %v440_v44 = vsel %vm424_vm4, %v416_v35, %v432_v47 }
 0x253   :  { %463 = vmax.xlane.f32.xlu0 %v462_v5  ;;  %v788_v11 = vsel %vm455_vm5, %v5020_v8, -inf  ;;  %v468_v18 = vsel %vm455_vm5, %v5027_v38, -inf  ;;  %v5051_v41 = vsel %vm6072_vm15, %v761_v50, -1e+30  ;;  %v5058_v46 = vsel %vm59_vm3, %v440_v44, -1e+30 }
 0x254   :  { %v791_v20 = vsel %vm455_vm5, %v5051_v41, -inf  ;;  %v459_v54 = vsel %vm455_vm5, %v5058_v46, -inf  ;;  %v421_v61 = vadd.f32 %v4975_v22, %v404_v56  ;;  %v5071_v0 = vsel %vm63_vm13, %v444_v60, -1e+30 }
 0x255   :  { %v471_v4 = vsel %vm455_vm5, %v5071_v0, -inf }
 0x256   :  { %v437_v2 = vmul.f32 0.2, %v421_v61  ;;  %vm429_vm14 = vcmp.gt.f32.partialorder %v421_v61, 0.0 }
 0x257   :  { %789 = vmax.xlane.f32.xlu0 %v788_v11 }
 0x258   :  { %v445_v5 = vsel %vm429_vm14, %v421_v61, %v437_v2 }
 0x259   :  { %v5077_v10 = vsel %vm64_vm7, %v445_v5, -1e+30 }
 0x25a   :  { %v474_v11 = vsel %vm455_vm5, %v5077_v10, -inf }
 0x25b   :  { %469 = vmax.xlane.f32.xlu0 %v468_v18 }
 0x271   :  { %874 = vrot.lane.b32.xlu0 %v4865_v24, %s4751_s1  ;;  %v434_v24 = vmul.f32 0.2, %v418_v13 }
 0x273   :  { %v442_v52 = vsel %vm426_vm9, %v418_v13, %v434_v24 }
 0x274   :  { %v5064_v58 = vsel %vm61_vm8, %v442_v52, -1e+30 }
 0x275   :  { %v465_v62 = vsel %vm455_vm5, %v5064_v58, -inf }
 0x276   :  { %783 = vmax.xlane.f32.xlu1 %v782_v40 }
 0x27a   :  { %792 = vmax.xlane.f32.xlu1 %v791_v20 }
 0x27e   :  { %460 = vmax.xlane.f32.xlu1 %v459_v54 }
 0x282   :  { %466 = vmax.xlane.f32.xlu1 %v465_v62 }
 0x286   :  { %472 = vmax.xlane.f32.xlu1 %v471_v4 }
 0x290   :  { %475 = vmax.xlane.f32.xlu0 %v474_v11 }
 0x2c5   :  { %v775_v18 = vpop.xlane.xlu0 %774 }
 0x2c6   :  { %v795_v19 = vsub.f32 %v4943_v63, %v775_v18 }
 0x2c8   :  { %v804_v31 = vmul.f32 1.442695, %v795_v19 }
 0x2c9   :  { %v772_v25 = vpop.xlane.xlu1 %771 }
 0x2ca   :  { %v794_v26 = vsub.f32 %v4956_v9, %v772_v25  ;;  %v781_v27 = vpop.xlane.xlu0 %780 }
 0x2cb   :  { %v797_v35 = vsub.f32 %v4962_v12, %v781_v27 }
 0x2cc   :  { %v802_v32 = vmul.f32 1.442695, %v794_v26 }
 0x2cd   :  { %v808_v47 = vmul.f32 1.442695, %v797_v35 }
 0x2ce   :  { %4322 = vpow2.f32 %v802_v32  ;;  %v778_v36 = vpop.xlane.xlu1 %777 }
 0x2cf   :  { %v796_v37 = vsub.f32 %v4980_v29, %v778_v36  ;;  %4324 = vpow2.f32 %v804_v31 }
 0x2d1   :  { %v806_v13 = vmul.f32 1.442695, %v796_v37 }
 0x2d2   :  { %v409_v50 = vpop.permute.xlu1 %408 }
 0x2d3   :  { %4326 = vpow2.f32 %v806_v13  ;;  %v422_v40 = vadd.f32 %v4975_v22, %v409_v50 }
 0x2d4   :  { %4328 = vpow2.f32 %v808_v47 }
 0x2d5   :  { %v438_v63 = vmul.f32 0.2, %v422_v40  ;;  %vm430_vm4 = vcmp.gt.f32.partialorder %v422_v40, 0.0 }
 0x2d7   :  { %v446_v9 = vsel %vm430_vm4, %v422_v40, %v438_v63 }
 0x2d8   :  { %v5086_v24 = vpop.eup %4322  ;;  %v787_v43 = vpop.xlane.xlu0 %786  ;;  %v5090_v12 = vsel %vm6072_vm15, %v446_v9, -1e+30  ;;  %vm1043_vm15 = vcmask 130112  }
 0x2d9   :  { %v799_v29 = vsub.f32 %v4993_v51, %v787_v43  ;;  %v477_v44 = vsel %vm455_vm5, %v5090_v12, -inf  ;;  %v818_v20 = vsel %vm455_vm5, %v5086_v24, 0.0  ;;  %v5097_v22 = vpop.eup %4324 }
 0x2da   :  { %478 = vmax.xlane.f32.xlu1 %v477_v44  ;;  %819 = vadd.xlane.f32.xlu0 %v818_v20  ;;  %v821_v56 = vsel %vm455_vm5, %v5097_v22, 0.0 }
 0x2db   :  { %v812_v49 = vmul.f32 1.442695, %v799_v29 }
 0x2dc   :  { %v458_v52 = vpop.xlane.xlu0 %457 }
 0x2dd   :  { %v5099_v54 = vpop.eup %4326  ;;  %4330 = vpow2.f32 %v812_v49  ;;  %v480_v19 = vsub.f32 %v4999_v53, %v458_v52 }
 0x2de   :  { %v5103_v60 = vpop.eup %4328  ;;  %822 = vadd.xlane.f32.xlu1 %v821_v56  ;;  %v824_v51 = vsel %vm455_vm5, %v5099_v54, 0.0 }
 0x2df   :  { %825 = vadd.xlane.f32.xlu0 %v824_v51  ;;  %v827_v62 = vsel %vm455_vm5, %v5103_v60, 0.0  ;;  %v488_v31 = vmul.f32 1.442695, %v480_v19 }
 0x2e0   :  { %v464_v61 = vpop.xlane.xlu0 %463 }
 0x2e1   :  { %v482_v27 = vsub.f32 %v5010_v1, %v464_v61 }
 0x2e2   :  { %828 = vadd.xlane.f32.xlu1 %v827_v62 }
 0x2e3   :  { %v492_v47 = vmul.f32 1.442695, %v482_v27 }
 0x2e4   :  { %v790_v2 = vpop.xlane.xlu0 %789 }
 0x2e5   :  { %v800_v32 = vsub.f32 %v5020_v8, %v790_v2 }
 0x2e7   :  { %v5109_v4 = vpop.eup %4330 }
 0x2e8   :  { %v470_v5 = vpop.xlane.xlu0 %469  ;;  %v833_v11 = vsel %vm455_vm5, %v5109_v4, 0.0 }
 0x2e9   :  { %834 = vadd.xlane.f32.xlu1 %v833_v11  ;;  %v484_v53 = vsub.f32 %v5027_v38, %v470_v5 }
 0x2eb   :  { %v496_v8 = vmul.f32 1.442695, %v484_v53 }
 0x2ec   :  { %v875_v18 = vpop.permute.xlu0 %874 }
 0x2ed   :  { %3965 = vmatprep.subr.bf16.mxu1 %v875_v18 }
 0x2ee   :  { %3966 = vmatpush3.bf16.msra.mxu1 %v875_v18 }
 0x2f5   :  { %878 = vrot.lane.b32.xlu0 %v4881_v30, %s4751_s1  ;;  %v814_v30 = vmul.f32 1.442695, %v800_v32 }
 0x2f9   :  { %880 = vrot.lane.b32.xlu0 %v4879_v28, %s4751_s1 }
 0x303   :  { %v784_v25 = vpop.xlane.xlu1 %783 }
 0x304   :  { %v798_v26 = vsub.f32 %v5042_v33, %v784_v25 }
 0x306   :  { %v810_v35 = vmul.f32 1.442695, %v798_v26 }
 0x307   :  { %v793_v36 = vpop.xlane.xlu1 %792 }
 0x308   :  { %4332 = vpow2.f32 %v810_v35  ;;  %v801_v37 = vsub.f32 %v5051_v41, %v793_v36 }
 0x309   :  { %4334 = vpow2.f32 %v488_v31 }
 0x30a   :  { %v816_v13 = vmul.f32 1.442695, %v801_v37 }
 0x30b   :  { %v461_v28 = vpop.xlane.xlu1 %460 }
 0x30c   :  { %4336 = vpow2.f32 %v816_v13  ;;  %v481_v11 = vsub.f32 %v5058_v46, %v461_v28 }
 0x30d   :  { %4338 = vpow2.f32 %v492_v47 }
 0x30e   :  { %4340 = vpow2.f32 %v814_v30  ;;  %v490_v19 = vmul.f32 1.442695, %v481_v11 }
 0x30f   :  { %v467_v33 = vpop.xlane.xlu1 %466 }
 0x310   :  { %v483_v1 = vsub.f32 %v5064_v58, %v467_v33 }
 0x312   :  { %v5124_v50 = vpop.eup %4332  ;;  %v494_v40 = vmul.f32 1.442695, %v483_v1 }
 0x313   :  { %v830_v41 = vsel %vm455_vm5, %v5124_v50, 0.0  ;;  %v5128_v63 = vpop.eup %4334  ;;  %v473_v18 = vpop.xlane.xlu1 %472 }
 0x314   :  { %4342 = vpow2.f32 %v494_v40  ;;  %831 = vadd.xlane.f32.xlu1 %v830_v41  ;;  %v504_v58 = vsel %vm455_vm5, %v5128_v63, 0.0  ;;  %v485_v25 = vsub.f32 %v5071_v0, %v473_v18 }
 0x315   :  { %4344 = vpow2.f32 %v496_v8 }
 0x316   :  { %v5130_v9 = vpop.eup %4336  ;;  %v498_v26 = vmul.f32 1.442695, %v485_v25 }
 0x317   :  { %v5132_v43 = vpop.eup %4338  ;;  %v839_v38 = vsel %vm455_vm5, %v5130_v9, 0.0 }
 0x318   :  { %v5138_v29 = vpop.eup %4340  ;;  %840 = vadd.xlane.f32.xlu1 %v839_v38  ;;  %505 = vadd.xlane.f32.xlu0 %v504_v58  ;;  %v510_v44 = vsel %vm455_vm5, %v5132_v43, 0.0 }
 0x319   :  { %v836_v20 = vsel %vm455_vm5, %v5138_v29, 0.0 }
 0x31c   :  { %511 = vadd.xlane.f32.xlu0 %v510_v44  ;;  %837 = vadd.xlane.f32.xlu1 %v836_v20 }
 0x31d   :  { %v476_v49 = vpop.xlane.xlu0 %475 }
 0x31e   :  { %v5144_v52 = vpop.eup %4342  ;;  %v486_v56 = vsub.f32 %v5077_v10, %v476_v49 }
 0x31f   :  { %v513_v51 = vsel %vm455_vm5, %v5144_v52, 0.0  ;;  %v5149_v61 = vpop.eup %4344 }
 0x320   :  { %v500_v62 = vmul.f32 1.442695, %v486_v56  ;;  %514 = vadd.xlane.f32.xlu0 %v513_v51  ;;  %v516_v2 = vsel %vm455_vm5, %v5149_v61, 0.0 }
 0x322   :  { %4346 = vpow2.f32 %v500_v62 }
 0x323   :  { %4348 = vpow2.f32 %v490_v19 }
 0x324   :  { %517 = vadd.xlane.f32.xlu0 %v516_v2  ;;  %4350 = vpow2.f32 %v498_v26 }
 0x32c   :  { %v5153_v5 = vpop.eup %4346 }
 0x32d   :  { %876 = vrot.lane.b32.xlu1 %v4857_v21, %s4751_s1  ;;  %v522_v10 = vsel %vm455_vm5, %v5153_v5, 0.0  ;;  %v5161_v27 = vpop.eup %4348 }
 0x32e   :  { %523 = vadd.xlane.f32.xlu0 %v522_v10  ;;  %v507_v31 = vsel %vm455_vm5, %v5161_v27, 0.0  ;;  %v5165_v32 = vpop.eup %4350 }
 0x32f   :  { %v519_v21 = vsel %vm455_vm5, %v5165_v32, 0.0 }
 0x351   :  { %508 = vadd.xlane.f32.xlu1 %v507_v31 }
 0x355   :  { %520 = vadd.xlane.f32.xlu1 %v519_v21 }
 0x367   :  { %v479_v46 = vpop.xlane.xlu1 %478  ;;  %v820_v36 = vpop.xlane.xlu0 %819 }
 0x368   :  { %v487_v35 = vsub.f32 %v5090_v12, %v479_v46  ;;  %4352 = vrcp.f32 %v820_v36 }
 0x36a   :  { %v502_v0 = vmul.f32 1.442695, %v487_v35 }
 0x36b   :  { %v823_v37 = vpop.xlane.xlu1 %822 }
 0x36c   :  { %4354 = vpow2.f32 %v502_v0  ;;  %v826_v1 = vpop.xlane.xlu0 %825 }
 0x36d   :  { %4356 = vrcp.f32 %v823_v37 }
 0x36f   :  { %v829_v8 = vpop.xlane.xlu1 %828 }
 0x370   :  { %v879_v40 = vpop.permute.xlu0 %878  ;;  %4358 = vrcp.f32 %v829_v8 }
 0x372   :  { %v4353_v47 = vpop.eup %4352 }
 0x373   :  { %v850_v53 = vmul.f32 %v4353_v47, %v5086_v24 }
 0x374   :  { %v881_v38 = vpop.permute.xlu0 %880 }
 0x376   :  { %v5170_v30 = vpop.eup %4354  ;;  %v835_v41 = vpop.xlane.xlu1 %834 }
 0x377   :  { %v4357_v13 = vpop.eup %4356  ;;  %v525_v28 = vsel %vm455_vm5, %v5170_v30, 0.0 }
 0x378   :  { %526 = vadd.xlane.f32.xlu1 %v525_v28  ;;  %v5176_v33 = vmul.f32 %v4357_v13, %v5097_v22 }
 0x37a   :  { %v866_v12 = vpack.c.bf16 %v5176_v33, %v850_v53  ;;  %v4359_v51 = vpop.eup %4358 }
 0x37b   :  { %v853_v25 = vmul.f32 %v4359_v51, %v5103_v60 }
 0x37c   :  { %3973 = vmatprep.mubr.msk.bf16.mxu1 %vm455_vm5, %v866_v12 }
 0x3a1   :  { %v832_v58 = vpop.xlane.xlu1 %831 }
 0x3a5   :  { %v841_v44 = vpop.xlane.xlu1 %840  ;;  %v506_v20 = vpop.xlane.xlu0 %505 }
 0x3a6   :  { %4360 = vrcp.f32 %v506_v20 }
 0x3a7   :  { %4362 = vrcp.f32 %v832_v58 }
 0x3a8   :  { %4364 = vrcp.f32 %v826_v1 }
 0x3a9   :  { %v838_v24 = vpop.xlane.xlu1 %837  ;;  %v512_v49 = vpop.xlane.xlu0 %511  ;;  %4366 = vrcp.f32 %v835_v41 }
 0x3aa   :  { %4368 = vrcp.f32 %v512_v49 }
 0x3ad   :  { %v877_v22 = vpop.permute.xlu1 %876  ;;  %v515_v56 = vpop.xlane.xlu0 %514 }
 0x3ae   :  { %4370 = vrcp.f32 %v515_v56  ;;  %3967 = vmatprep.subr.bf16.mxu1 %v877_v22 }
 0x3af   :  { %4372 = vrcp.f32 %v838_v24  ;;  %3968 = vmatpush3.bf16.msra.mxu1 %v877_v22 }
 0x3b0   :  { %3969 = vmatprep.subr.bf16.mxu1 %v879_v40  ;;  %v4361_v62 = vpop.eup %4360  ;;  %4374 = vrcp.f32 %v841_v44 }
 0x3b1   :  { %v518_v2 = vpop.xlane.xlu0 %517  ;;  %v4363_v10 = vpop.eup %4362  ;;  %v536_v11 = vmul.f32 %v4361_v62, %v5128_v63 }
 0x3b2   :  { %4376 = vrcp.f32 %v518_v2  ;;  %v4365_v18 = vpop.eup %4364  ;;  %v854_v21 = vmul.f32 %v4363_v10, %v5124_v50 }
 0x3b3   :  { %3970 = vmatpush3.bf16.msra.mxu1 %v879_v40  ;;  %v4367_v19 = vpop.eup %4366  ;;  %v5182_v26 = vadd.f32 %v850_v53, %v536_v11  ;;  %v852_v46 = vmul.f32 %v4365_v18, %v5099_v54 }
 0x3b4   :  { %3971 = vmatprep.subr.bf16.mxu1 %v881_v38  ;;  %v4369_v31 = vpop.eup %4368  ;;  %v5188_v36 = vmul.f32 %v4367_v19, %v5109_v4 }
 0x3b5   :  { %v538_v35 = vmul.f32 %v4369_v31, %v5132_v43  ;;  %v867_v0 = vpack.c.bf16 %v853_v25, %v852_v46 }
 0x3b6   :  { %v868_v13 = vpack.c.bf16 %v5188_v36, %v854_v21 }
 0x3b7   :  { %3972 = vmatpush3.bf16.msra.mxu1 %v881_v38  ;;  %v5191_v37 = vadd.f32 %v852_v46, %v538_v35 }
 0x3b8   :  { %v4371_v63 = vpop.eup %4370  ;;  %4188 = vmatprep.subr.bf16.mxu1 %v4746_v14 }
 0x3b9   :  { %v4373_v60 = vpop.eup %4372  ;;  %v539_v47 = vmul.f32 %v4371_v63, %v5144_v52 }
 0x3ba   :  { %3974 = vmatmul.mubr.msk.bf16.vlgmr.msra.gmra.mrb[4].mxu1 %vm455_vm5, %v867_v0  ;;  %v4375_v54 = vpop.eup %4374  ;;  %v5200_v43 = vmul.f32 %v4373_v60, %v5138_v29 }
 0x3bb   :  { %3977 = vmatprep.mubr.msk.bf16.mxu1 %vm455_vm5, %v868_v13  ;;  %v5197_v50 = vadd.f32 %v853_v25, %v539_v47  ;;  %v5204_v53 = vmul.f32 %v4375_v54, %v5130_v9  ;;  %v553_v41 = vpack.c.bf16 %v539_v47, %v538_v35  ;;  %v524_v58 = vpop.xlane.xlu0 %523 }
 0x3bc   :  { %v4377_v4 = vpop.eup %4376 }
 0x3bd   :  { %v540_v28 = vmul.f32 %v4377_v4, %v5149_v61  ;;  %v869_v52 = vpack.c.bf16 %v5204_v53, %v5200_v43 }
 0x3bf   :  { %v5206_v12 = vadd.f32 %v854_v21, %v540_v28 }
 0x3c2   :  { %3978 = vmatmul.mubr.msk.bf16.gmra.mrb[8].mxu1 %vm455_vm5, %v869_v52 }
 0x3c3   :  { %4007 = vmatprep.mubr.msk.f32.mxu1 %vm4747_vm1, %v4748_v15 }
 0x3de   :  { %v509_v1 = vpop.xlane.xlu1 %508 }
 0x3df   :  { %4378 = vrcp.f32 %v509_v1 }
 0x3e2   :  { %v521_v8 = vpop.xlane.xlu1 %520 }
 0x3e3   :  { %4380 = vrcp.f32 %v521_v8 }
 0x3e4   :  { %4382 = vrcp.f32 %v524_v58 }
 0x3e9   :  { %v4379_v29 = vpop.eup %4378 }
 0x3ea   :  { %v5214_v61 = vmul.f32 %v4379_v29, %v5161_v27 }
 0x3ec   :  { %v552_v9 = vpack.c.bf16 %v5214_v61, %v536_v11 }
 0x3ed   :  { %v4381_v40 = vpop.eup %4380 }
 0x3ee   :  { %3957 = vmatprep.mubr.msk.bf16.mxu0 %vm455_vm5, %v552_v9  ;;  %v5219_v38 = vmul.f32 %v4381_v40, %v5165_v32  ;;  %v4383_v27 = vpop.eup %4382  ;;  %v4318_v9 = vld [vmem:[%s6065_s5] sm:$0xff]  }
 0x3ef   :  { %3958 = vmatmul.mubr.msk.bf16.vlgmr.msra.gmra.mrb[16].mxu0 %vm455_vm5, %v553_v41  ;;  %v5225_v24 = vmul.f32 %v4383_v27, %v5153_v5  ;;  %3981 = vmatprep.subr.bf16.mxu0 %v4318_v9 }
 0x3f0   :  { %v554_v15 = vpack.c.bf16 %v5219_v38, %v540_v28  ;;  %3982 = vmatpush3.bf16.msra.mxu0 %v4318_v9 }
 0x3f2   :  { %3961 = vmatprep.mubr.msk.bf16.mxu0 %vm455_vm5, %v554_v15 }
 0x405   :  { %v527_v44 = vpop.xlane.xlu1 %526 }
 0x406   :  { %4384 = vrcp.f32 %v527_v44 }
 0x410   :  { %v4385_v20 = vpop.eup %4384 }
 0x411   :  { %v5228_v49 = vmul.f32 %v4385_v20, %v5170_v30 }
 0x413   :  { %v555_v32 = vpack.c.bf16 %v5228_v49, %v5225_v24 }
 0x415   :  { %3962 = vmatmul.mubr.msk.bf16.gmra.mrb[20].mxu0 %vm455_vm5, %v555_v32 }
 0x48d   :  { %v3975_v22 = vpop.f32.mrb[4].mxu1 }
 0x48e   :  { %v973_v56 = vmin.f32 %v3975_v22, 0.0  ;;  %v932_v51 = vpop.f32.mrb[5].mxu1  ;;  %vm965_vm14 = vcmp.gt.f32.partialorder %v3975_v22, 0.0 }
 0x48f   :  { %v971_v62 = vmin.f32 %v932_v51, 0.0  ;;  %v3976_v2 = vpop.f32.mrb[6].mxu1  ;;  %vm963_vm1 = vcmp.gt.f32.partialorder %v932_v51, 0.0 }
 0x490   :  { %v983_v10 = vmul.f32 1.442695, %v973_v56  ;;  %v974_v11 = vmin.f32 %v3976_v2, 0.0  ;;  %v935_v18 = vpop.f32.mrb[7].mxu1  ;;  %vm966_vm12 = vcmp.gt.f32.partialorder %v3976_v2, 0.0 }
 0x491   :  { %v979_v19 = vmul.f32 1.442695, %v971_v62  ;;  %v972_v25 = vmin.f32 %v935_v18, 0.0  ;;  %vm964_vm9 = vcmp.gt.f32.partialorder %v935_v18, 0.0 }
 0x492   :  { %4386 = vpow2.f32 %v983_v10  ;;  %v985_v5 = vmul.f32 1.442695, %v974_v11 }
 0x493   :  { %4388 = vpow2.f32 %v979_v19  ;;  %v981_v30 = vmul.f32 1.442695, %v972_v25 }
 0x494   :  { %4390 = vpow2.f32 %v985_v5 }
 0x495   :  { %4392 = vpow2.f32 %v981_v30  ;;  %v3979_v31 = vpop.f32.mrb[8].mxu1 }
 0x496   :  { %v977_v21 = vmin.f32 %v3979_v31, 0.0  ;;  %v948_v46 = vpop.f32.mrb[9].mxu1 }
 0x497   :  { %v975_v35 = vmin.f32 %v948_v46, 0.0  ;;  %v3980_v63 = vpop.f32.mrb[10].mxu1  ;;  %vm967_vm4 = vcmp.gt.f32.partialorder %v948_v46, 0.0 }
 0x498   :  { %v991_v0 = vmul.f32 1.442695, %v977_v21  ;;  %v978_v60 = vmin.f32 %v3980_v63, 0.0  ;;  %v951_v47 = vpop.f32.mrb[11].mxu1 }
 0x499   :  { %v987_v13 = vmul.f32 1.442695, %v975_v35  ;;  %v976_v54 = vmin.f32 %v951_v47, 0.0 }
 0x49a   :  { %4394 = vpow2.f32 %v991_v0  ;;  %v993_v4 = vmul.f32 1.442695, %v978_v60 }
 0x49b   :  { %4396 = vpow2.f32 %v987_v13  ;;  %v989_v28 = vmul.f32 1.442695, %v976_v54 }
 0x49c   :  { %v4387_v52 = vpop.eup %4386  ;;  %4398 = vpow2.f32 %v993_v4 }
 0x49d   :  { %v4389_v1 = vpop.eup %4388  ;;  %4400 = vpow2.f32 %v989_v28  ;;  %v3671_v27 = vadd.f32 -1.0, %v4387_v52 }
 0x49e   :  { %v4391_v8 = vpop.eup %4390  ;;  %v3669_v29 = vadd.f32 -1.0, %v4389_v1 }
 0x49f   :  { %v4393_v40 = vpop.eup %4392  ;;  %v3672_v58 = vadd.f32 -1.0, %v4391_v8  ;;  %v1005_v62 = vsel %vm965_vm14, %v3975_v22, %v3671_v27  ;;  %vm685_vm14 = vcmask 64512  }
 0x4a0   :  { %v1003_v41 = vsel %vm963_vm1, %v932_v51, %v3669_v29  ;;  %v3670_v15 = vadd.f32 -1.0, %v4393_v40  ;;  %vm968_vm1 = vcmp.gt.f32.partialorder %v951_v47, 0.0 }
 0x4a1   :  { %1019 = vrot.lane.b32.xlu0 %v1003_v41, %s4752_s22  ;;  %v1006_v32 = vsel %vm966_vm12, %v3976_v2, %v3672_v58  ;;  %vm970_vm12 = vcmp.gt.f32.partialorder %v3980_v63, 0.0 }
 0x4a2   :  { %v1004_v44 = vsel %vm964_vm9, %v935_v18, %v3670_v15  ;;  %vm969_vm9 = vcmp.gt.f32.partialorder %v3979_v31, 0.0 }
 0x4a3   :  { %1021 = vrot.lane.b32.xlu1 %v1004_v44, %s4752_s22 }
 0x4a4   :  { %v4395_v20 = vpop.eup %4394 }
 0x4a5   :  { %v4397_v56 = vpop.eup %4396  ;;  %1025 = vrot.lane.b32.xlu0 %v1006_v32, %s4752_s22  ;;  %v3675_v5 = vadd.f32 -1.0, %v4395_v20 }
 0x4a6   :  { %v4399_v51 = vpop.eup %4398  ;;  %v3673_v10 = vadd.f32 -1.0, %v4397_v56 }
 0x4a7   :  { %v4401_v11 = vpop.eup %4400  ;;  %1023 = vrot.lane.b32.xlu1 %v1005_v62, %s4752_s22  ;;  %v3676_v30 = vadd.f32 -1.0, %v4399_v51  ;;  %v1009_v2 = vsel %vm969_vm9, %v3979_v31, %v3675_v5 }
 0x4a8   :  { %v3674_v19 = vadd.f32 -1.0, %v4401_v11  ;;  %v1007_v18 = vsel %vm967_vm4, %v948_v46, %v3673_v10 }
 0x4a9   :  { %v1010_v21 = vsel %vm970_vm12, %v3980_v63, %v3676_v30 }
 0x4aa   :  { %v1008_v25 = vsel %vm968_vm1, %v951_v47, %v3674_v19 }
 0x4ab   :  { %1027 = vrot.lane.b32.xlu1 %v1007_v18, %s4752_s22  ;;  %1029 = vrot.lane.b32.xlu0 %v1008_v25, %s4752_s22 }
 0x4af   :  { %1031 = vrot.lane.b32.xlu1 %v1009_v2, %s4752_s22  ;;  %1033 = vrot.lane.b32.xlu0 %v1010_v21, %s4752_s22 }
 0x4c2   :  { %v3959_v22 = vpop.f32.mrb[16].mxu0 }
 0x4c3   :  { %v647_v35 = vmin.f32 %v3959_v22, 0.0  ;;  %v606_v0 = vpop.f32.mrb[17].mxu0  ;;  %vm639_vm4 = vcmp.gt.f32.partialorder %v3959_v22, 0.0 }
 0x4c4   :  { %v645_v60 = vmin.f32 %v606_v0, 0.0  ;;  %v3960_v46 = vpop.f32.mrb[18].mxu0  ;;  %vm637_vm1 = vcmp.gt.f32.partialorder %v606_v0, 0.0 }
 0x4c5   :  { %v657_v47 = vmul.f32 1.442695, %v647_v35  ;;  %v648_v13 = vmin.f32 %v3960_v46, 0.0  ;;  %v609_v54 = vpop.f32.mrb[19].mxu0  ;;  %vm640_vm9 = vcmp.gt.f32.partialorder %v3960_v46, 0.0 }
 0x4c6   :  { %v653_v4 = vmul.f32 1.442695, %v645_v60  ;;  %v646_v28 = vmin.f32 %v609_v54, 0.0  ;;  %vm638_vm12 = vcmp.gt.f32.partialorder %v609_v54, 0.0 }
 0x4c7   :  { %4402 = vpow2.f32 %v657_v47  ;;  %v659_v52 = vmul.f32 1.442695, %v648_v13 }
 0x4c8   :  { %4404 = vpow2.f32 %v653_v4  ;;  %v655_v1 = vmul.f32 1.442695, %v646_v28 }
 0x4c9   :  { %4406 = vpow2.f32 %v659_v52 }
 0x4ca   :  { %4408 = vpow2.f32 %v655_v1 }
 0x4d1   :  { %v4403_v31 = vpop.eup %4402 }
 0x4d2   :  { %v4405_v63 = vpop.eup %4404  ;;  %v3659_v8 = vadd.f32 -1.0, %v4403_v31 }
 0x4d3   :  { %v4407_v29 = vpop.eup %4406  ;;  %v3657_v9 = vadd.f32 -1.0, %v4405_v63 }
 0x4d4   :  { %v4409_v40 = vpop.eup %4408  ;;  %v679_v41 = vsel %vm639_vm4, %v3959_v22, %v3659_v8  ;;  %v3660_v15 = vadd.f32 -1.0, %v4407_v29 }
 0x4d5   :  { %v677_v58 = vsel %vm637_vm1, %v606_v0, %v3657_v9  ;;  %v3658_v44 = vadd.f32 -1.0, %v4409_v40  ;;  %688 = vst.msk [vmem:[#allocation2 + $0x10] sm:$0xff] %vm685_vm14, %v679_v41 }
 0x4d6   :  { %v680_v27 = vsel %vm640_vm9, %v3960_v46, %v3660_v15  ;;  %686 = vst.msk [vmem:[#allocation2] sm:$0xff] %vm685_vm14, %v677_v58 }
 0x4d7   :  { %v678_v20 = vsel %vm638_vm12, %v609_v54, %v3658_v44  ;;  %689 = vst.msk [vmem:[#allocation2 + $0x18] sm:$0xff] %vm685_vm14, %v680_v27 }
 0x4d8   :  { %687 = vst.msk [vmem:[#allocation2 + $0x8] sm:$0xff] %vm685_vm14, %v678_v20 }
 0x4e8   :  { %v3963_v32 = vpop.f32.mrb[20].mxu0 }
 0x4e9   :  { %v651_v56 = vmin.f32 %v3963_v32, 0.0  ;;  %v622_v51 = vpop.f32.mrb[21].mxu0  ;;  %vm643_vm4 = vcmp.gt.f32.partialorder %v3963_v32, 0.0 }
 0x4ea   :  { %v649_v62 = vmin.f32 %v622_v51, 0.0  ;;  %v3964_v10 = vpop.f32.mrb[22].mxu0  ;;  %vm641_vm1 = vcmp.gt.f32.partialorder %v622_v51, 0.0 }
 0x4eb   :  { %v665_v11 = vmul.f32 1.442695, %v651_v56  ;;  %v652_v19 = vmin.f32 %v3964_v10, 0.0  ;;  %v625_v18 = vpop.f32.mrb[23].mxu0  ;;  %vm644_vm9 = vcmp.gt.f32.partialorder %v3964_v10, 0.0 }
 0x4ec   :  { %v661_v25 = vmul.f32 1.442695, %v649_v62  ;;  %v650_v5 = vmin.f32 %v625_v18, 0.0  ;;  %vm642_vm12 = vcmp.gt.f32.partialorder %v625_v18, 0.0 }
 0x4ed   :  { %4410 = vpow2.f32 %v665_v11  ;;  %v667_v30 = vmul.f32 1.442695, %v652_v19 }
 0x4ee   :  { %4412 = vpow2.f32 %v661_v25  ;;  %v663_v2 = vmul.f32 1.442695, %v650_v5 }
 0x4ef   :  { %4414 = vpow2.f32 %v667_v30 }
 0x4f0   :  { %4416 = vpow2.f32 %v663_v2 }
 0x4f7   :  { %v4411_v21 = vpop.eup %4410 }
 0x4f8   :  { %v4413_v22 = vpop.eup %4412  ;;  %v3663_v35 = vadd.f32 -1.0, %v4411_v21 }
 0x4f9   :  { %v4415_v0 = vpop.eup %4414  ;;  %v3661_v60 = vadd.f32 -1.0, %v4413_v22 }
 0x4fa   :  { %v4417_v46 = vpop.eup %4416  ;;  %v683_v47 = vsel %vm643_vm4, %v3963_v32, %v3663_v35  ;;  %v3664_v13 = vadd.f32 -1.0, %v4415_v0 }
 0x4fb   :  { %v681_v54 = vsel %vm641_vm1, %v622_v51, %v3661_v60  ;;  %v3662_v4 = vadd.f32 -1.0, %v4417_v46  ;;  %692 = vst.msk [vmem:[#allocation2 + $0x30] sm:$0xff] %vm685_vm14, %v683_v47 }
 0x4fc   :  { %v684_v28 = vsel %vm644_vm9, %v3964_v10, %v3664_v13  ;;  %690 = vst.msk [vmem:[#allocation2 + $0x20] sm:$0xff] %vm685_vm14, %v681_v54  ;;  %v1165_v54 = vld [vmem:[%s6066_s6] sm:$0x3] }
 0x4fd   :  { %v682_v52 = vsel %vm642_vm12, %v625_v18, %v3662_v4  ;;  %693 = vst.msk [vmem:[#allocation2 + $0x38] sm:$0xff] %vm685_vm14, %v684_v28  ;;  %v1263_v18 = vld [vmem:[%s6067_s7] sm:$0x3] }
 0x4fe   :  { %691 = vst.msk [vmem:[#allocation2 + $0x28] sm:$0xff] %vm685_vm14, %v682_v52  ;;  %4010 = vmatprep.subr.msk.mxu0 %vm86_vm0, %v1263_v18 }
 0x513   :  { %v1020_v1 = vpop.permute.xlu0 %1019 }
 0x514   :  { %1044 = vst.msk [vmem:[#allocation2] sm:$0xff] %vm1043_vm15, %v1020_v1 }
 0x515   :  { %v1022_v31 = vpop.permute.xlu1 %1021 }
 0x516   :  { %1045 = vst.msk [vmem:[#allocation2 + $0x8] sm:$0xff] %vm1043_vm15, %v1022_v31 }
 0x517   :  { %v1026_v63 = vpop.permute.xlu0 %1025 }
 0x518   :  { %1047 = vst.msk [vmem:[#allocation2 + $0x18] sm:$0xff] %vm1043_vm15, %v1026_v63 }
 0x519   :  { %v1024_v8 = vpop.permute.xlu1 %1023 }
 0x51a   :  { %1046 = vst.msk [vmem:[#allocation2 + $0x10] sm:$0xff] %vm1043_vm15, %v1024_v8 }
 0x51b   :  { %v1068_v40 = vld [vmem:[#allocation2] sm:$0xff] }
 0x51d   :  { %v1028_v29 = vpop.permute.xlu1 %1027  ;;  %v1030_v9 = vpop.permute.xlu0 %1029  ;;  %v1069_v41 = vld [vmem:[#allocation2 + $0x8] sm:$0xff] }
 0x51e   :  { %1048 = vst.msk [vmem:[#allocation2 + $0x20] sm:$0xff] %vm1043_vm15, %v1028_v29  ;;  %1049 = vst.msk [vmem:[#allocation2 + $0x28] sm:$0xff] %vm1043_vm15, %v1030_v9  ;;  %v1076_v15 = vpack.c.bf16 %v1069_v41, %v1068_v40 }
 0x51f   :  { %v1071_v20 = vld [vmem:[#allocation2 + $0x18] sm:$0xff] }
 0x520   :  { %3983 = vmatprep.mubr.msk.bf16.mxu0 %vm86_vm0, %v1076_v15 }
 0x521   :  { %v1032_v58 = vpop.permute.xlu1 %1031  ;;  %v1034_v44 = vpop.permute.xlu0 %1033  ;;  %v1070_v27 = vld [vmem:[#allocation2 + $0x10] sm:$0xff] }
 0x522   :  { %1050 = vst.msk [vmem:[#allocation2 + $0x30] sm:$0xff] %vm1043_vm15, %v1032_v58  ;;  %1051 = vst.msk [vmem:[#allocation2 + $0x38] sm:$0xff] %vm1043_vm15, %v1034_v44  ;;  %v1077_v32 = vpack.c.bf16 %v1071_v20, %v1070_v27 }
 0x524   :  { %3984 = vmatmul.mubr.msk.bf16.vlgmr.msra.gmra.mrb[24].mxu0 %vm86_vm0, %v1077_v32 }
 0x525   :  { %v1072_v56 = vld [vmem:[#allocation2 + $0x20] sm:$0xff]  ;;  %v1073_v51 = vld [vmem:[#allocation2 + $0x28] sm:$0xff]  ;;  %4011 = vmatpush3.xpose.msk.msra.mxu0 %vm86_vm0, %v1263_v18 }
 0x526   :  { %v1078_v62 = vpack.c.bf16 %v1073_v51, %v1072_v56 }
 0x528   :  { %3987 = vmatprep.mubr.msk.bf16.mxu0 %vm86_vm0, %v1078_v62 }
 0x529   :  { %v1074_v10 = vld [vmem:[#allocation2 + $0x30] sm:$0xff]  ;;  %v1075_v11 = vld [vmem:[#allocation2 + $0x38] sm:$0xff] }
 0x52a   :  { %v1079_v19 = vpack.c.bf16 %v1075_v11, %v1074_v10 }
 0x52c   :  { %3988 = vmatmul.mubr.msk.bf16.gmra.mrb[28].mxu0 %vm86_vm0, %v1079_v19 }
 0x5f7   :  { %v3985_v25 = vpop.f32.mrb[24].mxu0 }
 0x5f8   :  { %v1134_v5 = vpop.f32.mrb[25].mxu0 }
 0x5f9   :  { %v3986_v30 = vpop.f32.mrb[26].mxu0  ;;  %4012 = vmatprep.mubr.msk.f32.mxu0 %vm86_vm0, %v1134_v5 }
 0x5fa   :  { %v5270_v2 = vpack.c.bf16 %v3986_v30, %v3985_v25  ;;  %v1137_v21 = vpop.f32.mrb[27].mxu0 }
 0x5fb   :  { %v5272_v22 = vpack.c.bf16 %v1137_v21, %v1134_v5  ;;  %4013 = vmatmul.mubr.msk.f32.vlgmr.msra.gmra.mrb[32].mxu0 %vm86_vm0, %v1137_v21 }
 0x5fc   :  { %4015 = vmatprep.mubr.msk.f32.mxu0 %vm86_vm0, %v3985_v25 }
 0x5fd   :  { %4191 = vmatpush3.bf16.xpose.msk.msra.mxu1 %vm4861_vm2, %v5272_v22  ;;  %4024 = vmatprep.subr.bf16.mxu0 %v5272_v22 }
 0x5fe   :  { %4025 = vmatpush3.bf16.msra.mxu0 %v5272_v22  ;;  %4192 = vmatprep.subr.bf16.mxu1 %v4746_v14 }
 0x5ff   :  { %v3989_v35 = vpop.f32.mrb[28].mxu0  ;;  %4016 = vmatmul.mubr.msk.f32.gmra.mrb[34].mxu0 %vm86_vm0, %v3986_v30  ;;  %4026 = vmatprep.subr.bf16.mxu0 %v5270_v2 }
 0x600   :  { %v1150_v0 = vpop.f32.mrb[29].mxu0 }
 0x601   :  { %v3990_v60 = vpop.f32.mrb[30].mxu0  ;;  %4018 = vmatprep.mubr.msk.f32.mxu0 %vm86_vm0, %v1150_v0 }
 0x602   :  { %v5285_v46 = vpack.c.bf16 %v3990_v60, %v3989_v35  ;;  %v1153_v47 = vpop.f32.mrb[31].mxu0  ;;  %4027 = vmatpush3.bf16.msra.mxu0 %v5270_v2 }
 0x603   :  { %v5288_v13 = vpack.c.bf16 %v1153_v47, %v1150_v0  ;;  %4019 = vmatmul.mubr.msk.f32.gmra.mrb[36].mxu0 %vm86_vm0, %v1153_v47 }
 0x604   :  { %4021 = vmatprep.mubr.msk.f32.mxu0 %vm86_vm0, %v3989_v35 }
 0x605   :  { %4195 = vmatpush3.bf16.xpose.msk.msra.mxu1 %vm4861_vm2, %v5270_v2  ;;  %4028 = vmatprep.subr.bf16.mxu0 %v5288_v13 }
 0x606   :  { %4029 = vmatpush3.bf16.msra.mxu0 %v5288_v13  ;;  %4196 = vmatprep.subr.bf16.mxu1 %v4746_v14 }
 0x607   :  { %4022 = vmatmul.mubr.msk.f32.gmra.mrb[38].mxu0 %vm86_vm0, %v3990_v60  ;;  %4030 = vmatprep.subr.bf16.mxu0 %v5285_v46 }
 0x60a   :  { %4031 = vmatpush3.bf16.msra.mxu0 %v5285_v46 }
 0x60d   :  { %4199 = vmatpush3.bf16.xpose.msk.msra.mxu1 %vm4861_vm2, %v5288_v13 }
 0x60e   :  { %4200 = vmatprep.subr.bf16.mxu1 %v4746_v14 }
 0x615   :  { %4203 = vmatpush3.bf16.xpose.msk.msra.mxu1 %vm4861_vm2, %v5285_v46 }
 0x61c   :  { %4008 = vmatmul.mubr.msk.f32.vlgmr.msra.gmra.mrb[2].mxu1 %vm86_vm0, %v1165_v54 }
 0x6ce   :  { %v4014_v4 = vpop.f32.mrb[32].mxu0 }
 0x6cf   :  { %1379 = vperm.xlu1 %4297, %v4014_v4   ;;  %1698 = vperm.xlu0 %4298, %v4014_v4   ;;  %v1333_v28 = vpop.f32.mrb[33].mxu0 }
 0x6d2   :  { %v4017_v52 = vpop.f32.mrb[34].mxu0 }
 0x6d3   :  { %4299 = vset.pattern.permute.xlu1 %v4749_v16  ;;  %4300 = vset.pattern.permute.xlu0 %v4750_v17  ;;  %v1343_v14 = vpop.f32.mrb[35].mxu0 }
 0x6d4   :  { %1374 = vperm.xlu0 %4300, %v1333_v28   ;;  %1694 = vperm.xlu1 %4299, %v1333_v28  }
 0x6d6   :  { %v4020_v23 = vpop.f32.mrb[36].mxu0 }
 0x6d7   :  { %v1353_v1 = vpop.f32.mrb[37].mxu0 }
 0x6d8   :  { %1389 = vperm.xlu0 %4300, %v4017_v52   ;;  %1706 = vperm.xlu1 %4299, %v4017_v52  }
 0x6da   :  { %v5314_v31 = vpop.f32.mrb[38].mxu0 }
 0x6db   :  { %v1363_v63 = vpop.f32.mrb[39].mxu0 }
 0x6dc   :  { %4304 = vset.pattern.permute.xlu0 %v4749_v16  ;;  %1702 = vperm.xlu1 %4299, %v1343_v14  }
 0x6dd   :  { %1710 = vperm.xlu0 %4304, %v1353_v1  }
 0x6e0   :  { %4301 = vset.pattern.permute.xlu1 %v4750_v17 }
 0x6e1   :  { %1384 = vperm.xlu1 %4301, %v1343_v14   ;;  %4305 = vset.pattern.permute.xlu0 %v4750_v17 }
 0x6e2   :  { %1394 = vperm.xlu0 %4305, %v1353_v1  }
 0x6e5   :  { %4302 = vset.pattern.permute.xlu1 %v4749_v16 }
 0x6e6   :  { %1714 = vperm.xlu1 %4302, %v4020_v23   ;;  %4307 = vset.pattern.permute.xlu0 %v4749_v16 }
 0x6e7   :  { %1718 = vperm.xlu0 %4307, %v1363_v63  }
 0x6ea   :  { %4303 = vset.pattern.permute.xlu1 %v4750_v17 }
 0x6eb   :  { %1399 = vperm.xlu1 %4303, %v4020_v23   ;;  %4308 = vset.pattern.permute.xlu0 %v4750_v17 }
 0x6ec   :  { %1404 = vperm.xlu0 %4308, %v1363_v63  }
 0x6ef   :  { %4306 = vset.pattern.permute.xlu1 %v4749_v16  ;;  %v1259_v8 = vpop.f32.mrb[2].mxu1 }
 0x6f0   :  { %1722 = vperm.xlu1 %4306, %v5314_v31   ;;  %v4009_v29 = vpop.f32.mrb[3].mxu1  ;;  %4311 = vset.pattern.permute.xlu0 %v4749_v16  ;;  %v5328_v9 = vrot.slane %v1259_v8, %v4924_v45  ;;  %v5357_v28 = vrot.slane %v1259_v8, %v4951_v7 }
 0x6f4   :  { %4309 = vset.pattern.permute.xlu1 %v4750_v17 }
 0x74e   :  { %v5330_v40 = vpop.permute.xlu1 %1379  ;;  %v1699_v41 = vpop.permute.xlu0 %1698 }
 0x74f   :  { %v1730_v15 = vadd.f32 %v5328_v9, %v1699_v41 }
 0x751   :  { %v1746_v58 = vmul.f32 0.2, %v1730_v15  ;;  %vm1738_vm2 = vcmp.gt.f32.partialorder %v1730_v15, 0.0 }
 0x753   :  { %v1375_v44 = vpop.permute.xlu0 %1374  ;;  %v1695_v27 = vpop.permute.xlu1 %1694  ;;  %v1754_v20 = vsel %vm1738_vm2, %v1730_v15, %v1746_v58 }
 0x754   :  { %v1729_v32 = vadd.f32 %v5328_v9, %v1695_v27  ;;  %v5336_v56 = vsel %vm59_vm3, %v1754_v20, -1e+30  ;;  %v1416_v63 = vadd.f32 %v5357_v28, %v1375_v44 }
 0x755   :  { %v1772_v51 = vsel %vm455_vm5, %v5336_v56, -inf }
 0x756   :  { %v1745_v62 = vmul.f32 0.2, %v1729_v32  ;;  %1773 = vmax.xlane.f32.xlu0 %v1772_v51  ;;  %vm1737_vm4 = vcmp.gt.f32.partialorder %v1729_v32, 0.0  ;;  %v1432_v15 = vmul.f32 0.2, %v1416_v63  ;;  %vm1424_vm12 = vcmp.gt.f32.partialorder %v1416_v63, 0.0 }
 0x757   :  { %v5340_v10 = vpop.permute.xlu0 %1389  ;;  %v1707_v11 = vpop.permute.xlu1 %1706 }
 0x758   :  { %v1732_v19 = vadd.f32 %v5328_v9, %v1707_v11  ;;  %v1753_v18 = vsel %vm1737_vm4, %v1729_v32, %v1745_v62  ;;  %v1440_v11 = vsel %vm1424_vm12, %v1416_v63, %v1432_v15 }
 0x759   :  { %v5345_v25 = vsel %vm58_vm6, %v1753_v18, -1e+30  ;;  %v5377_v18 = vsel %vm58_vm6, %v1440_v11, -1e+30 }
 0x75a   :  { %v1748_v5 = vmul.f32 0.2, %v1732_v19  ;;  %v1769_v30 = vsel %vm455_vm5, %v5345_v25, -inf  ;;  %vm1740_vm1 = vcmp.gt.f32.partialorder %v1732_v19, 0.0 }
 0x75b   :  { %v1703_v21 = vpop.permute.xlu1 %1702  ;;  %1770 = vmax.xlane.f32.xlu1 %v1769_v30 }
 0x75c   :  { %v1731_v35 = vadd.f32 %v5328_v9, %v1703_v21  ;;  %v1711_v0 = vpop.permute.xlu0 %1710  ;;  %v1756_v60 = vsel %vm1740_vm1, %v1732_v19, %v1748_v5 }
 0x75d   :  { %v5352_v47 = vsel %vm61_vm8, %v1756_v60, -1e+30  ;;  %v1733_v15 = vadd.f32 %v5328_v9, %v1711_v0  ;;  %v1419_v0 = vadd.f32 %v5357_v28, %v5340_v10 }
 0x75e   :  { %v1747_v54 = vmul.f32 0.2, %v1731_v35  ;;  %v1778_v4 = vsel %vm455_vm5, %v5352_v47, -inf  ;;  %vm1739_vm9 = vcmp.gt.f32.partialorder %v1731_v35, 0.0 }
 0x75f   :  { %1779 = vmax.xlane.f32.xlu0 %v1778_v4  ;;  %vm1741_vm12 = vcmp.gt.f32.partialorder %v1733_v15, 0.0 }
 0x760   :  { %v1385_v52 = vpop.permute.xlu1 %1384  ;;  %v1755_v14 = vsel %vm1739_vm9, %v1731_v35, %v1747_v54  ;;  %v1456_v35 = vsel %vm455_vm5, %v5377_v18, -inf }
 0x761   :  { %v1395_v23 = vpop.permute.xlu0 %1394  ;;  %v5361_v1 = vsel %vm60_vm10, %v1755_v14, -1e+30  ;;  %v1418_v58 = vadd.f32 %v5357_v28, %v1385_v52 }
 0x762   :  { %v1775_v29 = vsel %vm455_vm5, %v5361_v1, -inf  ;;  %v1420_v5 = vadd.f32 %v5357_v28, %v1395_v23 }
 0x763   :  { %1776 = vmax.xlane.f32.xlu1 %v1775_v29  ;;  %v1434_v32 = vmul.f32 0.2, %v1418_v58  ;;  %vm1426_vm4 = vcmp.gt.f32.partialorder %v1418_v58, 0.0 }
 0x764   :  { %v1436_v54 = vmul.f32 0.2, %v1420_v5  ;;  %vm1428_vm9 = vcmp.gt.f32.partialorder %v1420_v5, 0.0 }
 0x765   :  { %v1715_v41 = vpop.permute.xlu1 %1714  ;;  %v1442_v21 = vsel %vm1426_vm4, %v1418_v58, %v1434_v32 }
 0x766   :  { %v1734_v8 = vadd.f32 %v5328_v9, %v1715_v41  ;;  %v1719_v27 = vpop.permute.xlu0 %1718  ;;  %v5384_v60 = vsel %vm60_vm10, %v1442_v21, -1e+30  ;;  %v1444_v23 = vsel %vm1428_vm9, %v1420_v5, %v1436_v54  ;;  %v1435_v5 = vmul.f32 0.2, %v1419_v0 }
 0x767   :  { %v1735_v51 = vadd.f32 %v5328_v9, %v1719_v27  ;;  %v1462_v52 = vsel %vm455_vm5, %v5384_v60, -inf  ;;  %v5398_v29 = vsel %vm62_vm11, %v1444_v23, -1e+30  ;;  %vm1427_vm9 = vcmp.gt.f32.partialorder %v1419_v0, 0.0 }
 0x768   :  { %v1750_v20 = vmul.f32 0.2, %v1734_v8  ;;  %vm1742_vm2 = vcmp.gt.f32.partialorder %v1734_v8, 0.0  ;;  %v1443_v54 = vsel %vm1427_vm9, %v1419_v0, %v1435_v5 }
 0x769   :  { %v1751_v30 = vmul.f32 0.2, %v1735_v51  ;;  %vm1743_vm1 = vcmp.gt.f32.partialorder %v1735_v51, 0.0  ;;  %v5431_v23 = vsel %vm61_vm8, %v1443_v54, -1e+30 }
 0x76a   :  { %v1758_v62 = vsel %vm1742_vm2, %v1734_v8, %v1750_v20  ;;  %v1400_v41 = vpop.permute.xlu1 %1399  ;;  %v1749_v8 = vmul.f32 0.2, %v1733_v15  ;;  %v1417_v20 = vadd.f32 %v5357_v28, %v5330_v40 }
 0x76b   :  { %v5371_v44 = vsel %vm63_vm13, %v1758_v62, -1e+30  ;;  %v1759_v4 = vsel %vm1743_vm1, %v1735_v51, %v1751_v30  ;;  %vm6075_vm1 = vcmp.gt.f32.partialorder %v5036_v39, 0.0 }
 0x76c   :  { %v1784_v19 = vsel %vm455_vm5, %v5371_v44, -inf  ;;  %v5391_v14 = vsel %vm64_vm7, %v1759_v4, -1e+30  ;;  %v1757_v51 = vsel %vm1741_vm12, %v1733_v15, %v1749_v8  ;;  %v1433_v11 = vmul.f32 0.2, %v1417_v20 }
 0x76d   :  { %1785 = vmax.xlane.f32.xlu0 %v1784_v19  ;;  %v1787_v63 = vsel %vm455_vm5, %v5391_v14, -inf  ;;  %v5410_v62 = vsel %vm62_vm11, %v1757_v51, -1e+30  ;;  %vm1425_vm4 = vcmp.gt.f32.partialorder %v1417_v20, 0.0 }
 0x76e   :  { %v1441_v30 = vsel %vm1425_vm4, %v1417_v20, %v1433_v11 }
 0x76f   :  { %v1723_v58 = vpop.permute.xlu1 %1722  ;;  %v5425_v10 = vsel %vm59_vm3, %v1441_v30, -1e+30 }
 0x770   :  { %v1736_v27 = vadd.f32 %v5328_v9, %v1723_v58  ;;  %v1781_v9 = vsel %vm455_vm5, %v5410_v62, -inf  ;;  %v1459_v4 = vsel %vm455_vm5, %v5425_v10, -inf }
 0x771   :  { %1457 = vmax.xlane.f32.xlu0 %v1456_v35 }
 0x772   :  { %v1752_v32 = vmul.f32 0.2, %v1736_v27  ;;  %vm1744_vm2 = vcmp.gt.f32.partialorder %v1736_v27, 0.0 }
 0x774   :  { %1409 = vperm.xlu1 %4309, %v5314_v31   ;;  %v1468_v31 = vsel %vm455_vm5, %v5398_v29, -inf  ;;  %v1760_v19 = vsel %vm1744_vm2, %v1736_v27, %v1752_v32 }
 0x775   :  { %1463 = vmax.xlane.f32.xlu0 %v1462_v52  ;;  %v5418_v40 = vsel %vm6075_vm1, %v1760_v19, -1e+30  ;;  %v1405_v52 = vpop.permute.xlu0 %1404 }
 0x776   :  { %v1790_v21 = vsel %vm455_vm5, %v5418_v40, -inf }
 0x778   :  { %4310 = vset.pattern.permute.xlu1 %v4749_v16 }
 0x779   :  { %1788 = vmax.xlane.f32.xlu0 %v1787_v63 }
 0x77d   :  { %1469 = vmax.xlane.f32.xlu0 %v1468_v31  ;;  %v1422_v31 = vadd.f32 %v5357_v28, %v1405_v52 }
 0x77f   :  { %v1438_v58 = vmul.f32 0.2, %v1422_v31  ;;  %vm1430_vm2 = vcmp.gt.f32.partialorder %v1422_v31, 0.0 }
 0x781   :  { %v1446_v27 = vsel %vm1430_vm2, %v1422_v31, %v1438_v58 }
 0x782   :  { %v5444_v20 = vsel %vm64_vm7, %v1446_v27, -1e+30 }
 0x783   :  { %v1474_v32 = vsel %vm455_vm5, %v5444_v20, -inf }
 0x793   :  { %1873 = vrot.lane.b32.xlu0 %v5272_v22, %s4751_s1  ;;  %v1421_v22 = vadd.f32 %v5357_v28, %v1400_v41  ;;  %v1465_v41 = vsel %vm455_vm5, %v5431_v23, -inf }
 0x795   :  { %v1437_v35 = vmul.f32 0.2, %v1421_v22  ;;  %vm1429_vm12 = vcmp.gt.f32.partialorder %v1421_v22, 0.0 }
 0x797   :  { %v1445_v63 = vsel %vm1429_vm12, %v1421_v22, %v1437_v35 }
 0x798   :  { %1782 = vmax.xlane.f32.xlu1 %v1781_v9  ;;  %v5438_v15 = vsel %vm63_vm13, %v1445_v63, -1e+30 }
 0x799   :  { %v1471_v8 = vsel %vm455_vm5, %v5438_v15, -inf }
 0x79c   :  { %1791 = vmax.xlane.f32.xlu1 %v1790_v21 }
 0x7a0   :  { %1460 = vmax.xlane.f32.xlu1 %v1459_v4 }
 0x7a4   :  { %1466 = vmax.xlane.f32.xlu1 %v1465_v41 }
 0x7a8   :  { %1472 = vmax.xlane.f32.xlu1 %v1471_v8 }
 0x7b2   :  { %1475 = vmax.xlane.f32.xlu0 %v1474_v32 }
 0x7e3   :  { %v1774_v51 = vpop.xlane.xlu0 %1773 }
 0x7e4   :  { %v1794_v19 = vsub.f32 %v5336_v56, %v1774_v51 }
 0x7e6   :  { %v1803_v22 = vmul.f32 1.442695, %v1794_v19 }
 0x7e8   :  { %v1771_v11 = vpop.xlane.xlu1 %1770 }
 0x7e9   :  { %v1793_v0 = vsub.f32 %v5345_v25, %v1771_v11 }
 0x7eb   :  { %v1801_v9 = vmul.f32 1.442695, %v1793_v0 }
 0x7ec   :  { %v1780_v5 = vpop.xlane.xlu0 %1779 }
 0x7ed   :  { %4418 = vpow2.f32 %v1801_v9  ;;  %v1796_v30 = vsub.f32 %v5352_v47, %v1780_v5 }
 0x7ee   :  { %4420 = vpow2.f32 %v1803_v22 }
 0x7ef   :  { %v1807_v54 = vmul.f32 1.442695, %v1796_v30 }
 0x7f0   :  { %v1777_v21 = vpop.xlane.xlu1 %1776 }
 0x7f1   :  { %v1795_v35 = vsub.f32 %v5361_v1, %v1777_v21 }
 0x7f3   :  { %v1805_v4 = vmul.f32 1.442695, %v1795_v35 }
 0x7f4   :  { %v1410_v52 = vpop.permute.xlu1 %1409 }
 0x7f5   :  { %4422 = vpow2.f32 %v1805_v4  ;;  %v1423_v63 = vadd.f32 %v5357_v28, %v1410_v52 }
 0x7f6   :  { %4424 = vpow2.f32 %v1807_v54 }
 0x7f7   :  { %v5453_v25 = vpop.eup %4418  ;;  %v1439_v56 = vmul.f32 0.2, %v1423_v63  ;;  %vm1431_vm4 = vcmp.gt.f32.partialorder %v1423_v63, 0.0 }
 0x7f8   :  { %v1817_v31 = vsel %vm455_vm5, %v5453_v25, 0.0  ;;  %v5464_v8 = vpop.eup %4420 }
 0x7f9   :  { %1818 = vadd.xlane.f32.xlu0 %v1817_v31  ;;  %v1447_v47 = vsel %vm1431_vm4, %v1423_v63, %v1439_v56  ;;  %v1820_v11 = vsel %vm455_vm5, %v5464_v8, 0.0 }
 0x7fa   :  { %v1786_v41 = vpop.xlane.xlu0 %1785  ;;  %v5459_v1 = vsel %vm6075_vm1, %v1447_v47, -1e+30 }
 0x7fb   :  { %v1798_v58 = vsub.f32 %v5371_v44, %v1786_v41  ;;  %v1477_v28 = vsel %vm455_vm5, %v5459_v1, -inf }
 0x7fc   :  { %1478 = vmax.xlane.f32.xlu1 %v1477_v28 }
 0x7fd   :  { %v1811_v27 = vmul.f32 1.442695, %v1798_v58 }
 0x7fe   :  { %v1458_v32 = vpop.xlane.xlu0 %1457 }
 0x7ff   :  { %v5466_v51 = vpop.eup %4422  ;;  %4426 = vpow2.f32 %v1811_v27  ;;  %v1480_v54 = vsub.f32 %v5377_v18, %v1458_v32 }
 0x800   :  { %v5470_v0 = vpop.eup %4424  ;;  %1821 = vadd.xlane.f32.xlu1 %v1820_v11  ;;  %v1823_v44 = vsel %vm455_vm5, %v5466_v51, 0.0 }
 0x801   :  { %1824 = vadd.xlane.f32.xlu0 %v1823_v44  ;;  %v1826_v9 = vsel %vm455_vm5, %v5470_v0, 0.0  ;;  %v1488_v56 = vmul.f32 1.442695, %v1480_v54 }
 0x802   :  { %v1464_v19 = vpop.xlane.xlu0 %1463 }
 0x803   :  { %v1482_v63 = vsub.f32 %v5384_v60, %v1464_v19 }
 0x804   :  { %1827 = vadd.xlane.f32.xlu1 %v1826_v9 }
 0x805   :  { %v1492_v28 = vmul.f32 1.442695, %v1482_v63 }
 0x806   :  { %v1789_v5 = vpop.xlane.xlu0 %1788 }
 0x807   :  { %v1799_v31 = vsub.f32 %v5391_v14, %v1789_v5 }
 0x809   :  { %v5476_v22 = vpop.eup %4426 }
 0x80a   :  { %v1470_v30 = vpop.xlane.xlu0 %1469  ;;  %v1832_v21 = vsel %vm455_vm5, %v5476_v22, 0.0 }
 0x80b   :  { %1833 = vadd.xlane.f32.xlu1 %v1832_v21  ;;  %v1484_v18 = vsub.f32 %v5398_v29, %v1470_v30 }
 0x80d   :  { %v1496_v14 = vmul.f32 1.442695, %v1484_v18 }
 0x80e   :  { %v1874_v35 = vpop.permute.xlu0 %1873 }
 0x80f   :  { %4040 = vmatprep.subr.bf16.mxu1 %v1874_v35 }
 0x810   :  { %4041 = vmatpush3.bf16.msra.mxu1 %v1874_v35 }
 0x817   :  { %1877 = vrot.lane.b32.xlu0 %v5288_v13, %s4751_s1  ;;  %v1813_v13 = vmul.f32 1.442695, %v1799_v31 }
 0x81b   :  { %1879 = vrot.lane.b32.xlu0 %v5285_v46, %s4751_s1 }
 0x825   :  { %v1783_v4 = vpop.xlane.xlu1 %1782 }
 0x826   :  { %v1797_v52 = vsub.f32 %v5410_v62, %v1783_v4 }
 0x828   :  { %v1809_v47 = vmul.f32 1.442695, %v1797_v52 }
 0x829   :  { %v1792_v41 = vpop.xlane.xlu1 %1791 }
 0x82a   :  { %4428 = vpow2.f32 %v1809_v47  ;;  %v1800_v58 = vsub.f32 %v5418_v40, %v1792_v41 }
 0x82b   :  { %4430 = vpow2.f32 %v1488_v56 }
 0x82c   :  { %v1815_v27 = vmul.f32 1.442695, %v1800_v58 }
 0x82d   :  { %v1461_v46 = vpop.xlane.xlu1 %1460 }
 0x82e   :  { %4432 = vpow2.f32 %v1815_v27  ;;  %v1481_v41 = vsub.f32 %v5425_v10, %v1461_v46 }
 0x82f   :  { %4434 = vpow2.f32 %v1492_v28 }
 0x830   :  { %4436 = vpow2.f32 %v1813_v13  ;;  %v1490_v28 = vmul.f32 1.442695, %v1481_v41 }
 0x831   :  { %v1467_v62 = vpop.xlane.xlu1 %1466 }
 0x832   :  { %v1483_v60 = vsub.f32 %v5431_v23, %v1467_v62 }
 0x834   :  { %v5491_v32 = vpop.eup %4428  ;;  %v1494_v11 = vmul.f32 1.442695, %v1483_v60 }
 0x835   :  { %v1829_v40 = vsel %vm455_vm5, %v5491_v32, 0.0  ;;  %v5495_v44 = vpop.eup %4430  ;;  %v1473_v58 = vpop.xlane.xlu1 %1472 }
 0x836   :  { %4438 = vpow2.f32 %v1494_v11  ;;  %1830 = vadd.xlane.f32.xlu1 %v1829_v40  ;;  %v1504_v23 = vsel %vm455_vm5, %v5495_v44, 0.0  ;;  %v1485_v13 = vsub.f32 %v5438_v15, %v1473_v58 }
 0x837   :  { %4440 = vpow2.f32 %v1496_v14 }
 0x838   :  { %v5497_v19 = vpop.eup %4432  ;;  %v1498_v27 = vmul.f32 1.442695, %v1485_v13 }
 0x839   :  { %v5499_v9 = vpop.eup %4434  ;;  %v1838_v29 = vsel %vm455_vm5, %v5497_v19, 0.0 }
 0x83a   :  { %v5505_v5 = vpop.eup %4436  ;;  %1839 = vadd.xlane.f32.xlu1 %v1838_v29  ;;  %1505 = vadd.xlane.f32.xlu0 %v1504_v23  ;;  %v1510_v30 = vsel %vm455_vm5, %v5499_v9, 0.0 }
 0x83b   :  { %v1835_v21 = vsel %vm455_vm5, %v5505_v5, 0.0 }
 0x83e   :  { %1511 = vadd.xlane.f32.xlu0 %v1510_v30  ;;  %1836 = vadd.xlane.f32.xlu1 %v1835_v21 }
 0x83f   :  { %v1476_v35 = vpop.xlane.xlu0 %1475 }
 0x840   :  { %v5511_v54 = vpop.eup %4438  ;;  %v1486_v4 = vsub.f32 %v5444_v20, %v1476_v35 }
 0x841   :  { %v1513_v52 = vsel %vm455_vm5, %v5511_v54, 0.0  ;;  %v5516_v63 = vpop.eup %4440 }
 0x842   :  { %v1500_v56 = vmul.f32 1.442695, %v1486_v4  ;;  %1514 = vadd.xlane.f32.xlu0 %v1513_v52  ;;  %v1516_v31 = vsel %vm455_vm5, %v5516_v63, 0.0 }
 0x844   :  { %4442 = vpow2.f32 %v1500_v56 }
 0x845   :  { %4444 = vpow2.f32 %v1490_v28 }
 0x846   :  { %1517 = vadd.xlane.f32.xlu0 %v1516_v31  ;;  %4446 = vpow2.f32 %v1498_v27 }
 0x84e   :  { %v5520_v47 = vpop.eup %4442 }
 0x84f   :  { %1875 = vrot.lane.b32.xlu1 %v5270_v2, %s4751_s1  ;;  %v1522_v20 = vsel %vm455_vm5, %v5520_v47, 0.0  ;;  %v5528_v18 = vpop.eup %4444 }
 0x850   :  { %1523 = vadd.xlane.f32.xlu0 %v1522_v20  ;;  %v1507_v62 = vsel %vm455_vm5, %v5528_v18, 0.0  ;;  %v5532_v60 = vpop.eup %4446 }
 0x851   :  { %v1519_v2 = vsel %vm455_vm5, %v5532_v60, 0.0 }
 0x873   :  { %1508 = vadd.xlane.f32.xlu1 %v1507_v62 }
 0x877   :  { %1520 = vadd.xlane.f32.xlu1 %v1519_v2 }
 0x886   :  { %v1819_v46 = vpop.xlane.xlu0 %1818 }
 0x887   :  { %4448 = vrcp.f32 %v1819_v46 }
 0x889   :  { %v1479_v10 = vpop.xlane.xlu1 %1478 }
 0x88a   :  { %v1487_v14 = vsub.f32 %v5459_v1, %v1479_v10 }
 0x88c   :  { %v1502_v15 = vmul.f32 1.442695, %v1487_v14 }
 0x88d   :  { %v1822_v11 = vpop.xlane.xlu1 %1821 }
 0x88e   :  { %4450 = vpow2.f32 %v1502_v15  ;;  %v1825_v4 = vpop.xlane.xlu0 %1824 }
 0x88f   :  { %4452 = vrcp.f32 %v1822_v11 }
 0x891   :  { %v4449_v40 = vpop.eup %4448  ;;  %v1828_v52 = vpop.xlane.xlu1 %1827 }
 0x892   :  { %v1849_v21 = vmul.f32 %v4449_v40, %v5453_v25  ;;  %v1878_v56 = vpop.permute.xlu0 %1877  ;;  %4454 = vrcp.f32 %v1828_v52 }
 0x896   :  { %v1880_v20 = vpop.permute.xlu0 %1879 }
 0x898   :  { %v5537_v29 = vpop.eup %4450  ;;  %v1834_v31 = vpop.xlane.xlu1 %1833 }
 0x899   :  { %v4453_v23 = vpop.eup %4452  ;;  %v1525_v30 = vsel %vm455_vm5, %v5537_v29, 0.0 }
 0x89a   :  { %1526 = vadd.xlane.f32.xlu1 %v1525_v30  ;;  %v5543_v35 = vmul.f32 %v4453_v23, %v5464_v8 }
 0x89c   :  { %v1865_v1 = vpack.c.bf16 %v5543_v35, %v1849_v21  ;;  %v4455_v62 = vpop.eup %4454 }
 0x89d   :  { %v1852_v40 = vmul.f32 %v4455_v62, %v5470_v0 }
 0x89e   :  { %4048 = vmatprep.mubr.msk.bf16.mxu1 %vm455_vm5, %v1865_v1 }
 0x8c3   :  { %v1831_v41 = vpop.xlane.xlu1 %1830 }
 0x8c7   :  { %v1840_v58 = vpop.xlane.xlu1 %1839  ;;  %v1506_v28 = vpop.xlane.xlu0 %1505 }
 0x8c8   :  { %4456 = vrcp.f32 %v1506_v28 }
 0x8c9   :  { %4458 = vrcp.f32 %v1831_v41 }
 0x8ca   :  { %4460 = vrcp.f32 %v1825_v4 }
 0x8cb   :  { %v1837_v25 = vpop.xlane.xlu1 %1836  ;;  %v1512_v13 = vpop.xlane.xlu0 %1511  ;;  %4462 = vrcp.f32 %v1834_v31  ;;  %v1052_v31 = vmul.f32 0.16666667, %v5182_v26 }
 0x8cc   :  { %4464 = vrcp.f32 %v1512_v13 }
 0x8cf   :  { %v1876_v8 = vpop.permute.xlu1 %1875  ;;  %v1515_v27 = vpop.xlane.xlu0 %1514 }
 0x8d0   :  { %4466 = vrcp.f32 %v1515_v27  ;;  %4042 = vmatprep.subr.bf16.mxu1 %v1876_v8 }
 0x8d1   :  { %4468 = vrcp.f32 %v1837_v25  ;;  %4043 = vmatpush3.bf16.msra.mxu1 %v1876_v8 }
 0x8d2   :  { %4044 = vmatprep.subr.bf16.mxu1 %v1878_v56  ;;  %v4457_v2 = vpop.eup %4456  ;;  %4470 = vrcp.f32 %v1840_v58 }
 0x8d3   :  { %v1518_v10 = vpop.xlane.xlu0 %1517  ;;  %v4459_v46 = vpop.eup %4458  ;;  %v5548_v14 = vmul.f32 %v4457_v2, %v5495_v44 }
 0x8d4   :  { %4472 = vrcp.f32 %v1518_v10  ;;  %v4461_v15 = vpop.eup %4460  ;;  %v1853_v1 = vmul.f32 %v4459_v46, %v5491_v32 }
 0x8d5   :  { %4045 = vmatpush3.bf16.msra.mxu1 %v1878_v56  ;;  %v4463_v11 = vpop.eup %4462  ;;  %v1857_v23 = vadd.f32 %v1849_v21, %v5548_v14  ;;  %v1851_v4 = vmul.f32 %v4461_v15, %v5466_v51  ;;  %v1054_v51 = vmul.f32 0.16666667, %v5191_v37 }
 0x8d6   :  { %4046 = vmatprep.subr.bf16.mxu1 %v1880_v20  ;;  %v4465_v30 = vpop.eup %4464  ;;  %v1854_v44 = vmul.f32 %v4463_v11, %v5476_v22  ;;  %v1056_v11 = vmul.f32 0.16666667, %v5206_v12 }
 0x8d7   :  { %v1538_v52 = vmul.f32 %v4465_v30, %v5499_v9  ;;  %v2050_v41 = vmul.f32 0.16666667, %v1857_v23  ;;  %v1866_v58 = vpack.c.bf16 %v1852_v40, %v1851_v4 }
 0x8d8   :  { %v1867_v13 = vpack.c.bf16 %v1854_v44, %v1853_v1 }
 0x8d9   :  { %4047 = vmatpush3.bf16.msra.mxu1 %v1880_v20  ;;  %v5557_v28 = vadd.f32 %v2050_v41, %v1052_v31  ;;  %v1859_v0 = vadd.f32 %v1851_v4, %v1538_v52 }
 0x8da   :  { %v4467_v56 = vpop.eup %4466 }
 0x8db   :  { %v4469_v25 = vpop.eup %4468  ;;  %v1539_v21 = vmul.f32 %v4467_v56, %v5511_v54  ;;  %v2052_v32 = vmul.f32 0.16666667, %v1859_v0  ;;  %v1055_v54 = vmul.f32 0.16666667, %v5197_v50  ;;  %v859_v56 = vadd.f32 %v5176_v33, %v5214_v61 }
 0x8dc   :  { %4049 = vmatmul.mubr.msk.bf16.vlgmr.msra.gmra.mrb[12].mxu1 %vm455_vm5, %v1866_v58  ;;  %v4471_v9 = vpop.eup %4470  ;;  %v1855_v8 = vmul.f32 %v4469_v25, %v5505_v5 }
 0x8dd   :  { %4052 = vmatprep.mubr.msk.bf16.mxu1 %vm455_vm5, %v1867_v13  ;;  %v1524_v26 = vpop.xlane.xlu0 %1523  ;;  %v1860_v20 = vadd.f32 %v1852_v40, %v1539_v21  ;;  %v5564_v27 = vadd.f32 %v2052_v32, %v1054_v51  ;;  %v1856_v10 = vmul.f32 %v4471_v9, %v5497_v19  ;;  %v1053_v25 = vmul.f32 0.16666667, %v859_v56 }
 0x8de   :  { %v4473_v22 = vpop.eup %4472  ;;  %4474 = vrcp.f32 %v1524_v26  ;;  %v863_v13 = vadd.f32 %v5188_v36, %v5219_v38  ;;  %v865_v38 = vadd.f32 %v5204_v53, %v5228_v49 }
 0x8df   :  { %v1540_v62 = vmul.f32 %v4473_v22, %v5516_v63  ;;  %v2053_v2 = vmul.f32 0.16666667, %v1860_v20  ;;  %v1868_v15 = vpack.c.bf16 %v1856_v10, %v1855_v8  ;;  %v864_v63 = vadd.f32 %v5200_v43, %v5225_v24 }
 0x8e0   :  { %v1059_v20 = vmul.f32 0.16666667, %v865_v38 }
 0x8e1   :  { %v1861_v37 = vadd.f32 %v1853_v1, %v1540_v62  ;;  %v5569_v46 = vadd.f32 %v2053_v2, %v1055_v54  ;;  %v1058_v4 = vmul.f32 0.16666667, %v864_v63 }
 0x8e3   :  { %v2054_v40 = vmul.f32 0.16666667, %v1861_v37 }
 0x8e4   :  { %4053 = vmatmul.mubr.msk.bf16.gmra.mrb[16].mxu1 %vm455_vm5, %v1868_v15 }
 0x8e5   :  { %v5573_v23 = vadd.f32 %v2054_v40, %v1056_v11 }
 0x8e8   :  { %v4475_v5 = vpop.eup %4474 }
 0x8e9   :  { %v1542_v50 = vmul.f32 %v4475_v5, %v5520_v47  ;;  %v1553_v47 = vpack.c.bf16 %v1539_v21, %v1538_v52 }
 0x8eb   :  { %v1863_v30 = vadd.f32 %v1855_v8, %v1542_v50 }
 0x8ed   :  { %v2056_v19 = vmul.f32 0.16666667, %v1863_v30 }
 0x8ef   :  { %v5578_v1 = vadd.f32 %v2056_v19, %v1058_v4 }
 0x900   :  { %v1509_v31 = vpop.xlane.xlu1 %1508 }
 0x901   :  { %4476 = vrcp.f32 %v1509_v31 }
 0x904   :  { %v1521_v41 = vpop.xlane.xlu1 %1520 }
 0x905   :  { %4478 = vrcp.f32 %v1521_v41 }
 0x90b   :  { %v4477_v12 = vpop.eup %4476 }
 0x90c   :  { %v1537_v58 = vmul.f32 %v4477_v12, %v5528_v18 }
 0x90e   :  { %v1552_v0 = vpack.c.bf16 %v1537_v58, %v5548_v14  ;;  %v1858_v43 = vadd.f32 %v5543_v35, %v1537_v58  ;;  %v1057_v35 = vmul.f32 0.16666667, %v863_v13 }
 0x90f   :  { %v4479_v24 = vpop.eup %4478 }
 0x910   :  { %4032 = vmatprep.mubr.msk.bf16.mxu0 %vm455_vm5, %v1552_v0  ;;  %v2051_v51 = vmul.f32 0.16666667, %v1858_v43  ;;  %v1541_v32 = vmul.f32 %v4479_v24, %v5532_v60  ;;  %v4319_v0 = vld [vmem:[%s6068_s8] ss:$8 sps:$4 sm:$0xff]   ;;  %v4321_v43 = vld [vmem:[%s6068_s8 + $0x4] ss:$8 sps:$4 sm:$0xff]  }
 0x911   :  { %4033 = vmatmul.mubr.msk.bf16.vlgmr.msra.gmra.mrb[40].mxu0 %vm455_vm5, %v1553_v47  ;;  %2102 = vmatprep.subr.bf16.mxu0 %v4321_v43 }
 0x912   :  { %v5590_v33 = vadd.f32 %v2051_v51, %v1053_v25  ;;  %v1554_v61 = vpack.c.bf16 %v1541_v32, %v1540_v62  ;;  %v1862_v18 = vadd.f32 %v1854_v44, %v1541_v32  ;;  %2103 = vmatpush1.bf16.msra.mxu0 %v4319_v0 }
 0x914   :  { %4036 = vmatprep.mubr.msk.bf16.mxu0 %vm455_vm5, %v1554_v61  ;;  %v2055_v14 = vmul.f32 0.16666667, %v1862_v18 }
 0x916   :  { %v5593_v52 = vadd.f32 %v2055_v14, %v1057_v35 }
 0x927   :  { %v1527_v21 = vpop.xlane.xlu1 %1526 }
 0x928   :  { %4480 = vrcp.f32 %v1527_v21 }
 0x932   :  { %v4481_v36 = vpop.eup %4480 }
 0x933   :  { %v1543_v60 = vmul.f32 %v4481_v36, %v5537_v29 }
 0x935   :  { %v1555_v9 = vpack.c.bf16 %v1543_v60, %v1542_v50  ;;  %v1864_v26 = vadd.f32 %v1856_v10, %v1543_v60 }
 0x937   :  { %4037 = vmatmul.mubr.msk.bf16.gmra.mrb[44].mxu0 %vm455_vm5, %v1555_v9  ;;  %v2057_v44 = vmul.f32 0.16666667, %v1864_v26 }
 0x938   :  { %2134 = vmatprep.mubr.bf16.mxu0 %v4750_v17 }
 0x939   :  { %v5600_v22 = vadd.f32 %v2057_v44, %v1059_v20 }
 0x9af   :  { %v4050_v8 = vpop.f32.mrb[12].mxu1 }
 0x9b0   :  { %v1972_v62 = vmin.f32 %v4050_v8, 0.0  ;;  %v1931_v54 = vpop.f32.mrb[13].mxu1  ;;  %vm1964_vm4 = vcmp.gt.f32.partialorder %v4050_v8, 0.0 }
 0x9b1   :  { %v1970_v2 = vmin.f32 %v1931_v54, 0.0  ;;  %v4051_v37 = vpop.f32.mrb[14].mxu1  ;;  %vm1962_vm9 = vcmp.gt.f32.partialorder %v1931_v54, 0.0 }
 0x9b2   :  { %v1982_v15 = vmul.f32 1.442695, %v1972_v62  ;;  %v1973_v11 = vmin.f32 %v4051_v37, 0.0  ;;  %v1934_v53 = vpop.f32.mrb[15].mxu1  ;;  %vm1965_vm2 = vcmp.gt.f32.partialorder %v4051_v37, 0.0 }
 0x9b3   :  { %v1978_v49 = vmul.f32 1.442695, %v1970_v2  ;;  %v1971_v29 = vmin.f32 %v1934_v53, 0.0  ;;  %vm1963_vm12 = vcmp.gt.f32.partialorder %v1934_v53, 0.0 }
 0x9b4   :  { %4482 = vpow2.f32 %v1982_v15  ;;  %v1984_v10 = vmul.f32 1.442695, %v1973_v11 }
 0x9b5   :  { %4484 = vpow2.f32 %v1978_v49  ;;  %v1980_v40 = vmul.f32 1.442695, %v1971_v29 }
 0x9b6   :  { %4486 = vpow2.f32 %v1984_v10 }
 0x9b7   :  { %4488 = vpow2.f32 %v1980_v40  ;;  %v4054_v5 = vpop.f32.mrb[16].mxu1 }
 0x9b8   :  { %v1976_v63 = vmin.f32 %v4054_v5, 0.0  ;;  %v1947_v50 = vpop.f32.mrb[17].mxu1 }
 0x9b9   :  { %v1974_v30 = vmin.f32 %v1947_v50, 0.0  ;;  %v4055_v4 = vpop.f32.mrb[18].mxu1  ;;  %vm1966_vm1 = vcmp.gt.f32.partialorder %v1947_v50, 0.0 }
 0x9ba   :  { %v1990_v19 = vmul.f32 1.442695, %v1976_v63  ;;  %v1977_v31 = vmin.f32 %v4055_v4, 0.0  ;;  %v1950_v41 = vpop.f32.mrb[19].mxu1 }
 0x9bb   :  { %v1986_v12 = vmul.f32 1.442695, %v1974_v30  ;;  %v1975_v56 = vmin.f32 %v1950_v41, 0.0 }
 0x9bc   :  { %4490 = vpow2.f32 %v1990_v19  ;;  %v1992_v58 = vmul.f32 1.442695, %v1977_v31 }
 0x9bd   :  { %4492 = vpow2.f32 %v1986_v12  ;;  %v1988_v24 = vmul.f32 1.442695, %v1975_v56 }
 0x9be   :  { %v4483_v47 = vpop.eup %4482  ;;  %4494 = vpow2.f32 %v1992_v58 }
 0x9bf   :  { %v4485_v25 = vpop.eup %4484  ;;  %4496 = vpow2.f32 %v1988_v24  ;;  %v3718_v14 = vadd.f32 -1.0, %v4483_v47 }
 0x9c0   :  { %v4487_v13 = vpop.eup %4486  ;;  %v3716_v51 = vadd.f32 -1.0, %v4485_v25 }
 0x9c1   :  { %v4489_v32 = vpop.eup %4488  ;;  %v3719_v61 = vadd.f32 -1.0, %v4487_v13  ;;  %v2004_v20 = vsel %vm1964_vm4, %v4050_v8, %v3718_v14  ;;  %v5619_v8 = vld.sshfl [vmem:[%s6070_s10] sm:$0x33 pattern:$0x76325410] }
 0x9c2   :  { %v3717_v18 = vadd.f32 -1.0, %v4489_v32  ;;  %v2002_v35 = vsel %vm1962_vm9, %v1931_v54, %v3716_v51  ;;  %vm1967_vm9 = vcmp.gt.f32.partialorder %v1950_v41, 0.0  ;;  %v2266_v49 = vcombine.high %v5619_v8, %v5619_v8 }
 0x9c3   :  { %2018 = vrot.lane.b32.xlu0 %v2002_v35, %s4752_s22  ;;  %v2005_v38 = vsel %vm1965_vm2, %v4051_v37, %v3719_v61  ;;  %vm1969_vm2 = vcmp.gt.f32.partialorder %v4055_v4, 0.0 }
 0x9c4   :  { %v2003_v21 = vsel %vm1963_vm12, %v1934_v53, %v3717_v18  ;;  %vm1968_vm12 = vcmp.gt.f32.partialorder %v4054_v5, 0.0  ;;  %2269 = vmatprep.subr.mxu0 %v2266_v49 }
 0x9c5   :  { %2020 = vrot.lane.b32.xlu1 %v2003_v21, %s4752_s22 }
 0x9c6   :  { %v4491_v36 = vpop.eup %4490 }
 0x9c7   :  { %v4493_v60 = vpop.eup %4492  ;;  %2024 = vrot.lane.b32.xlu0 %v2005_v38, %s4752_s22  ;;  %v3722_v54 = vadd.f32 -1.0, %v4491_v36 }
 0x9c8   :  { %v4495_v9 = vpop.eup %4494  ;;  %v3720_v26 = vadd.f32 -1.0, %v4493_v60 }
 0x9c9   :  { %v4497_v44 = vpop.eup %4496  ;;  %2022 = vrot.lane.b32.xlu1 %v2004_v20, %s4752_s22  ;;  %v3723_v2 = vadd.f32 -1.0, %v4495_v9  ;;  %v2008_v37 = vsel %vm1968_vm12, %v4054_v5, %v3722_v54 }
 0x9ca   :  { %v3721_v62 = vadd.f32 -1.0, %v4497_v44  ;;  %v2006_v15 = vsel %vm1966_vm1, %v1947_v50, %v3720_v26 }
 0x9cb   :  { %v2009_v53 = vsel %vm1969_vm2, %v4055_v4, %v3723_v2 }
 0x9cc   :  { %v2007_v11 = vsel %vm1967_vm9, %v1950_v41, %v3721_v62 }
 0x9cd   :  { %2026 = vrot.lane.b32.xlu1 %v2006_v15, %s4752_s22  ;;  %2028 = vrot.lane.b32.xlu0 %v2007_v11, %s4752_s22 }
 0x9d1   :  { %2030 = vrot.lane.b32.xlu1 %v2008_v37, %s4752_s22  ;;  %2032 = vrot.lane.b32.xlu0 %v2009_v53, %s4752_s22 }
 0x9e4   :  { %v4034_v29 = vpop.f32.mrb[40].mxu0 }
 0x9e5   :  { %v1647_v10 = vmin.f32 %v4034_v29, 0.0  ;;  %v1606_v40 = vpop.f32.mrb[41].mxu0  ;;  %vm1639_vm4 = vcmp.gt.f32.partialorder %v4034_v29, 0.0 }
 0x9e6   :  { %v1645_v63 = vmin.f32 %v1606_v40, 0.0  ;;  %v4035_v50 = vpop.f32.mrb[42].mxu0  ;;  %vm1637_vm1 = vcmp.gt.f32.partialorder %v1606_v40, 0.0 }
 0x9e7   :  { %v1657_v5 = vmul.f32 1.442695, %v1647_v10  ;;  %v1648_v30 = vmin.f32 %v4035_v50, 0.0  ;;  %v1609_v4 = vpop.f32.mrb[43].mxu0  ;;  %vm1640_vm9 = vcmp.gt.f32.partialorder %v4035_v50, 0.0 }
 0x9e8   :  { %v1653_v19 = vmul.f32 1.442695, %v1645_v63  ;;  %v1646_v31 = vmin.f32 %v1609_v4, 0.0  ;;  %vm1638_vm12 = vcmp.gt.f32.partialorder %v1609_v4, 0.0 }
 0x9e9   :  { %4498 = vpow2.f32 %v1657_v5  ;;  %v1659_v41 = vmul.f32 1.442695, %v1648_v30 }
 0x9ea   :  { %4500 = vpow2.f32 %v1653_v19  ;;  %v1655_v12 = vmul.f32 1.442695, %v1646_v31 }
 0x9eb   :  { %4502 = vpow2.f32 %v1659_v41 }
 0x9ec   :  { %4504 = vpow2.f32 %v1655_v12 }
 0x9f3   :  { %v4499_v56 = vpop.eup %4498 }
 0x9f4   :  { %v4501_v58 = vpop.eup %4500  ;;  %v3706_v0 = vadd.f32 -1.0, %v4499_v56 }
 0x9f5   :  { %v4503_v43 = vpop.eup %4502  ;;  %v3704_v24 = vadd.f32 -1.0, %v4501_v58 }
 0x9f6   :  { %v4505_v47 = vpop.eup %4504  ;;  %v1679_v25 = vsel %vm1639_vm4, %v4034_v29, %v3706_v0  ;;  %v3707_v13 = vadd.f32 -1.0, %v4503_v43 }
 0x9f7   :  { %1687 = vst.msk [vmem:[#allocation2 + $0x10] sm:$0xff] %vm685_vm14, %v1679_v25  ;;  %v1677_v51 = vsel %vm1637_vm1, %v1606_v40, %v3704_v24  ;;  %v3705_v32 = vadd.f32 -1.0, %v4505_v47 }
 0x9f8   :  { %1685 = vst.msk [vmem:[#allocation2] sm:$0xff] %vm685_vm14, %v1677_v51  ;;  %v1680_v61 = vsel %vm1640_vm9, %v4035_v50, %v3707_v13 }
 0x9f9   :  { %1688 = vst.msk [vmem:[#allocation2 + $0x18] sm:$0xff] %vm685_vm14, %v1680_v61  ;;  %v1678_v18 = vsel %vm1638_vm12, %v1609_v4, %v3705_v32 }
 0x9fa   :  { %1686 = vst.msk [vmem:[#allocation2 + $0x8] sm:$0xff] %vm685_vm14, %v1678_v18 }
 0xa0a   :  { %v4038_v35 = vpop.f32.mrb[44].mxu0 }
 0xa0b   :  { %v1651_v14 = vmin.f32 %v4038_v35, 0.0  ;;  %v1622_v21 = vpop.f32.mrb[45].mxu0  ;;  %vm1643_vm2 = vcmp.gt.f32.partialorder %v4038_v35, 0.0 }
 0xa0c   :  { %v1649_v36 = vmin.f32 %v1622_v21, 0.0  ;;  %v4039_v38 = vpop.f32.mrb[46].mxu0  ;;  %vm1641_vm4 = vcmp.gt.f32.partialorder %v1622_v21, 0.0 }
 0xa0d   :  { %v1665_v60 = vmul.f32 1.442695, %v1651_v14  ;;  %v1652_v9 = vmin.f32 %v4039_v38, 0.0  ;;  %v1625_v26 = vpop.f32.mrb[47].mxu0  ;;  %vm1644_vm1 = vcmp.gt.f32.partialorder %v4039_v38, 0.0 }
 0xa0e   :  { %v1661_v20 = vmul.f32 1.442695, %v1649_v36  ;;  %v1650_v44 = vmin.f32 %v1625_v26, 0.0  ;;  %vm1642_vm9 = vcmp.gt.f32.partialorder %v1625_v26, 0.0 }
 0xa0f   :  { %4506 = vpow2.f32 %v1665_v60  ;;  %v1667_v62 = vmul.f32 1.442695, %v1652_v9  ;;  %v3730_v14 = vld.sshfl [vmem:[%s6069_s9] sm:$0x33 pattern:$0x76325410] }
 0xa10   :  { %4508 = vpow2.f32 %v1661_v20  ;;  %v1663_v54 = vmul.f32 1.442695, %v1650_v44  ;;  %s4753_s9 = smov [#allocation3]  }
 0xa11   :  { %4510 = vpow2.f32 %v1667_v62  ;;  %s3619_s29 = sshll.u32 %s4753_s9, 4  ;;  %s3620_s29 = int_to_ptr.vmem [resolvable:$true] %s3619_s29 }
 0xa12   :  { %4512 = vpow2.f32 %v1663_v54  ;;  %s4722_s30 = scalar_lea.vmem %s3620_s29, 1024  ;;  %p4727_p1 = scmp.lt.s32.totalorder %s3620_s29, %s3620_s29 }
 0xa13   :  { %p4723_p0 = scmp.ne.s32.totalorder %s3620_s29, %s4722_s30  ;;  %p4728_p2 = scmp.lt.s32.totalorder %s4722_s30, %s4722_s30 }
 0xa15   :  { %p4729_p3 = por %p4728_p2, %p4727_p1 }
 0xa17   :  { %p4730_p4 = pnand %p4729_p3, %p4723_p0 }
 0xa19   :  { %v4507_v2 = vpop.eup %4506 }
 0xa1a   :  { %v4509_v15 = vpop.eup %4508  ;;  %v3710_v11 = vadd.f32 -1.0, %v4507_v2 }
 0xa1b   :  { %v4511_v37 = vpop.eup %4510  ;;  %v3708_v53 = vadd.f32 -1.0, %v4509_v15 }
 0xa1c   :  { %v4513_v49 = vpop.eup %4512  ;;  %v1683_v29 = vsel %vm1643_vm2, %v4038_v35, %v3710_v11  ;;  %v3711_v10 = vadd.f32 -1.0, %v4511_v37 }
 0xa1d   :  { %1691 = vst.msk [vmem:[#allocation2 + $0x30] sm:$0xff] %vm685_vm14, %v1683_v29  ;;  %v1681_v40 = vsel %vm1641_vm4, %v1622_v21, %v3708_v53  ;;  %v3709_v63 = vadd.f32 -1.0, %v4513_v49  ;;  %v2184_v21 = vcombine.high %v3730_v14, %v3730_v14 }
 0xa1e   :  { %1689 = vst.msk [vmem:[#allocation2 + $0x20] sm:$0xff] %vm685_vm14, %v1681_v40  ;;  %v1684_v50 = vsel %vm1644_vm1, %v4039_v38, %v3711_v10 }
 0xa1f   :  { %1692 = vst.msk [vmem:[#allocation2 + $0x38] sm:$0xff] %vm685_vm14, %v1684_v50  ;;  %v1682_v5 = vsel %vm1642_vm9, %v1625_v26, %v3709_v63  ;;  %2251 = vmatprep.mubr.f32.mxu1 %v2184_v21 }
 0xa20   :  { %1690 = vst.msk [vmem:[#allocation2 + $0x28] sm:$0xff] %vm685_vm14, %v1682_v5 }
 0xa35   :  { %v2019_v30 = vpop.permute.xlu0 %2018 }
 0xa36   :  { %2042 = vst.msk [vmem:[#allocation2] sm:$0xff] %vm1043_vm15, %v2019_v30 }
 0xa37   :  { %v2021_v4 = vpop.permute.xlu1 %2020 }
 0xa38   :  { %2043 = vst.msk [vmem:[#allocation2 + $0x8] sm:$0xff] %vm1043_vm15, %v2021_v4 }
 0xa39   :  { %v2025_v19 = vpop.permute.xlu0 %2024 }
 0xa3a   :  { %2045 = vst.msk [vmem:[#allocation2 + $0x18] sm:$0xff] %vm1043_vm15, %v2025_v19 }
 0xa3b   :  { %v2023_v31 = vpop.permute.xlu1 %2022 }
 0xa3c   :  { %2044 = vst.msk [vmem:[#allocation2 + $0x10] sm:$0xff] %vm1043_vm15, %v2023_v31 }
 0xa3d   :  { %v2066_v56 = vld [vmem:[#allocation2] sm:$0xff] }
 0xa3f   :  { %v2027_v41 = vpop.permute.xlu1 %2026  ;;  %v2029_v12 = vpop.permute.xlu0 %2028  ;;  %v2067_v58 = vld [vmem:[#allocation2 + $0x8] sm:$0xff] }
 0xa40   :  { %2046 = vst.msk [vmem:[#allocation2 + $0x20] sm:$0xff] %vm1043_vm15, %v2027_v41  ;;  %2047 = vst.msk [vmem:[#allocation2 + $0x28] sm:$0xff] %vm1043_vm15, %v2029_v12  ;;  %v2074_v0 = vpack.c.bf16 %v2067_v58, %v2066_v56 }
 0xa41   :  { %v2069_v25 = vld [vmem:[#allocation2 + $0x18] sm:$0xff] }
 0xa42   :  { %3726 = vmatmul.mubr.msk.bf16.vlgmr.msra.gmra.mrb[48].mxu0 %vm86_vm0, %v2074_v0 }
 0xa43   :  { %v2031_v43 = vpop.permute.xlu1 %2030  ;;  %v2033_v24 = vpop.permute.xlu0 %2032  ;;  %2144 = vmatprep.mubr.bf16.mxu0 %v4750_v17  ;;  %2270 = vmatpush1.xpose.msra.mxu0 %v5619_v8  ;;  %v2068_v47 = vld [vmem:[#allocation2 + $0x10] sm:$0xff] }
 0xa44   :  { %2048 = vst.msk [vmem:[#allocation2 + $0x30] sm:$0xff] %vm1043_vm15, %v2031_v43  ;;  %2049 = vst.msk [vmem:[#allocation2 + $0x38] sm:$0xff] %vm1043_vm15, %v2033_v24  ;;  %v2075_v13 = vpack.c.bf16 %v2069_v25, %v2068_v47 }
 0xa47   :  { %v2070_v51 = vld [vmem:[#allocation2 + $0x20] sm:$0xff]  ;;  %v2071_v32 = vld [vmem:[#allocation2 + $0x28] sm:$0xff] }
 0xa48   :  { %v2076_v61 = vpack.c.bf16 %v2071_v32, %v2070_v51 }
 0xa4a   :  { %3727 = vmatmul.mubr.msk.bf16.gmra.mrb[52].mxu0 %vm86_vm0, %v2075_v13 }
 0xa4b   :  { %2154 = vmatprep.mubr.bf16.mxu0 %v4750_v17  ;;  %v2072_v18 = vld [vmem:[#allocation2 + $0x30] sm:$0xff]  ;;  %v2073_v8 = vld [vmem:[#allocation2 + $0x38] sm:$0xff] }
 0xa4c   :  { %v2077_v35 = vpack.c.bf16 %v2073_v8, %v2072_v18 }
 0xa52   :  { %3728 = vmatmul.mubr.msk.bf16.gmra.mrb[56].mxu0 %vm86_vm0, %v2076_v61 }
 0xa53   :  { %2164 = vmatprep.mubr.bf16.mxu0 %v4750_v17 }
 0xa5a   :  { %3729 = vmatmul.mubr.msk.bf16.gmra.mrb[60].mxu0 %vm86_vm0, %v2077_v35 }
 0xb15   :  { %v2136_v36 = vpop.f32.mrb[48].mxu0 }
 0xb16   :  { %v2138_v38 = vpop.f32.mrb[49].mxu0 }
 0xb17   :  { %v2140_v60 = vpop.f32.mrb[50].mxu0  ;;  %2333 = vmatprep.mubr.f32.mxu0 %v2138_v38 }
 0xb18   :  { %v5650_v9 = vpack.c.bf16 %v2140_v60, %v2136_v36  ;;  %v2142_v26 = vpop.f32.mrb[51].mxu0  ;;  %2334 = vmatmul.mubr.f32.vlgmr.msra.gmra.mrb[64].mxu0 %v2136_v36 }
 0xb19   :  { %v4204_v20 = vpack.c.bf16 %v2142_v26, %v2138_v38  ;;  %2338 = vmatprep.mubr.f32.mxu0 %v2142_v26 }
 0xb1b   :  { %4205 = vmatprep.subr.bf16.mxu1 %v4204_v20 }
 0xb1c   :  { %4207 = vmatpush1.bf16.xpose.msra.mxu1 %v5650_v9  ;;  %2339 = vmatmul.mubr.f32.gmra.mrb[66].mxu0 %v2140_v60 }
 0xb1d   :  { %v2146_v44 = vpop.f32.mrb[52].mxu0 }
 0xb1e   :  { %v2148_v62 = vpop.f32.mrb[53].mxu0 }
 0xb1f   :  { %v2150_v54 = vpop.f32.mrb[54].mxu0  ;;  %2343 = vmatprep.mubr.f32.mxu0 %v2148_v62 }
 0xb20   :  { %v5653_v2 = vpack.c.bf16 %v2150_v54, %v2146_v44  ;;  %v2152_v15 = vpop.f32.mrb[55].mxu0  ;;  %2344 = vmatmul.mubr.f32.gmra.mrb[68].mxu0 %v2146_v44 }
 0xb21   :  { %v4208_v11 = vpack.c.bf16 %v2152_v15, %v2148_v62  ;;  %2348 = vmatprep.mubr.f32.mxu0 %v2152_v15 }
 0xb23   :  { %4209 = vmatprep.subr.bf16.mxu1 %v4208_v11 }
 0xb24   :  { %4211 = vmatpush1.bf16.xpose.msra.mxu1 %v5653_v2  ;;  %2349 = vmatmul.mubr.f32.gmra.mrb[70].mxu0 %v2150_v54 }
 0xb25   :  { %v2156_v37 = vpop.f32.mrb[56].mxu0 }
 0xb26   :  { %v2158_v53 = vpop.f32.mrb[57].mxu0 }
 0xb27   :  { %v2160_v49 = vpop.f32.mrb[58].mxu0  ;;  %2353 = vmatprep.mubr.f32.mxu0 %v2158_v53 }
 0xb28   :  { %v5656_v29 = vpack.c.bf16 %v2160_v49, %v2156_v37  ;;  %v2162_v10 = vpop.f32.mrb[59].mxu0  ;;  %2354 = vmatmul.mubr.f32.gmra.mrb[72].mxu0 %v2156_v37 }
 0xb29   :  { %v4212_v40 = vpack.c.bf16 %v2162_v10, %v2158_v53  ;;  %2358 = vmatprep.mubr.f32.mxu0 %v2162_v10 }
 0xb2b   :  { %4213 = vmatprep.subr.bf16.mxu1 %v4212_v40 }
 0xb2c   :  { %4215 = vmatpush1.bf16.xpose.msra.mxu1 %v5656_v29  ;;  %2359 = vmatmul.mubr.f32.gmra.mrb[74].mxu0 %v2160_v49 }
 0xb2d   :  { %v2166_v63 = vpop.f32.mrb[60].mxu0 }
 0xb2e   :  { %v2168_v50 = vpop.f32.mrb[61].mxu0 }
 0xb2f   :  { %v2170_v5 = vpop.f32.mrb[62].mxu0  ;;  %2363 = vmatprep.mubr.f32.mxu0 %v2168_v50 }
 0xb30   :  { %v5659_v30 = vpack.c.bf16 %v2170_v5, %v2166_v63  ;;  %v2172_v4 = vpop.f32.mrb[63].mxu0  ;;  %2364 = vmatmul.mubr.f32.gmra.mrb[76].mxu0 %v2166_v63 }
 0xb31   :  { %v4216_v19 = vpack.c.bf16 %v2172_v4, %v2168_v50  ;;  %2368 = vmatprep.mubr.f32.mxu0 %v2172_v4 }
 0xb33   :  { %4217 = vmatprep.subr.bf16.mxu1 %v4216_v19 }
 0xb34   :  { %4219 = vmatpush1.bf16.xpose.msra.mxu1 %v5659_v30  ;;  %2369 = vmatmul.mubr.f32.gmra.mrb[78].mxu0 %v2170_v5 }
 0xb35   :  { %4056 = vmatprep.subr.bf16.mxu1 %v4204_v20 }
 0xb3b   :  { %2252 = vmatmul.mubr.f32.vlgmr.msra.gmra.mrb[20].mxu1 %v3730_v14 }
 0xb3c   :  { %4057 = vmatpush3.bf16.msra.mxu1 %v4204_v20 }
 0xb3d   :  { %4058 = vmatprep.subr.bf16.mxu1 %v4208_v11 }
 0xb40   :  { %4059 = vmatpush3.bf16.msra.mxu1 %v4208_v11 }
 0xb41   :  { %4060 = vmatprep.subr.bf16.mxu1 %v4212_v40 }
 0xb44   :  { %4061 = vmatpush3.bf16.msra.mxu1 %v4212_v40 }
 0xb45   :  { %4062 = vmatprep.subr.bf16.mxu1 %v4216_v19 }
 0xb48   :  { %4063 = vmatpush3.bf16.msra.mxu1 %v4216_v19 }
 0xb49   :  { %4072 = vmatprep.subr.bf16.mxu1 %v5650_v9 }
 0xbeb   :  { %v2335_v31 = vpop.f32.mrb[64].mxu0 }
 0xbec   :  { %2563 = vperm.xlu1 %4310, %v2335_v31   ;;  %v2337_v41 = vpop.f32.mrb[65].mxu0 }
 0xbef   :  { %v2340_v12 = vpop.f32.mrb[66].mxu0 }
 0xbf0   :  { %2567 = vperm.xlu0 %4311, %v2340_v12   ;;  %v2342_v56 = vpop.f32.mrb[67].mxu0 }
 0xbf3   :  { %v2345_v58 = vpop.f32.mrb[68].mxu0 }
 0xbf4   :  { %4312 = vset.pattern.permute.xlu0 %v4750_v17  ;;  %2571 = vperm.xlu1 %4310, %v2345_v58   ;;  %v2347_v0 = vpop.f32.mrb[69].mxu0 }
 0xbf5   :  { %2376 = vperm.xlu0 %4312, %v2335_v31  }
 0xbf7   :  { %v2350_v43 = vpop.f32.mrb[70].mxu0 }
 0xbf8   :  { %2575 = vperm.xlu1 %4310, %v2350_v43   ;;  %v2352_v24 = vpop.f32.mrb[71].mxu0 }
 0xbf9   :  { %4313 = vset.pattern.permute.xlu0 %v4749_v16 }
 0xbfb   :  { %v2355_v47 = vpop.f32.mrb[72].mxu0 }
 0xbfc   :  { %2579 = vperm.xlu0 %4313, %v2355_v47   ;;  %v2357_v25 = vpop.f32.mrb[73].mxu0 }
 0xbff   :  { %v2360_v13 = vpop.f32.mrb[74].mxu0 }
 0xc00   :  { %2583 = vperm.xlu1 %4310, %v2360_v13   ;;  %v2362_v51 = vpop.f32.mrb[75].mxu0 }
 0xc03   :  { %v2365_v32 = vpop.f32.mrb[76].mxu0 }
 0xc04   :  { %2587 = vperm.xlu0 %4313, %v2365_v32   ;;  %v2367_v61 = vpop.f32.mrb[77].mxu0 }
 0xc07   :  { %v2370_v18 = vpop.f32.mrb[78].mxu0 }
 0xc08   :  { %4315 = vset.pattern.permute.xlu0 %v4750_v17  ;;  %2591 = vperm.xlu1 %4310, %v2370_v18   ;;  %v2372_v8 = vpop.f32.mrb[79].mxu0 }
 0xc09   :  { %2391 = vperm.xlu0 %4315, %v2350_v43  }
 0xc0c   :  { %4314 = vset.pattern.permute.xlu1 %v4750_v17 }
 0xc0d   :  { %2401 = vperm.xlu0 %4315, %v2360_v13   ;;  %2381 = vperm.xlu1 %4314, %v2340_v12  }
 0xc0e   :  { %v2253_v35 = vpop.f32.mrb[20].mxu1 }
 0xc0f   :  { %v2255_v14 = vpop.f32.mrb[21].mxu1  ;;  %v2597_v21 = vrot.slane %v2253_v35, %v4924_v45  ;;  %v5688_v31 = vrot.slane %v2253_v35, %v4951_v7 }
 0xc11   :  { %2411 = vperm.xlu0 %4315, %v2370_v18   ;;  %2386 = vperm.xlu1 %4314, %v2345_v58  }
 0xc15   :  { %2396 = vperm.xlu1 %4314, %v2355_v47   ;;  %4316 = vset.pattern.permute.xlu0 %v4749_v16 }
 0xc19   :  { %2406 = vperm.xlu1 %4314, %v2365_v32  }
 0xc6b   :  { %v2564_v36 = vpop.permute.xlu1 %2563 }
 0xc6c   :  { %v2598_v38 = vadd.f32 %v2597_v21, %v2564_v36 }
 0xc6e   :  { %v2614_v60 = vmul.f32 0.2, %v2598_v38  ;;  %vm2606_vm0 = vcmp.gt.f32.partialorder %v2598_v38, 0.0 }
 0xc6f   :  { %v2568_v26 = vpop.permute.xlu0 %2567 }
 0xc70   :  { %v2599_v20 = vadd.f32 %v2597_v21, %v2568_v26  ;;  %v2622_v44 = vsel %vm2606_vm0, %v2598_v38, %v2614_v60 }
 0xc71   :  { %v5671_v17 = vsel %vm58_vm6, %v2622_v44, -1e+30 }
 0xc72   :  { %v2615_v62 = vmul.f32 0.2, %v2599_v20  ;;  %v2638_v54 = vsel %vm455_vm5, %v5671_v17, -inf  ;;  %vm2607_vm15 = vcmp.gt.f32.partialorder %v2599_v20, 0.0 }
 0xc73   :  { %v2572_v16 = vpop.permute.xlu1 %2571  ;;  %2639 = vmax.xlane.f32.xlu1 %v2638_v54 }
 0xc74   :  { %v2600_v15 = vadd.f32 %v2597_v21, %v2572_v16  ;;  %v2623_v45 = vsel %vm2607_vm15, %v2599_v20, %v2615_v62  ;;  %v2377_v49 = vpop.permute.xlu0 %2376  ;;  %vm6076_vm15 = vcmp.gt.f32.partialorder %v5036_v39, 0.0 }
 0xc75   :  { %v5677_v11 = vsel %vm59_vm3, %v2623_v45, -1e+30  ;;  %v2418_v24 = vadd.f32 %v5688_v31, %v2377_v49 }
 0xc76   :  { %v2616_v37 = vmul.f32 0.2, %v2600_v15  ;;  %v2641_v53 = vsel %vm455_vm5, %v5677_v11, -inf  ;;  %vm2608_vm14 = vcmp.gt.f32.partialorder %v2600_v15, 0.0 }
 0xc77   :  { %v2576_v10 = vpop.permute.xlu1 %2575  ;;  %2642 = vmax.xlane.f32.xlu0 %v2641_v53  ;;  %v2434_v61 = vmul.f32 0.2, %v2418_v24  ;;  %vm2426_vm1 = vcmp.gt.f32.partialorder %v2418_v24, 0.0 }
 0xc78   :  { %v2601_v40 = vadd.f32 %v2597_v21, %v2576_v10  ;;  %v2624_v63 = vsel %vm2608_vm14, %v2600_v15, %v2616_v37 }
 0xc79   :  { %v5683_v50 = vsel %vm60_vm10, %v2624_v63, -1e+30  ;;  %v2442_v44 = vsel %vm2426_vm1, %v2418_v24, %v2434_v61 }
 0xc7a   :  { %v2617_v5 = vmul.f32 0.2, %v2601_v40  ;;  %v2644_v4 = vsel %vm455_vm5, %v5683_v50, -inf  ;;  %vm2609_vm12 = vcmp.gt.f32.partialorder %v2601_v40, 0.0  ;;  %v5718_v45 = vsel %vm58_vm6, %v2442_v44, -1e+30 }
 0xc7b   :  { %v2580_v19 = vpop.permute.xlu0 %2579  ;;  %2645 = vmax.xlane.f32.xlu0 %v2644_v4  ;;  %v2458_v55 = vsel %vm455_vm5, %v5718_v45, -inf }
 0xc7c   :  { %v2602_v41 = vadd.f32 %v2597_v21, %v2580_v19  ;;  %v2625_v12 = vsel %vm2609_vm12, %v2601_v40, %v2617_v5 }
 0xc7d   :  { %v5692_v56 = vsel %vm61_vm8, %v2625_v12, -1e+30 }
 0xc7e   :  { %v2618_v58 = vmul.f32 0.2, %v2602_v41  ;;  %v2647_v0 = vsel %vm455_vm5, %v5692_v56, -inf  ;;  %vm2610_vm2 = vcmp.gt.f32.partialorder %v2602_v41, 0.0 }
 0xc7f   :  { %v2584_v43 = vpop.permute.xlu1 %2583  ;;  %2648 = vmax.xlane.f32.xlu1 %v2647_v0 }
 0xc80   :  { %v2603_v47 = vadd.f32 %v2597_v21, %v2584_v43  ;;  %v2626_v25 = vsel %vm2610_vm2, %v2602_v41, %v2618_v58 }
 0xc81   :  { %v5699_v7 = vsel %vm62_vm11, %v2626_v25, -1e+30 }
 0xc82   :  { %v2619_v13 = vmul.f32 0.2, %v2603_v47  ;;  %v2650_v51 = vsel %vm455_vm5, %v5699_v7, -inf  ;;  %vm2611_vm4 = vcmp.gt.f32.partialorder %v2603_v47, 0.0 }
 0xc83   :  { %v2588_v32 = vpop.permute.xlu0 %2587  ;;  %2651 = vmax.xlane.f32.xlu0 %v2650_v51 }
 0xc84   :  { %v2604_v18 = vadd.f32 %v2597_v21, %v2588_v32  ;;  %v2627_v8 = vsel %vm2611_vm4, %v2603_v47, %v2619_v13 }
 0xc85   :  { %v5705_v35 = vsel %vm63_vm13, %v2627_v8, -1e+30 }
 0xc86   :  { %v2620_v14 = vmul.f32 0.2, %v2604_v18  ;;  %v2653_v36 = vsel %vm455_vm5, %v5705_v35, -inf  ;;  %vm2612_vm9 = vcmp.gt.f32.partialorder %v2604_v18, 0.0 }
 0xc87   :  { %v2592_v38 = vpop.permute.xlu1 %2591  ;;  %2654 = vmax.xlane.f32.xlu1 %v2653_v36 }
 0xc88   :  { %v2605_v60 = vadd.f32 %v2597_v21, %v2592_v38  ;;  %v2392_v26 = vpop.permute.xlu0 %2391  ;;  %v2628_v20 = vsel %vm2612_vm9, %v2604_v18, %v2620_v14 }
 0xc89   :  { %v2421_v62 = vadd.f32 %v5688_v31, %v2392_v26  ;;  %v5712_v54 = vsel %vm64_vm7, %v2628_v20, -1e+30 }
 0xc8a   :  { %v2621_v16 = vmul.f32 0.2, %v2605_v60  ;;  %v2656_v15 = vsel %vm455_vm5, %v5712_v54, -inf  ;;  %vm2613_vm0 = vcmp.gt.f32.partialorder %v2605_v60, 0.0 }
 0xc8b   :  { %2657 = vmax.xlane.f32.xlu0 %v2656_v15  ;;  %v2437_v21 = vmul.f32 0.2, %v2421_v62  ;;  %vm2429_vm14 = vcmp.gt.f32.partialorder %v2421_v62, 0.0 }
 0xc8c   :  { %v2402_v37 = vpop.permute.xlu0 %2401  ;;  %v2382_v53 = vpop.permute.xlu1 %2381  ;;  %v2629_v49 = vsel %vm2613_vm0, %v2605_v60, %v2621_v16 }
 0xc8d   :  { %v2423_v10 = vadd.f32 %v5688_v31, %v2402_v37  ;;  %v2419_v40 = vadd.f32 %v5688_v31, %v2382_v53  ;;  %v5724_v63 = vsel %vm6076_vm15, %v2629_v49, -1e+30  ;;  %v2445_v12 = vsel %vm2429_vm14, %v2421_v62, %v2437_v21 }
 0xc8e   :  { %v2659_v5 = vsel %vm455_vm5, %v5724_v63, -inf  ;;  %v5740_v32 = vsel %vm61_vm8, %v2445_v12, -1e+30 }
 0xc8f   :  { %v2435_v4 = vmul.f32 0.2, %v2419_v40  ;;  %2660 = vmax.xlane.f32.xlu1 %v2659_v5  ;;  %2459 = vmax.xlane.f32.xlu0 %v2458_v55  ;;  %vm2427_vm6 = vcmp.gt.f32.partialorder %v2419_v40, 0.0  ;;  %v2439_v58 = vmul.f32 0.2, %v2423_v10  ;;  %vm2431_vm12 = vcmp.gt.f32.partialorder %v2423_v10, 0.0 }
 0xc90   :  { %v2412_v19 = vpop.permute.xlu0 %2411  ;;  %v2387_v41 = vpop.permute.xlu1 %2386  ;;  %v2467_v38 = vsel %vm455_vm5, %v5740_v32, -inf }
 0xc91   :  { %v2425_v0 = vadd.f32 %v5688_v31, %v2412_v19  ;;  %v2420_v43 = vadd.f32 %v5688_v31, %v2387_v41  ;;  %v2443_v24 = vsel %vm2427_vm6, %v2419_v40, %v2435_v4  ;;  %v2447_v14 = vsel %vm2431_vm12, %v2423_v10, %v2439_v58 }
 0xc92   :  { %v5734_v47 = vsel %vm59_vm3, %v2443_v24, -1e+30  ;;  %v5753_v26 = vsel %vm63_vm13, %v2447_v14, -1e+30 }
 0xc93   :  { %v2436_v25 = vmul.f32 0.2, %v2420_v43  ;;  %v2461_v13 = vsel %vm455_vm5, %v5734_v47, -inf  ;;  %vm2428_vm2 = vcmp.gt.f32.partialorder %v2420_v43, 0.0  ;;  %v2441_v61 = vmul.f32 0.2, %v2425_v0 }
 0xc94   :  { %v2397_v51 = vpop.permute.xlu1 %2396  ;;  %2462 = vmax.xlane.f32.xlu1 %v2461_v13  ;;  %vm2433_vm4 = vcmp.gt.f32.partialorder %v2425_v0, 0.0  ;;  %v2473_v15 = vsel %vm455_vm5, %v5753_v26, -inf }
 0xc95   :  { %v2422_v18 = vadd.f32 %v5688_v31, %v2397_v51  ;;  %v2444_v8 = vsel %vm2428_vm2, %v2420_v43, %v2436_v25  ;;  %v2449_v44 = vsel %vm2433_vm4, %v2425_v0, %v2441_v61 }
 0xc96   :  { %v5745_v48 = vsel %vm60_vm10, %v2444_v8, -1e+30  ;;  %vm6077_vm10 = vmmov %vm6076_vm15 }
 0xc97   :  { %v2438_v36 = vmul.f32 0.2, %v2422_v18  ;;  %v2464_v57 = vsel %vm455_vm5, %v5745_v48, -inf  ;;  %vm2430_vm3 = vcmp.gt.f32.partialorder %v2422_v18, 0.0  ;;  %v5766_v34 = vsel %vm6077_vm10, %v2449_v44, -1e+30 }
 0xc98   :  { %v2407_v60 = vpop.permute.xlu1 %2406  ;;  %2468 = vmax.xlane.f32.xlu1 %v2467_v38  ;;  %2465 = vmax.xlane.f32.xlu0 %v2464_v57  ;;  %v2479_v37 = vsel %vm455_vm5, %v5766_v34, -inf }
 0xc99   :  { %v2424_v20 = vadd.f32 %v5688_v31, %v2407_v60  ;;  %v2446_v3 = vsel %vm2430_vm3, %v2422_v18, %v2438_v36 }
 0xc9a   :  { %v5758_v62 = vsel %vm62_vm11, %v2446_v3, -1e+30 }
 0xc9b   :  { %vm2432_vm8 = vcmp.gt.f32.partialorder %v2424_v20, 0.0  ;;  %v2440_v16 = vmul.f32 0.2, %v2424_v20  ;;  %v2470_v21 = vsel %vm455_vm5, %v5758_v62, -inf }
 0xc9c   :  { %2474 = vmax.xlane.f32.xlu1 %v2473_v15  ;;  %2471 = vmax.xlane.f32.xlu0 %v2470_v21 }
 0xc9d   :  { %v2448_v31 = vsel %vm2432_vm8, %v2424_v20, %v2440_v16 }
 0xc9e   :  { %v5770_v6 = vsel %vm64_vm7, %v2448_v31, -1e+30 }
 0xc9f   :  { %v2476_v53 = vsel %vm455_vm5, %v5770_v6, -inf }
 0xca0   :  { %2480 = vmax.xlane.f32.xlu1 %v2479_v37  ;;  %2477 = vmax.xlane.f32.xlu0 %v2476_v53 }
 0xd00   :  { %v2640_v49 = vpop.xlane.xlu1 %2639 }
 0xd01   :  { %v2662_v10 = vsub.f32 %v5671_v17, %v2640_v49 }
 0xd03   :  { %v2670_v40 = vmul.f32 1.442695, %v2662_v10 }
 0xd04   :  { %v2643_v39 = vpop.xlane.xlu0 %2642 }
 0xd05   :  { %4514 = vpow2.f32 %v2670_v40  ;;  %v2663_v5 = vsub.f32 %v5677_v11, %v2643_v39 }
 0xd07   :  { %v2672_v55 = vmul.f32 1.442695, %v2663_v5 }
 0xd08   :  { %v2646_v59 = vpop.xlane.xlu0 %2645 }
 0xd09   :  { %4516 = vpow2.f32 %v2672_v55  ;;  %v2664_v4 = vsub.f32 %v5683_v50, %v2646_v59 }
 0xd0b   :  { %v2674_v19 = vmul.f32 1.442695, %v2664_v4 }
 0xd0c   :  { %v2649_v41 = vpop.xlane.xlu1 %2648 }
 0xd0d   :  { %4518 = vpow2.f32 %v2674_v19  ;;  %v2665_v12 = vsub.f32 %v5692_v56, %v2649_v41 }
 0xd0f   :  { %v5780_v58 = vpop.eup %4514  ;;  %v2676_v0 = vmul.f32 1.442695, %v2665_v12 }
 0xd10   :  { %v2652_v43 = vpop.xlane.xlu0 %2651  ;;  %v2686_v17 = vsel %vm455_vm5, %v5780_v58, 0.0 }
 0xd11   :  { %4520 = vpow2.f32 %v2676_v0  ;;  %v2666_v11 = vsub.f32 %v5699_v7, %v2652_v43  ;;  %2687 = vadd.xlane.f32.xlu0 %v2686_v17 }
 0xd13   :  { %v5785_v24 = vpop.eup %4516  ;;  %v2678_v25 = vmul.f32 1.442695, %v2666_v11 }
 0xd14   :  { %v2655_v50 = vpop.xlane.xlu1 %2654  ;;  %v2689_v13 = vsel %vm455_vm5, %v5785_v24, 0.0 }
 0xd15   :  { %4522 = vpow2.f32 %v2678_v25  ;;  %v2667_v56 = vsub.f32 %v5705_v35, %v2655_v50  ;;  %2690 = vadd.xlane.f32.xlu1 %v2689_v13 }
 0xd17   :  { %v5790_v51 = vpop.eup %4518  ;;  %v2680_v61 = vmul.f32 1.442695, %v2667_v56 }
 0xd18   :  { %v2658_v18 = vpop.xlane.xlu0 %2657  ;;  %v2692_v8 = vsel %vm455_vm5, %v5790_v51, 0.0 }
 0xd19   :  { %4524 = vpow2.f32 %v2680_v61  ;;  %v2668_v7 = vsub.f32 %v5712_v54, %v2658_v18  ;;  %2693 = vadd.xlane.f32.xlu0 %v2692_v8 }
 0xd1b   :  { %v5795_v14 = vpop.eup %4520  ;;  %v2682_v36 = vmul.f32 1.442695, %v2668_v7 }
 0xd1c   :  { %v2661_v38 = vpop.xlane.xlu1 %2660  ;;  %v2460_v57 = vpop.xlane.xlu0 %2459  ;;  %v2695_v35 = vsel %vm455_vm5, %v5795_v14, 0.0 }
 0xd1d   :  { %4526 = vpow2.f32 %v2682_v36  ;;  %v2669_v60 = vsub.f32 %v5724_v63, %v2661_v38  ;;  %v2482_v20 = vsub.f32 %v5718_v45, %v2460_v57  ;;  %2696 = vadd.xlane.f32.xlu1 %v2695_v35 }
 0xd1f   :  { %v5801_v3 = vpop.eup %4522  ;;  %v2684_v44 = vmul.f32 1.442695, %v2669_v60  ;;  %v2490_v16 = vmul.f32 1.442695, %v2482_v20 }
 0xd20   :  { %v2698_v54 = vsel %vm455_vm5, %v5801_v3, 0.0 }
 0xd21   :  { %4528 = vpow2.f32 %v2684_v44  ;;  %v2463_v15 = vpop.xlane.xlu1 %2462  ;;  %2699 = vadd.xlane.f32.xlu0 %v2698_v54 }
 0xd22   :  { %4530 = vpow2.f32 %v2490_v16  ;;  %v2483_v21 = vsub.f32 %v5734_v47, %v2463_v15 }
 0xd23   :  { %v5806_v31 = vpop.eup %4524 }
 0xd24   :  { %v2492_v37 = vmul.f32 1.442695, %v2483_v21  ;;  %v2701_v45 = vsel %vm455_vm5, %v5806_v31, 0.0 }
 0xd25   :  { %2702 = vadd.xlane.f32.xlu1 %v2701_v45  ;;  %v2469_v63 = vpop.xlane.xlu1 %2468  ;;  %v2466_v53 = vpop.xlane.xlu0 %2465 }
 0xd26   :  { %4532 = vpow2.f32 %v2492_v37  ;;  %v2485_v49 = vsub.f32 %v5740_v32, %v2469_v63  ;;  %v2484_v10 = vsub.f32 %v5745_v48, %v2466_v53 }
 0xd27   :  { %v5812_v40 = vpop.eup %4526 }
 0xd28   :  { %v2496_v39 = vmul.f32 1.442695, %v2485_v49  ;;  %v2494_v5 = vmul.f32 1.442695, %v2484_v10  ;;  %v2704_v47 = vsel %vm455_vm5, %v5812_v40, 0.0 }
 0xd29   :  { %v2475_v55 = vpop.xlane.xlu1 %2474  ;;  %2705 = vadd.xlane.f32.xlu0 %v2704_v47  ;;  %v2472_v59 = vpop.xlane.xlu0 %2471 }
 0xd2a   :  { %4534 = vpow2.f32 %v2496_v39  ;;  %v2487_v4 = vsub.f32 %v5753_v26, %v2475_v55  ;;  %v2486_v19 = vsub.f32 %v5758_v62, %v2472_v59 }
 0xd2b   :  { %v5818_v41 = vpop.eup %4528  ;;  %4536 = vpow2.f32 %v2494_v5 }
 0xd2c   :  { %v5820_v32 = vpop.eup %4530  ;;  %v2500_v48 = vmul.f32 1.442695, %v2487_v4  ;;  %v2498_v12 = vmul.f32 1.442695, %v2486_v19  ;;  %v2707_v0 = vsel %vm455_vm5, %v5818_v41, 0.0 }
 0xd2d   :  { %2708 = vadd.xlane.f32.xlu1 %v2707_v0  ;;  %v2481_v43 = vpop.xlane.xlu1 %2480  ;;  %v2506_v17 = vsel %vm455_vm5, %v5820_v32, 0.0  ;;  %v2478_v11 = vpop.xlane.xlu0 %2477 }
 0xd2e   :  { %4538 = vpow2.f32 %v2500_v48  ;;  %v2489_v26 = vsub.f32 %v5766_v34, %v2481_v43  ;;  %2507 = vadd.xlane.f32.xlu0 %v2506_v17  ;;  %v2488_v62 = vsub.f32 %v5770_v6, %v2478_v11 }
 0xd2f   :  { %4540 = vpow2.f32 %v2498_v12 }
 0xd30   :  { %v5828_v25 = vpop.eup %4532  ;;  %v2504_v50 = vmul.f32 1.442695, %v2489_v26  ;;  %v2502_v13 = vmul.f32 1.442695, %v2488_v62 }
 0xd31   :  { %v2509_v56 = vsel %vm455_vm5, %v5828_v25, 0.0 }
 0xd32   :  { %4542 = vpow2.f32 %v2504_v50  ;;  %2510 = vadd.xlane.f32.xlu1 %v2509_v56 }
 0xd33   :  { %4544 = vpow2.f32 %v2502_v13 }
 0xd34   :  { %v5832_v61 = vpop.eup %4534 }
 0xd35   :  { %v5834_v18 = vpop.eup %4536  ;;  %v2515_v34 = vsel %vm455_vm5, %v5832_v61, 0.0 }
 0xd36   :  { %2516 = vadd.xlane.f32.xlu1 %v2515_v34  ;;  %v2512_v6 = vsel %vm455_vm5, %v5834_v18, 0.0 }
 0xd37   :  { %2513 = vadd.xlane.f32.xlu0 %v2512_v6 }
 0xd38   :  { %v5840_v8 = vpop.eup %4538 }
 0xd39   :  { %v5842_v7 = vpop.eup %4540  ;;  %v2521_v36 = vsel %vm455_vm5, %v5840_v8, 0.0 }
 0xd3a   :  { %2522 = vadd.xlane.f32.xlu1 %v2521_v36  ;;  %v2518_v38 = vsel %vm455_vm5, %v5842_v7, 0.0 }
 0xd3b   :  { %2519 = vadd.xlane.f32.xlu0 %v2518_v38 }
 0xd3c   :  { %v5848_v57 = vpop.eup %4542 }
 0xd3d   :  { %v5850_v35 = vpop.eup %4544  ;;  %v2527_v60 = vsel %vm455_vm5, %v5848_v57, 0.0 }
 0xd3e   :  { %2528 = vadd.xlane.f32.xlu1 %v2527_v60  ;;  %v2524_v20 = vsel %vm455_vm5, %v5850_v35, 0.0 }
 0xd3f   :  { %2525 = vadd.xlane.f32.xlu0 %v2524_v20 }
 0xd9e   :  { %v2688_v44 = vpop.xlane.xlu0 %2687 }
 0xd9f   :  { %4546 = vrcp.f32 %v2688_v44 }
 0xda2   :  { %v2691_v16 = vpop.xlane.xlu1 %2690 }
 0xda3   :  { %4548 = vrcp.f32 %v2691_v16 }
 0xda6   :  { %v2694_v54 = vpop.xlane.xlu0 %2693 }
 0xda7   :  { %4550 = vrcp.f32 %v2694_v54 }
 0xda9   :  { %v4547_v21 = vpop.eup %4546 }
 0xdaa   :  { %v2697_v15 = vpop.xlane.xlu1 %2696  ;;  %v2718_v63 = vmul.f32 %v4547_v21, %v5780_v58 }
 0xdab   :  { %4552 = vrcp.f32 %v2697_v15 }
 0xdad   :  { %v4549_v37 = vpop.eup %4548 }
 0xdae   :  { %v2700_v45 = vpop.xlane.xlu0 %2699  ;;  %v2719_v53 = vmul.f32 %v4549_v37, %v5785_v24 }
 0xdaf   :  { %4554 = vrcp.f32 %v2700_v45 }
 0xdb0   :  { %v2734_v49 = vpack.c.bf16 %v2719_v53, %v2718_v63 }
 0xdb1   :  { %v4551_v39 = vpop.eup %4550 }
 0xdb2   :  { %v2703_v10 = vpop.xlane.xlu1 %2702  ;;  %4064 = vmatprep.mubr.msk.bf16.mxu1 %vm455_vm5, %v2734_v49  ;;  %v5860_v47 = vmul.f32 %v4551_v39, %v5790_v51 }
 0xdb3   :  { %4556 = vrcp.f32 %v2703_v10 }
 0xdb5   :  { %v4553_v5 = vpop.eup %4552 }
 0xdb6   :  { %v2721_v55 = vmul.f32 %v4553_v5, %v5795_v14  ;;  %v2706_v59 = vpop.xlane.xlu0 %2705 }
 0xdb7   :  { %4558 = vrcp.f32 %v2706_v59 }
 0xdb8   :  { %v2735_v4 = vpack.c.bf16 %v2721_v55, %v5860_v47 }
 0xdb9   :  { %v4555_v24 = vpop.eup %4554 }
 0xdba   :  { %v2709_v58 = vpop.xlane.xlu1 %2708  ;;  %4065 = vmatmul.mubr.msk.bf16.vlgmr.msra.gmra.mrb[24].mxu1 %vm455_vm5, %v2735_v4  ;;  %v2722_v51 = vmul.f32 %v4555_v24, %v5801_v3 }
 0xdbb   :  { %4560 = vrcp.f32 %v2709_v58  ;;  %4073 = vmatpush3.bf16.msra.mxu1 %v5650_v9  ;;  %v2508_v19 = vpop.xlane.xlu0 %2507 }
 0xdbc   :  { %4562 = vrcp.f32 %v2508_v19  ;;  %4074 = vmatprep.subr.bf16.mxu1 %v5653_v2 }
 0xdbd   :  { %v4557_v48 = vpop.eup %4556 }
 0xdbe   :  { %v2723_v14 = vmul.f32 %v4557_v48, %v5806_v31 }
 0xdbf   :  { %4075 = vmatpush3.bf16.msra.mxu1 %v5653_v2  ;;  %v2511_v12 = vpop.xlane.xlu1 %2510 }
 0xdc0   :  { %4564 = vrcp.f32 %v2511_v12  ;;  %4076 = vmatprep.subr.bf16.mxu1 %v5656_v29  ;;  %v2736_v0 = vpack.c.bf16 %v2723_v14, %v2722_v51 }
 0xdc1   :  { %v4559_v43 = vpop.eup %4558 }
 0xdc2   :  { %4068 = vmatprep.mubr.msk.bf16.mxu1 %vm455_vm5, %v2736_v0  ;;  %v2724_v2 = vmul.f32 %v4559_v43, %v5812_v40 }
 0xdc3   :  { %4077 = vmatpush3.bf16.msra.mxu1 %v5656_v29  ;;  %v2517_v9 = vpop.xlane.xlu1 %2516 }
 0xdc4   :  { %4566 = vrcp.f32 %v2517_v9  ;;  %4078 = vmatprep.subr.bf16.mxu1 %v5659_v30  ;;  %v2514_v17 = vpop.xlane.xlu0 %2513 }
 0xdc5   :  { %v4561_v3 = vpop.eup %4560  ;;  %4568 = vrcp.f32 %v2514_v17 }
 0xdc6   :  { %v4563_v31 = vpop.eup %4562  ;;  %v2725_v11 = vmul.f32 %v4561_v3, %v5818_v41 }
 0xdc7   :  { %v2538_v26 = vmul.f32 %v4563_v31, %v5820_v32  ;;  %4079 = vmatpush3.bf16.msra.mxu1 %v5659_v30  ;;  %v2523_v62 = vpop.xlane.xlu1 %2522 }
 0xdc8   :  { %4570 = vrcp.f32 %v2523_v62  ;;  %v2520_v50 = vpop.xlane.xlu0 %2519  ;;  %v2737_v29 = vpack.c.bf16 %v2725_v11, %v2724_v2 }
 0xdc9   :  { %4572 = vrcp.f32 %v2520_v50  ;;  %v2726_v13 = vadd.f32 %v2718_v63, %v2538_v26 }
 0xdca   :  { %v4565_v56 = vpop.eup %4564  ;;  %4069 = vmatmul.mubr.msk.bf16.gmra.mrb[28].mxu1 %vm455_vm5, %v2737_v29 }
 0xdcb   :  { %v2529_v34 = vpop.xlane.xlu1 %2528  ;;  %v2896_v6 = vmul.f32 0.16666667, %v2726_v13  ;;  %v2539_v36 = vmul.f32 %v4565_v56, %v5828_v25 }
 0xdcc   :  { %4574 = vrcp.f32 %v2529_v34  ;;  %v2526_v40 = vpop.xlane.xlu0 %2525 }
 0xdcd   :  { %4576 = vrcp.f32 %v2526_v40  ;;  %v5881_v41 = vadd.f32 %v2896_v6, %v5557_v28  ;;  %v2554_v30 = vpack.c.bf16 %v2539_v36, %v2538_v26  ;;  %v2727_v32 = vadd.f32 %v2719_v53, %v2539_v36 }
 0xdce   :  { %v4567_v38 = vpop.eup %4566 }
 0xdcf   :  { %v4569_v60 = vpop.eup %4568  ;;  %v2541_v20 = vmul.f32 %v4567_v38, %v5832_v61  ;;  %4104 = vmatprep.mubr.msk.f32.mxu0 %vm455_vm5, %v5881_v41  ;;  %4080 = vmatprep.mubr.msk.bf16.mxu1 %vm455_vm5, %v2554_v30  ;;  %v2897_v44 = vmul.f32 0.16666667, %v2727_v32 }
 0xdd0   :  { %v2540_v25 = vmul.f32 %v4569_v60, %v5834_v18 }
 0xdd1   :  { %v5889_v16 = vadd.f32 %v2897_v44, %v5590_v33  ;;  %v2729_v54 = vadd.f32 %v2721_v55, %v2541_v20 }
 0xdd2   :  { %v4571_v28 = vpop.eup %4570  ;;  %v2555_v15 = vpack.c.bf16 %v2541_v20, %v2540_v25  ;;  %v2728_v21 = vadd.f32 %v5860_v47, %v2540_v25 }
 0xdd3   :  { %v4573_v37 = vpop.eup %4572  ;;  %v2543_v45 = vmul.f32 %v4571_v28, %v5840_v8  ;;  %v2899_v61 = vmul.f32 0.16666667, %v2729_v54 }
 0xdd4   :  { %4081 = vmatmul.mubr.msk.bf16.vlgmr.msra.gmra.mrb[24].mxu1 %vm455_vm5, %v2555_v15  ;;  %v2542_v63 = vmul.f32 %v4573_v37, %v5842_v7  ;;  %v2898_v53 = vmul.f32 0.16666667, %v2728_v21 }
 0xdd5   :  { %v5896_v49 = vadd.f32 %v2899_v61, %v5569_v46  ;;  %v2731_v18 = vadd.f32 %v2723_v14, %v2543_v45 }
 0xdd6   :  { %v4575_v33 = vpop.eup %4574  ;;  %v2556_v10 = vpack.c.bf16 %v2543_v45, %v2542_v63  ;;  %v5899_v39 = vadd.f32 %v2898_v53, %v5564_v27  ;;  %v2730_v5 = vadd.f32 %v2722_v51, %v2542_v63 }
 0xdd7   :  { %v4577_v47 = vpop.eup %4576  ;;  %v2545_v55 = vmul.f32 %v4575_v33, %v5848_v57  ;;  %v2901_v8 = vmul.f32 0.16666667, %v2731_v18 }
 0xdd8   :  { %4084 = vmatprep.mubr.msk.bf16.mxu1 %vm455_vm5, %v2556_v10  ;;  %v2544_v59 = vmul.f32 %v4577_v47, %v5850_v35  ;;  %v2900_v7 = vmul.f32 0.16666667, %v2730_v5 }
 0xdd9   :  { %v5905_v4 = vadd.f32 %v2901_v8, %v5593_v52  ;;  %v2733_v46 = vadd.f32 %v2725_v11, %v2545_v55  ;;  %v5920_v52 = vand.u32 127, %v411_v42 }
 0xdda   :  { %v2557_v58 = vpack.c.bf16 %v2545_v55, %v2544_v59  ;;  %v5908_v24 = vadd.f32 %v2900_v7, %v5573_v23  ;;  %v2732_v27 = vadd.f32 %v2724_v2, %v2544_v59 }
 0xddb   :  { %v2903_v19 = vmul.f32 0.16666667, %v2733_v46  ;;  %vm2922_vm13 = vcmp.lt.s32.totalorder %v5920_v52, 4 }
 0xddc   :  { %4085 = vmatmul.mubr.msk.bf16.gmra.mrb[28].mxu1 %vm455_vm5, %v2557_v58  ;;  %v2902_v48 = vmul.f32 0.16666667, %v2732_v27 }
 0xddd   :  { %4132 = vmatprep.mubr.msk.f32.mxu1 %vm455_vm5, %v5881_v41  ;;  %v5914_v57 = vadd.f32 %v2903_v19, %v5600_v22 }
 0xdde   :  { %v5917_v35 = vadd.f32 %v2902_v48, %v5578_v1 }
 0xea7   :  { %v4082_v51 = vpop.f32.mrb[24].mxu1 }
 0xea8   :  { %v2865_v23 = vpop.f32.mrb[25].mxu1  ;;  %v2914_v43 = vmul.f32 0.5, %v4082_v51 }
 0xea9   :  { %v2912_v14 = vmul.f32 0.5, %v2865_v23  ;;  %v4083_v12 = vpop.f32.mrb[26].mxu1 }
 0xeaa   :  { %v2868_v0 = vpop.f32.mrb[27].mxu1  ;;  %v2915_v22 = vmul.f32 0.5, %v4083_v12  ;;  %v2925_v3 = vsel %vm2922_vm13, %v2914_v43, -1e+30 }
 0xeab   :  { %v2913_v9 = vmul.f32 0.5, %v2868_v0  ;;  %v2923_v17 = vsel %vm2922_vm13, %v2912_v14, -1e+30 }
 0xeac   :  { %2931 = vmax.xlane.f32.xlu0 %v2923_v17  ;;  %v2926_v26 = vsel %vm2922_vm13, %v2915_v22, -1e+30 }
 0xead   :  { %v2924_v1 = vsel %vm2922_vm13, %v2913_v9, -1e+30 }
 0xeae   :  { %2933 = vmax.xlane.f32.xlu1 %v2924_v1 }
 0xeaf   :  { %v4086_v42 = vpop.f32.mrb[28].mxu1 }
 0xeb0   :  { %2935 = vmax.xlane.f32.xlu0 %v2925_v3  ;;  %v2881_v31 = vpop.f32.mrb[29].mxu1  ;;  %v2918_v50 = vmul.f32 0.5, %v4086_v42 }
 0xeb1   :  { %v2916_v2 = vmul.f32 0.5, %v2881_v31  ;;  %v4087_v11 = vpop.f32.mrb[30].mxu1 }
 0xeb2   :  { %2937 = vmax.xlane.f32.xlu1 %v2926_v26  ;;  %v2884_v62 = vpop.f32.mrb[31].mxu1  ;;  %v2919_v56 = vmul.f32 0.5, %v4087_v11  ;;  %v2929_v6 = vsel %vm2922_vm13, %v2918_v50, -1e+30 }
 0xeb3   :  { %v2917_v29 = vmul.f32 0.5, %v2884_v62  ;;  %v2927_v13 = vsel %vm2922_vm13, %v2916_v2, -1e+30 }
 0xeb4   :  { %2939 = vmax.xlane.f32.xlu0 %v2927_v13  ;;  %v2930_v36 = vsel %vm2922_vm13, %v2919_v56, -1e+30 }
 0xeb5   :  { %v2928_v34 = vsel %vm2922_vm13, %v2917_v29, -1e+30 }
 0xeb6   :  { %2941 = vmax.xlane.f32.xlu1 %v2928_v34 }
 0xeb8   :  { %2943 = vmax.xlane.f32.xlu0 %v2929_v6 }
 0xeba   :  { %2945 = vmax.xlane.f32.xlu1 %v2930_v36 }
 0xf39   :  { %v2932_v40 = vpop.xlane.xlu0 %2931 }
 0xf3a   :  { %v2947_v30 = vsub.f32 %v2923_v17, %v2932_v40 }
 0xf3b   :  { %v2934_v32 = vpop.xlane.xlu1 %2933 }
 0xf3c   :  { %v2955_v38 = vmul.f32 1.442695, %v2947_v30  ;;  %v2948_v60 = vsub.f32 %v2924_v1, %v2934_v32 }
 0xf3d   :  { %v2936_v20 = vpop.xlane.xlu0 %2935 }
 0xf3e   :  { %4578 = vpow2.f32 %v2955_v38  ;;  %v2957_v44 = vmul.f32 1.442695, %v2948_v60  ;;  %v2949_v25 = vsub.f32 %v2925_v3, %v2936_v20 }
 0xf3f   :  { %v2938_v54 = vpop.xlane.xlu1 %2937 }
 0xf40   :  { %4580 = vpow2.f32 %v2957_v44  ;;  %v2959_v28 = vmul.f32 1.442695, %v2949_v25  ;;  %v2950_v15 = vsub.f32 %v2926_v26, %v2938_v54 }
 0xf41   :  { %v2940_v21 = vpop.xlane.xlu0 %2939 }
 0xf42   :  { %4582 = vpow2.f32 %v2959_v28  ;;  %v2961_v37 = vmul.f32 1.442695, %v2950_v15  ;;  %v2951_v45 = vsub.f32 %v2927_v13, %v2940_v21 }
 0xf43   :  { %v2942_v61 = vpop.xlane.xlu1 %2941 }
 0xf44   :  { %4584 = vpow2.f32 %v2961_v37  ;;  %v2963_v63 = vmul.f32 1.442695, %v2951_v45  ;;  %v2952_v53 = vsub.f32 %v2928_v34, %v2942_v61 }
 0xf45   :  { %v2944_v18 = vpop.xlane.xlu0 %2943 }
 0xf46   :  { %4586 = vpow2.f32 %v2963_v63  ;;  %v2965_v33 = vmul.f32 1.442695, %v2952_v53  ;;  %v2953_v10 = vsub.f32 %v2929_v6, %v2944_v18 }
 0xf47   :  { %v2946_v5 = vpop.xlane.xlu1 %2945 }
 0xf48   :  { %v4579_v47 = vpop.eup %4578  ;;  %4588 = vpow2.f32 %v2965_v33  ;;  %v2967_v55 = vmul.f32 1.442695, %v2953_v10  ;;  %v2954_v8 = vsub.f32 %v2930_v36, %v2946_v5 }
 0xf49   :  { %2971 = vadd.xlane.f32.xlu0 %v4579_v47 }
 0xf4a   :  { %v4581_v59 = vpop.eup %4580  ;;  %4590 = vpow2.f32 %v2967_v55  ;;  %v2969_v7 = vmul.f32 1.442695, %v2954_v8 }
 0xf4b   :  { %2973 = vadd.xlane.f32.xlu1 %v4581_v59 }
 0xf4c   :  { %v4583_v46 = vpop.eup %4582  ;;  %4592 = vpow2.f32 %v2969_v7 }
 0xf4d   :  { %2975 = vadd.xlane.f32.xlu0 %v4583_v46 }
 0xf4e   :  { %v4585_v58 = vpop.eup %4584 }
 0xf4f   :  { %2977 = vadd.xlane.f32.xlu1 %v4585_v58 }
 0xf50   :  { %v4587_v27 = vpop.eup %4586 }
 0xf51   :  { %2979 = vadd.xlane.f32.xlu0 %v4587_v27 }
 0xf52   :  { %v4589_v19 = vpop.eup %4588 }
 0xf53   :  { %2981 = vadd.xlane.f32.xlu1 %v4589_v19 }
 0xf54   :  { %v4591_v48 = vpop.eup %4590 }
 0xf55   :  { %2983 = vadd.xlane.f32.xlu0 %v4591_v48 }
 0xf56   :  { %v4593_v51 = vpop.eup %4592 }
 0xf57   :  { %2985 = vadd.xlane.f32.xlu1 %v4593_v51 }
 0xfd6   :  { %v2972_v23 = vpop.xlane.xlu0 %2971 }
 0xfd7   :  { %4594 = vrcp.f32 %v2972_v23 }
 0xfd8   :  { %v2974_v14 = vpop.xlane.xlu1 %2973 }
 0xfd9   :  { %4596 = vrcp.f32 %v2974_v14 }
 0xfda   :  { %v2976_v12 = vpop.xlane.xlu0 %2975 }
 0xfdb   :  { %4598 = vrcp.f32 %v2976_v12 }
 0xfdc   :  { %v2978_v0 = vpop.xlane.xlu1 %2977 }
 0xfdd   :  { %4600 = vrcp.f32 %v2978_v0 }
 0xfde   :  { %v2980_v43 = vpop.xlane.xlu0 %2979 }
 0xfdf   :  { %4602 = vrcp.f32 %v2980_v43 }
 0xfe0   :  { %v2982_v9 = vpop.xlane.xlu1 %2981 }
 0xfe1   :  { %v4595_v17 = vpop.eup %4594  ;;  %4604 = vrcp.f32 %v2982_v9 }
 0xfe2   :  { %v2984_v22 = vpop.xlane.xlu0 %2983  ;;  %v2995_v3 = vmul.f32 %v4595_v17, %v4579_v47 }
 0xfe3   :  { %v4597_v1 = vpop.eup %4596  ;;  %4606 = vrcp.f32 %v2984_v22 }
 0xfe4   :  { %v2986_v42 = vpop.xlane.xlu1 %2985  ;;  %v2996_v31 = vmul.f32 %v4597_v1, %v4581_v59 }
 0xfe5   :  { %v4599_v2 = vpop.eup %4598  ;;  %4608 = vrcp.f32 %v2986_v42 }
 0xfe6   :  { %v4220_v11 = vpack.c.bf16 %v2996_v31, %v2995_v3  ;;  %v2997_v62 = vmul.f32 %v4599_v2, %v4583_v46 }
 0xfe7   :  { %v4601_v26 = vpop.eup %4600 }
 0xfe8   :  { %4221 = vmatprep.subr.bf16.mxu0 %v4220_v11  ;;  %v2998_v50 = vmul.f32 %v4601_v26, %v4585_v58 }
 0xfe9   :  { %v4603_v29 = vpop.eup %4602  ;;  %4223 = vmatpush3.bf16.msra.mxu0 %v4220_v11 }
 0xfea   :  { %v4224_v13 = vpack.c.bf16 %v2998_v50, %v2997_v62  ;;  %v2999_v34 = vmul.f32 %v4603_v29, %v4587_v27 }
 0xfeb   :  { %v4605_v56 = vpop.eup %4604 }
 0xfec   :  { %4225 = vmatprep.subr.bf16.mxu0 %v4224_v13  ;;  %v3000_v6 = vmul.f32 %v4605_v56, %v4589_v19 }
 0xfed   :  { %v4607_v36 = vpop.eup %4606  ;;  %4227 = vmatpush3.bf16.msra.mxu0 %v4224_v13 }
 0xfee   :  { %v4228_v40 = vpack.c.bf16 %v3000_v6, %v2999_v34  ;;  %v3001_v32 = vmul.f32 %v4607_v36, %v4591_v48 }
 0xfef   :  { %v4609_v30 = vpop.eup %4608 }
 0xff0   :  { %4229 = vmatprep.subr.bf16.mxu0 %v4228_v40  ;;  %v3002_v38 = vmul.f32 %v4609_v30, %v4593_v51 }
 0xff1   :  { %4231 = vmatpush3.bf16.msra.mxu0 %v4228_v40 }
 0xff2   :  { %v4232_v60 = vpack.c.bf16 %v3002_v38, %v3001_v32 }
 0xff4   :  { %4233 = vmatprep.subr.bf16.mxu0 %v4232_v60 }
 0xff5   :  { %4235 = vmatpush3.bf16.msra.mxu0 %v4232_v60 }
 0xff8   :  { %4105 = vmatmul.mubr.msk.f32.vlgmr.msra.gmra.mrb[80].mxu0 %vm455_vm5, %v5889_v16 }
 0xff9   :  { %4107 = vmatprep.mubr.msk.f32.mxu0 %vm455_vm5, %v5899_v39 }
 0xffc   :  { %4108 = vmatmul.mubr.msk.f32.gmra.mrb[82].mxu0 %vm455_vm5, %v5896_v49 }
 0xffd   :  { %4110 = vmatprep.mubr.msk.f32.mxu0 %vm455_vm5, %v5908_v24 }
0x1000   :  { %4111 = vmatmul.mubr.msk.f32.gmra.mrb[84].mxu0 %vm455_vm5, %v5905_v4 }
0x1001   :  { %4113 = vmatprep.mubr.msk.f32.mxu0 %vm455_vm5, %v5917_v35 }
0x1004   :  { %4114 = vmatmul.mubr.msk.f32.gmra.mrb[86].mxu0 %vm455_vm5, %v5914_v57 }
0x1005   :  { %4160 = vmatprep.mubr.msk.f32.mxu0 %vm455_vm5, %v5881_v41 }
0x10cb   :  { %v4106_v20 = vpop.f32.mrb[80].mxu0 }
0x10cc   :  { %v3133_v44 = vsel %vm2922_vm13, %v4106_v20, -1e+30  ;;  %v3093_v25 = vpop.f32.mrb[81].mxu0 }
0x10cd   :  { %v3132_v54 = vsel %vm2922_vm13, %v3093_v25, -1e+30  ;;  %3142 = vmax.xlane.f32.xlu1 %v3133_v44 }
0x10ce   :  { %3140 = vmax.xlane.f32.xlu0 %v3132_v54 }
0x10cf   :  { %v4109_v28 = vpop.f32.mrb[82].mxu0 }
0x10d0   :  { %v3135_v15 = vsel %vm2922_vm13, %v4109_v28, -1e+30  ;;  %v3103_v21 = vpop.f32.mrb[83].mxu0 }
0x10d1   :  { %v3134_v37 = vsel %vm2922_vm13, %v3103_v21, -1e+30  ;;  %3146 = vmax.xlane.f32.xlu1 %v3135_v15 }
0x10d2   :  { %3144 = vmax.xlane.f32.xlu0 %v3134_v37 }
0x10d3   :  { %v4112_v41 = vpop.f32.mrb[84].mxu0 }
0x10d4   :  { %v3137_v45 = vsel %vm2922_vm13, %v4112_v41, -1e+30  ;;  %v3113_v61 = vpop.f32.mrb[85].mxu0 }
0x10d5   :  { %v3136_v63 = vsel %vm2922_vm13, %v3113_v61, -1e+30  ;;  %3150 = vmax.xlane.f32.xlu1 %v3137_v45 }
0x10d6   :  { %3148 = vmax.xlane.f32.xlu0 %v3136_v63 }
0x10d7   :  { %v4115_v53 = vpop.f32.mrb[86].mxu0 }
0x10d8   :  { %v3139_v18 = vsel %vm2922_vm13, %v4115_v53, -1e+30  ;;  %v3123_v33 = vpop.f32.mrb[87].mxu0 }
0x10d9   :  { %v3138_v10 = vsel %vm2922_vm13, %v3123_v33, -1e+30  ;;  %3154 = vmax.xlane.f32.xlu1 %v3139_v18 }
0x10da   :  { %3152 = vmax.xlane.f32.xlu0 %v3138_v10 }
0x115a   :  { %v3143_v5 = vpop.xlane.xlu1 %3142 }
0x115b   :  { %v3157_v47 = vsub.f32 %v3133_v44, %v3143_v5  ;;  %v3141_v55 = vpop.xlane.xlu0 %3140 }
0x115c   :  { %v3156_v8 = vsub.f32 %v3132_v54, %v3141_v55 }
0x115d   :  { %v3166_v59 = vmul.f32 1.442695, %v3157_v47 }
0x115e   :  { %v3164_v7 = vmul.f32 1.442695, %v3156_v8  ;;  %v3147_v46 = vpop.xlane.xlu1 %3146 }
0x115f   :  { %4610 = vpow2.f32 %v3166_v59  ;;  %v3159_v58 = vsub.f32 %v3135_v15, %v3147_v46  ;;  %v3145_v27 = vpop.xlane.xlu0 %3144 }
0x1160   :  { %4612 = vpow2.f32 %v3164_v7  ;;  %v3158_v19 = vsub.f32 %v3134_v37, %v3145_v27 }
0x1161   :  { %v3170_v48 = vmul.f32 1.442695, %v3159_v58 }
0x1162   :  { %v3168_v51 = vmul.f32 1.442695, %v3158_v19  ;;  %v3151_v23 = vpop.xlane.xlu1 %3150 }
0x1163   :  { %4614 = vpow2.f32 %v3170_v48  ;;  %v3161_v14 = vsub.f32 %v3137_v45, %v3151_v23  ;;  %v3149_v12 = vpop.xlane.xlu0 %3148 }
0x1164   :  { %4616 = vpow2.f32 %v3168_v51  ;;  %v3160_v0 = vsub.f32 %v3136_v63, %v3149_v12 }
0x1165   :  { %v3174_v43 = vmul.f32 1.442695, %v3161_v14 }
0x1166   :  { %v3172_v9 = vmul.f32 1.442695, %v3160_v0  ;;  %v3155_v17 = vpop.xlane.xlu1 %3154 }
0x1167   :  { %4618 = vpow2.f32 %v3174_v43  ;;  %v3163_v22 = vsub.f32 %v3139_v18, %v3155_v17  ;;  %v3153_v1 = vpop.xlane.xlu0 %3152 }
0x1168   :  { %4620 = vpow2.f32 %v3172_v9  ;;  %v3162_v42 = vsub.f32 %v3138_v10, %v3153_v1 }
0x1169   :  { %v4611_v3 = vpop.eup %4610  ;;  %v3178_v31 = vmul.f32 1.442695, %v3163_v22 }
0x116a   :  { %v4613_v2 = vpop.eup %4612  ;;  %v3176_v11 = vmul.f32 1.442695, %v3162_v42  ;;  %3182 = vadd.xlane.f32.xlu1 %v4611_v3 }
0x116b   :  { %4622 = vpow2.f32 %v3178_v31  ;;  %3180 = vadd.xlane.f32.xlu0 %v4613_v2 }
0x116c   :  { %4624 = vpow2.f32 %v3176_v11 }
0x116d   :  { %v4615_v26 = vpop.eup %4614 }
0x116e   :  { %v4617_v62 = vpop.eup %4616  ;;  %3186 = vadd.xlane.f32.xlu1 %v4615_v26 }
0x116f   :  { %3184 = vadd.xlane.f32.xlu0 %v4617_v62 }
0x1171   :  { %v4619_v50 = vpop.eup %4618 }
0x1172   :  { %v4621_v29 = vpop.eup %4620  ;;  %3190 = vadd.xlane.f32.xlu1 %v4619_v50 }
0x1173   :  { %3188 = vadd.xlane.f32.xlu0 %v4621_v29 }
0x1175   :  { %v4623_v13 = vpop.eup %4622 }
0x1176   :  { %v4625_v56 = vpop.eup %4624  ;;  %3194 = vadd.xlane.f32.xlu1 %v4623_v13 }
0x1177   :  { %3192 = vadd.xlane.f32.xlu0 %v4625_v56 }
0x11f7   :  { %v3183_v34 = vpop.xlane.xlu1 %3182 }
0x11f8   :  { %4626 = vrcp.f32 %v3183_v34  ;;  %v3181_v6 = vpop.xlane.xlu0 %3180 }
0x11f9   :  { %4628 = vrcp.f32 %v3181_v6 }
0x11fb   :  { %v3187_v36 = vpop.xlane.xlu1 %3186 }
0x11fc   :  { %4630 = vrcp.f32 %v3187_v36  ;;  %v3185_v40 = vpop.xlane.xlu0 %3184 }
0x11fd   :  { %4632 = vrcp.f32 %v3185_v40 }
0x11ff   :  { %v3191_v30 = vpop.xlane.xlu1 %3190 }
0x1200   :  { %4634 = vrcp.f32 %v3191_v30  ;;  %v3189_v32 = vpop.xlane.xlu0 %3188 }
0x1201   :  { %4636 = vrcp.f32 %v3189_v32 }
0x1202   :  { %v4627_v38 = vpop.eup %4626 }
0x1203   :  { %v4629_v60 = vpop.eup %4628  ;;  %v3195_v20 = vpop.xlane.xlu1 %3194  ;;  %v3205_v44 = vmul.f32 %v4627_v38, %v4611_v3 }
0x1204   :  { %4638 = vrcp.f32 %v3195_v20  ;;  %v3193_v25 = vpop.xlane.xlu0 %3192  ;;  %v3204_v54 = vmul.f32 %v4629_v60, %v4613_v2 }
0x1205   :  { %4640 = vrcp.f32 %v3193_v25 }
0x1206   :  { %v4631_v28 = vpop.eup %4630  ;;  %v4236_v15 = vpack.c.bf16 %v3205_v44, %v3204_v54 }
0x1207   :  { %v4633_v21 = vpop.eup %4632  ;;  %v3207_v37 = vmul.f32 %v4631_v28, %v4615_v26 }
0x1208   :  { %4237 = vmatprep.subr.bf16.mxu1 %v4236_v15  ;;  %v3206_v41 = vmul.f32 %v4633_v21, %v4617_v62 }
0x1209   :  { %4239 = vmatpush3.bf16.msra.mxu1 %v4236_v15 }
0x120a   :  { %v4635_v45 = vpop.eup %4634  ;;  %v4240_v61 = vpack.c.bf16 %v3207_v37, %v3206_v41 }
0x120b   :  { %v4637_v63 = vpop.eup %4636  ;;  %v3209_v53 = vmul.f32 %v4635_v45, %v4619_v50 }
0x120c   :  { %4241 = vmatprep.subr.bf16.mxu1 %v4240_v61  ;;  %v3208_v18 = vmul.f32 %v4637_v63, %v4621_v29 }
0x120d   :  { %4243 = vmatpush3.bf16.msra.mxu1 %v4240_v61 }
0x120e   :  { %v4639_v33 = vpop.eup %4638  ;;  %v4244_v10 = vpack.c.bf16 %v3209_v53, %v3208_v18 }
0x120f   :  { %v4641_v5 = vpop.eup %4640  ;;  %v3211_v47 = vmul.f32 %v4639_v33, %v4623_v13 }
0x1210   :  { %4245 = vmatprep.subr.bf16.mxu1 %v4244_v10  ;;  %v3210_v55 = vmul.f32 %v4641_v5, %v4625_v56 }
0x1211   :  { %4247 = vmatpush3.bf16.msra.mxu1 %v4244_v10 }
0x1212   :  { %v4248_v8 = vpack.c.bf16 %v3211_v47, %v3210_v55 }
0x1214   :  { %4249 = vmatprep.subr.bf16.mxu1 %v4248_v8 }
0x1215   :  { %4251 = vmatpush3.bf16.msra.mxu1 %v4248_v8 }
0x1218   :  { %4133 = vmatmul.mubr.msk.f32.vlgmr.msra.gmra.mrb[22].mxu1 %vm455_vm5, %v5889_v16 }
0x1219   :  { %4135 = vmatprep.mubr.msk.f32.mxu1 %vm455_vm5, %v5899_v39 }
0x121c   :  { %4136 = vmatmul.mubr.msk.f32.gmra.mrb[32].mxu1 %vm455_vm5, %v5896_v49 }
0x121d   :  { %4138 = vmatprep.mubr.msk.f32.mxu1 %vm455_vm5, %v5908_v24 }
0x1220   :  { %4139 = vmatmul.mubr.msk.f32.gmra.mrb[34].mxu1 %vm455_vm5, %v5905_v4 }
0x1221   :  { %4141 = vmatprep.mubr.msk.f32.mxu1 %vm455_vm5, %v5917_v35 }
0x1224   :  { %4142 = vmatmul.mubr.msk.f32.gmra.mrb[36].mxu1 %vm455_vm5, %v5914_v57 }
0x12eb   :  { %v4134_v59 = vpop.f32.mrb[22].mxu1 }
0x12ec   :  { %v3318_v7 = vsel %vm2922_vm13, %v4134_v59, -1e+30  ;;  %v3278_v46 = vpop.f32.mrb[23].mxu1 }
0x12ed   :  { %v3317_v58 = vsel %vm2922_vm13, %v3278_v46, -1e+30  ;;  %3327 = vmax.xlane.f32.xlu1 %v3318_v7 }
0x12ee   :  { %3325 = vmax.xlane.f32.xlu0 %v3317_v58 }
0x12ef   :  { %v4137_v27 = vpop.f32.mrb[32].mxu1 }
0x12f0   :  { %v3320_v19 = vsel %vm2922_vm13, %v4137_v27, -1e+30  ;;  %v3288_v48 = vpop.f32.mrb[33].mxu1 }
0x12f1   :  { %v3319_v51 = vsel %vm2922_vm13, %v3288_v48, -1e+30  ;;  %3331 = vmax.xlane.f32.xlu1 %v3320_v19 }
0x12f2   :  { %3329 = vmax.xlane.f32.xlu0 %v3319_v51 }
0x12f3   :  { %v4140_v23 = vpop.f32.mrb[34].mxu1 }
0x12f4   :  { %v3322_v14 = vsel %vm2922_vm13, %v4140_v23, -1e+30  ;;  %v3298_v12 = vpop.f32.mrb[35].mxu1 }
0x12f5   :  { %v3321_v0 = vsel %vm2922_vm13, %v3298_v12, -1e+30  ;;  %3335 = vmax.xlane.f32.xlu1 %v3322_v14 }
0x12f6   :  { %3333 = vmax.xlane.f32.xlu0 %v3321_v0 }
0x12f7   :  { %v4143_v43 = vpop.f32.mrb[36].mxu1 }
0x12f8   :  { %v3324_v9 = vsel %vm2922_vm13, %v4143_v43, -1e+30  ;;  %v3308_v17 = vpop.f32.mrb[37].mxu1 }
0x12f9   :  { %v3323_v22 = vsel %vm2922_vm13, %v3308_v17, -1e+30  ;;  %3339 = vmax.xlane.f32.xlu1 %v3324_v9 }
0x12fa   :  { %3337 = vmax.xlane.f32.xlu0 %v3323_v22 }
0x137a   :  { %v3328_v1 = vpop.xlane.xlu1 %3327 }
0x137b   :  { %v3342_v42 = vsub.f32 %v3318_v7, %v3328_v1  ;;  %v3326_v3 = vpop.xlane.xlu0 %3325 }
0x137c   :  { %v3341_v31 = vsub.f32 %v3317_v58, %v3326_v3 }
0x137d   :  { %v3351_v2 = vmul.f32 1.442695, %v3342_v42 }
0x137e   :  { %v3349_v11 = vmul.f32 1.442695, %v3341_v31  ;;  %v3332_v26 = vpop.xlane.xlu1 %3331 }
0x137f   :  { %4642 = vpow2.f32 %v3351_v2  ;;  %v3344_v62 = vsub.f32 %v3320_v19, %v3332_v26  ;;  %v3330_v50 = vpop.xlane.xlu0 %3329 }
0x1380   :  { %4644 = vpow2.f32 %v3349_v11  ;;  %v3343_v29 = vsub.f32 %v3319_v51, %v3330_v50 }
0x1381   :  { %v3355_v13 = vmul.f32 1.442695, %v3344_v62 }
0x1382   :  { %v3353_v56 = vmul.f32 1.442695, %v3343_v29  ;;  %v3336_v34 = vpop.xlane.xlu1 %3335 }
0x1383   :  { %4646 = vpow2.f32 %v3355_v13  ;;  %v3346_v6 = vsub.f32 %v3322_v14, %v3336_v34  ;;  %v3334_v36 = vpop.xlane.xlu0 %3333 }
0x1384   :  { %4648 = vpow2.f32 %v3353_v56  ;;  %v3345_v40 = vsub.f32 %v3321_v0, %v3334_v36 }
0x1385   :  { %v3359_v30 = vmul.f32 1.442695, %v3346_v6 }
0x1386   :  { %v3357_v32 = vmul.f32 1.442695, %v3345_v40  ;;  %v3340_v38 = vpop.xlane.xlu1 %3339 }
0x1387   :  { %4650 = vpow2.f32 %v3359_v30  ;;  %v3348_v60 = vsub.f32 %v3324_v9, %v3340_v38  ;;  %v3338_v20 = vpop.xlane.xlu0 %3337 }
0x1388   :  { %4652 = vpow2.f32 %v3357_v32  ;;  %v3347_v44 = vsub.f32 %v3323_v22, %v3338_v20 }
0x1389   :  { %v4643_v25 = vpop.eup %4642  ;;  %v3363_v54 = vmul.f32 1.442695, %v3348_v60 }
0x138a   :  { %v4645_v28 = vpop.eup %4644  ;;  %v3361_v15 = vmul.f32 1.442695, %v3347_v44  ;;  %3367 = vadd.xlane.f32.xlu1 %v4643_v25 }
0x138b   :  { %4654 = vpow2.f32 %v3363_v54  ;;  %3365 = vadd.xlane.f32.xlu0 %v4645_v28 }
0x138c   :  { %4656 = vpow2.f32 %v3361_v15 }
0x138d   :  { %v4647_v21 = vpop.eup %4646 }
0x138e   :  { %v4649_v37 = vpop.eup %4648  ;;  %3371 = vadd.xlane.f32.xlu1 %v4647_v21 }
0x138f   :  { %3369 = vadd.xlane.f32.xlu0 %v4649_v37 }
0x1391   :  { %v4651_v41 = vpop.eup %4650 }
0x1392   :  { %v4653_v45 = vpop.eup %4652  ;;  %3375 = vadd.xlane.f32.xlu1 %v4651_v41 }
0x1393   :  { %3373 = vadd.xlane.f32.xlu0 %v4653_v45 }
0x1395   :  { %v4655_v61 = vpop.eup %4654 }
0x1396   :  { %v4657_v63 = vpop.eup %4656  ;;  %3379 = vadd.xlane.f32.xlu1 %v4655_v61 }
0x1397   :  { %3377 = vadd.xlane.f32.xlu0 %v4657_v63 }
0x1417   :  { %v3368_v53 = vpop.xlane.xlu1 %3367 }
0x1418   :  { %4658 = vrcp.f32 %v3368_v53  ;;  %v3366_v18 = vpop.xlane.xlu0 %3365 }
0x1419   :  { %4660 = vrcp.f32 %v3366_v18 }
0x141b   :  { %v3372_v33 = vpop.xlane.xlu1 %3371 }
0x141c   :  { %4662 = vrcp.f32 %v3372_v33  ;;  %v3370_v10 = vpop.xlane.xlu0 %3369 }
0x141d   :  { %4664 = vrcp.f32 %v3370_v10 }
0x141f   :  { %v3376_v5 = vpop.xlane.xlu1 %3375 }
0x1420   :  { %4666 = vrcp.f32 %v3376_v5  ;;  %v3374_v47 = vpop.xlane.xlu0 %3373 }
0x1421   :  { %4668 = vrcp.f32 %v3374_v47 }
0x1422   :  { %v4659_v55 = vpop.eup %4658 }
0x1423   :  { %v4661_v8 = vpop.eup %4660  ;;  %v3380_v59 = vpop.xlane.xlu1 %3379  ;;  %v3390_v7 = vmul.f32 %v4659_v55, %v4643_v25 }
0x1424   :  { %4670 = vrcp.f32 %v3380_v59  ;;  %v3378_v46 = vpop.xlane.xlu0 %3377  ;;  %v3389_v58 = vmul.f32 %v4661_v8, %v4645_v28 }
0x1425   :  { %4672 = vrcp.f32 %v3378_v46 }
0x1426   :  { %v4663_v27 = vpop.eup %4662  ;;  %v4252_v19 = vpack.c.bf16 %v3390_v7, %v3389_v58 }
0x1427   :  { %v4665_v48 = vpop.eup %4664  ;;  %v3392_v51 = vmul.f32 %v4663_v27, %v4647_v21 }
0x1428   :  { %4253 = vmatprep.subr.bf16.mxu0 %v4252_v19  ;;  %v3391_v23 = vmul.f32 %v4665_v48, %v4649_v37 }
0x1429   :  { %4255 = vmatpush3.bf16.msra.mxu0 %v4252_v19 }
0x142a   :  { %v4667_v14 = vpop.eup %4666  ;;  %v4256_v12 = vpack.c.bf16 %v3392_v51, %v3391_v23 }
0x142b   :  { %v4669_v0 = vpop.eup %4668  ;;  %v3394_v43 = vmul.f32 %v4667_v14, %v4651_v41 }
0x142c   :  { %4257 = vmatprep.subr.bf16.mxu0 %v4256_v12  ;;  %v3393_v9 = vmul.f32 %v4669_v0, %v4653_v45 }
0x142d   :  { %4259 = vmatpush3.bf16.msra.mxu0 %v4256_v12 }
0x142e   :  { %v4671_v17 = vpop.eup %4670  ;;  %v4260_v22 = vpack.c.bf16 %v3394_v43, %v3393_v9 }
0x142f   :  { %v4673_v1 = vpop.eup %4672  ;;  %v3396_v42 = vmul.f32 %v4671_v17, %v4655_v61 }
0x1430   :  { %4261 = vmatprep.subr.bf16.mxu0 %v4260_v22  ;;  %v3395_v3 = vmul.f32 %v4673_v1, %v4657_v63 }
0x1431   :  { %4263 = vmatpush3.bf16.msra.mxu0 %v4260_v22 }
0x1432   :  { %v4264_v31 = vpack.c.bf16 %v3396_v42, %v3395_v3 }
0x1434   :  { %4265 = vmatprep.subr.bf16.mxu0 %v4264_v31 }
0x1435   :  { %4267 = vmatpush3.bf16.msra.mxu0 %v4264_v31 }
0x1438   :  { %4161 = vmatmul.mubr.msk.f32.vlgmr.msra.gmra.mrb[88].mxu0 %vm455_vm5, %v5889_v16 }
0x1439   :  { %4163 = vmatprep.mubr.msk.f32.mxu0 %vm455_vm5, %v5899_v39 }
0x143c   :  { %4164 = vmatmul.mubr.msk.f32.gmra.mrb[90].mxu0 %vm455_vm5, %v5896_v49 }
0x143d   :  { %4166 = vmatprep.mubr.msk.f32.mxu0 %vm455_vm5, %v5908_v24 }
0x1440   :  { %4167 = vmatmul.mubr.msk.f32.gmra.mrb[92].mxu0 %vm455_vm5, %v5905_v4 }
0x1441   :  { %4169 = vmatprep.mubr.msk.f32.mxu0 %vm455_vm5, %v5917_v35 }
0x1444   :  { %4170 = vmatmul.mubr.msk.f32.gmra.mrb[94].mxu0 %vm455_vm5, %v5914_v57 }
0x150b   :  { %v4162_v2 = vpop.f32.mrb[88].mxu0 }
0x150c   :  { %v3503_v16 = vsel %vm2922_vm13, %v4162_v2, -1e+30  ;;  %v3463_v39 = vpop.f32.mrb[89].mxu0 }
0x150d   :  { %v3502_v49 = vsel %vm2922_vm13, %v3463_v39, -1e+30  ;;  %3512 = vmax.xlane.f32.xlu1 %v3503_v16 }
0x150e   :  { %3510 = vmax.xlane.f32.xlu0 %v3502_v49 }
0x150f   :  { %v4165_v24 = vpop.f32.mrb[90].mxu0 }
0x1510   :  { %v3505_v4 = vsel %vm2922_vm13, %v4165_v24, -1e+30  ;;  %v3473_v11 = vpop.f32.mrb[91].mxu0 }
0x1511   :  { %v3504_v35 = vsel %vm2922_vm13, %v3473_v11, -1e+30  ;;  %3516 = vmax.xlane.f32.xlu1 %v3505_v4 }
0x1512   :  { %3514 = vmax.xlane.f32.xlu0 %v3504_v35 }
0x1513   :  { %v4168_v57 = vpop.f32.mrb[92].mxu0 }
0x1514   :  { %v3507_v26 = vsel %vm2922_vm13, %v4168_v57, -1e+30  ;;  %v3483_v62 = vpop.f32.mrb[93].mxu0 }
0x1515   :  { %v3506_v50 = vsel %vm2922_vm13, %v3483_v62, -1e+30  ;;  %3520 = vmax.xlane.f32.xlu1 %v3507_v26 }
0x1516   :  { %3518 = vmax.xlane.f32.xlu0 %v3506_v50 }
0x1517   :  { %v4171_v29 = vpop.f32.mrb[94].mxu0 }
0x1518   :  { %v3509_v13 = vsel %vm2922_vm13, %v4171_v29, -1e+30  ;;  %v3493_v56 = vpop.f32.mrb[95].mxu0 }
0x1519   :  { %v3508_v34 = vsel %vm2922_vm13, %v3493_v56, -1e+30  ;;  %3524 = vmax.xlane.f32.xlu1 %v3509_v13 }
0x151a   :  { %3522 = vmax.xlane.f32.xlu0 %v3508_v34 }
0x159a   :  { %v3513_v6 = vpop.xlane.xlu1 %3512 }
0x159b   :  { %v3527_v36 = vsub.f32 %v3503_v16, %v3513_v6  ;;  %v3511_v40 = vpop.xlane.xlu0 %3510 }
0x159c   :  { %v3526_v30 = vsub.f32 %v3502_v49, %v3511_v40 }
0x159d   :  { %v3536_v32 = vmul.f32 1.442695, %v3527_v36 }
0x159e   :  { %v3534_v38 = vmul.f32 1.442695, %v3526_v30  ;;  %v3517_v60 = vpop.xlane.xlu1 %3516 }
0x159f   :  { %4674 = vpow2.f32 %v3536_v32  ;;  %v3529_v20 = vsub.f32 %v3505_v4, %v3517_v60  ;;  %v3515_v44 = vpop.xlane.xlu0 %3514 }
0x15a0   :  { %4676 = vpow2.f32 %v3534_v38  ;;  %v3528_v25 = vsub.f32 %v3504_v35, %v3515_v44 }
0x15a1   :  { %v3540_v54 = vmul.f32 1.442695, %v3529_v20 }
0x15a2   :  { %v3538_v28 = vmul.f32 1.442695, %v3528_v25  ;;  %v3521_v15 = vpop.xlane.xlu1 %3520 }
0x15a3   :  { %4678 = vpow2.f32 %v3540_v54  ;;  %v3531_v21 = vsub.f32 %v3507_v26, %v3521_v15  ;;  %v3519_v37 = vpop.xlane.xlu0 %3518 }
0x15a4   :  { %4680 = vpow2.f32 %v3538_v28  ;;  %v3530_v41 = vsub.f32 %v3506_v50, %v3519_v37 }
0x15a5   :  { %v3544_v45 = vmul.f32 1.442695, %v3531_v21 }
0x15a6   :  { %v3542_v61 = vmul.f32 1.442695, %v3530_v41  ;;  %v3525_v63 = vpop.xlane.xlu1 %3524 }
0x15a7   :  { %4682 = vpow2.f32 %v3544_v45  ;;  %v3533_v53 = vsub.f32 %v3509_v13, %v3525_v63  ;;  %v3523_v18 = vpop.xlane.xlu0 %3522 }
0x15a8   :  { %4684 = vpow2.f32 %v3542_v61  ;;  %v3532_v33 = vsub.f32 %v3508_v34, %v3523_v18 }
0x15a9   :  { %v4675_v10 = vpop.eup %4674  ;;  %v3548_v5 = vmul.f32 1.442695, %v3533_v53 }
0x15aa   :  { %v4677_v47 = vpop.eup %4676  ;;  %v3546_v55 = vmul.f32 1.442695, %v3532_v33  ;;  %3552 = vadd.xlane.f32.xlu1 %v4675_v10 }
0x15ab   :  { %4686 = vpow2.f32 %v3548_v5  ;;  %3550 = vadd.xlane.f32.xlu0 %v4677_v47 }
0x15ac   :  { %4688 = vpow2.f32 %v3546_v55 }
0x15ad   :  { %v4679_v8 = vpop.eup %4678 }
0x15ae   :  { %v4681_v59 = vpop.eup %4680  ;;  %3556 = vadd.xlane.f32.xlu1 %v4679_v8 }
0x15af   :  { %3554 = vadd.xlane.f32.xlu0 %v4681_v59 }
0x15b1   :  { %v4683_v7 = vpop.eup %4682 }
0x15b2   :  { %v4685_v46 = vpop.eup %4684  ;;  %3560 = vadd.xlane.f32.xlu1 %v4683_v7 }
0x15b3   :  { %3558 = vadd.xlane.f32.xlu0 %v4685_v46 }
0x15b5   :  { %v4687_v58 = vpop.eup %4686 }
0x15b6   :  { %v4689_v27 = vpop.eup %4688  ;;  %3564 = vadd.xlane.f32.xlu1 %v4687_v58 }
0x15b7   :  { %3562 = vadd.xlane.f32.xlu0 %v4689_v27 }
0x1637   :  { %v3553_v19 = vpop.xlane.xlu1 %3552 }
0x1638   :  { %4690 = vrcp.f32 %v3553_v19  ;;  %v3551_v48 = vpop.xlane.xlu0 %3550 }
0x1639   :  { %4692 = vrcp.f32 %v3551_v48 }
0x163b   :  { %v3557_v51 = vpop.xlane.xlu1 %3556 }
0x163c   :  { %4694 = vrcp.f32 %v3557_v51  ;;  %v3555_v23 = vpop.xlane.xlu0 %3554 }
0x163d   :  { %4696 = vrcp.f32 %v3555_v23 }
0x163f   :  { %v3561_v14 = vpop.xlane.xlu1 %3560 }
0x1640   :  { %4698 = vrcp.f32 %v3561_v14  ;;  %v3559_v12 = vpop.xlane.xlu0 %3558 }
0x1641   :  { %4700 = vrcp.f32 %v3559_v12 }
0x1642   :  { %v4691_v0 = vpop.eup %4690 }
0x1643   :  { %v4693_v43 = vpop.eup %4692  ;;  %v3575_v9 = vmul.f32 %v4691_v0, %v4675_v10  ;;  %v3565_v17 = vpop.xlane.xlu1 %3564 }
0x1644   :  { %v3574_v22 = vmul.f32 %v4693_v43, %v4677_v47  ;;  %4702 = vrcp.f32 %v3565_v17  ;;  %v3563_v1 = vpop.xlane.xlu0 %3562 }
0x1645   :  { %v3583_v42 = vsel %vm2922_vm13, %v3575_v9, 1.0  ;;  %4704 = vrcp.f32 %v3563_v1 }
0x1646   :  { %v4695_v3 = vpop.eup %4694  ;;  %4706 = vlog2.f32 %v3583_v42  ;;  %v3582_v31 = vsel %vm2922_vm13, %v3574_v22, 1.0 }
0x1647   :  { %v4697_v2 = vpop.eup %4696  ;;  %4708 = vlog2.f32 %v3582_v31  ;;  %v3577_v16 = vmul.f32 %v4695_v3, %v4679_v8 }
0x1648   :  { %v3576_v39 = vmul.f32 %v4697_v2, %v4681_v59 }
0x1649   :  { %v3585_v49 = vsel %vm2922_vm13, %v3577_v16, 1.0 }
0x164a   :  { %v4699_v24 = vpop.eup %4698  ;;  %4710 = vlog2.f32 %v3585_v49  ;;  %v3584_v4 = vsel %vm2922_vm13, %v3576_v39, 1.0 }
0x164b   :  { %v4701_v11 = vpop.eup %4700  ;;  %4712 = vlog2.f32 %v3584_v4  ;;  %v3579_v35 = vmul.f32 %v4699_v24, %v4683_v7 }
0x164c   :  { %v3578_v57 = vmul.f32 %v4701_v11, %v4685_v46 }
0x164d   :  { %v3587_v26 = vsel %vm2922_vm13, %v3579_v35, 1.0 }
0x164e   :  { %v4703_v62 = vpop.eup %4702  ;;  %4714 = vlog2.f32 %v3587_v26  ;;  %v3586_v50 = vsel %vm2922_vm13, %v3578_v57, 1.0 }
0x164f   :  { %v4705_v29 = vpop.eup %4704  ;;  %4716 = vlog2.f32 %v3586_v50  ;;  %v3581_v13 = vmul.f32 %v4703_v62, %v4687_v58 }
0x1650   :  { %v4707_v56 = vpop.eup %4706  ;;  %v3580_v34 = vmul.f32 %v4705_v29, %v4689_v27 }
0x1651   :  { %v4709_v6 = vpop.eup %4708  ;;  %v3593_v36 = vmul.f32 0.6931472, %v4707_v56  ;;  %v3589_v40 = vsel %vm2922_vm13, %v3581_v13, 1.0 }
0x1652   :  { %v3591_v30 = vmul.f32 0.6931472, %v4709_v6  ;;  %4718 = vlog2.f32 %v3589_v40  ;;  %v3588_v32 = vsel %vm2922_vm13, %v3580_v34, 1.0 }
0x1653   :  { %3607 = vst [vmem:[#allocation3 + $0x8] sm:$0xff] %v3593_v36  ;;  %4720 = vlog2.f32 %v3588_v32 }
0x1654   :  { %v4711_v38 = vpop.eup %4710  ;;  %3606 = vst [vmem:[#allocation3] sm:$0xff] %v3591_v30 }
0x1655   :  { %v4713_v60 = vpop.eup %4712  ;;  %v3597_v20 = vmul.f32 0.6931472, %v4711_v38 }
0x1656   :  { %v3595_v44 = vmul.f32 0.6931472, %v4713_v60 }
0x1657   :  { %3609 = vst [vmem:[#allocation3 + $0x18] sm:$0xff] %v3597_v20 }
0x1658   :  { %v4715_v25 = vpop.eup %4714  ;;  %3608 = vst [vmem:[#allocation3 + $0x10] sm:$0xff] %v3595_v44 }
0x1659   :  { %v4717_v54 = vpop.eup %4716  ;;  %v3601_v28 = vmul.f32 0.6931472, %v4715_v25 }
0x165a   :  { %v3599_v15 = vmul.f32 0.6931472, %v4717_v54 }
0x165b   :  { %3611 = vst [vmem:[#allocation3 + $0x28] sm:$0xff] %v3601_v28 }
0x165c   :  { %v4719_v21 = vpop.eup %4718  ;;  %3610 = vst [vmem:[#allocation3 + $0x20] sm:$0xff] %v3599_v15 }
0x165d   :  { %v4721_v52 = vpop.eup %4720  ;;  %v3605_v37 = vmul.f32 0.6931472, %v4719_v21 }
0x165e   :  { %v3603_v41 = vmul.f32 0.6931472, %v4721_v52 }
0x165f   :  { %3613 = vst [vmem:[#allocation3 + $0x38] sm:$0xff] %v3605_v37 }
0x1660   :  { %3612 = vst [vmem:[#allocation3 + $0x30] sm:$0xff] %v3603_v41 }
0x1661   :  { %4733 = shalt.err (!%p4730_p4)
}
0x1662   :  { %s4734_s14 = scalar_lea.hbm %s6071_s11, 1024 }
0x1663   :  { %p4735_p5 = scmp.ne.s32.totalorder %s6071_s11, %s4734_s14  ;;  %p4738_p6 = scmp.lt.u32.totalorder %s4734_s14, %s6071_s11 }
0x1665   :  { %p4740_p7 = pnand %p4738_p6, %p4735_p5 }
0x1667   :  { %4743 = shalt.err (!%p4740_p7)
}
0x1668   :  { %s4754_s3 = smov 128  }
0x1669   :  { %3625 = dma.vmem_to_hbm [thread:$0]  %s3620_s29, 1024, %s6071_s11, [#allocation4], %s4754_s3, %s4754_s3, %s4752_s22  }
0x166a   :  { %4744 = dma.done.wait [#allocation4], 1024  }
0x166b   :  { %4745 = vsyncadd [#allocation4], 4294966272 }
0x166c   :  { %3629 = vsyncpa [#allocation4], 1 }

</bundles_post_ra>
